<compile_context>
chip_gen: v7x
topology: tpu7x:2x2x1
jax: 0.10.0
libtpu: 0.0.40
codegen_flags: <defaults>
</compile_context>

<pallas_src>
import jax
import jax.numpy as jnp
from jax.experimental import pallas as pl
from jax.experimental.pallas import tpu as pltpu

EPS = 1e-5


def _instance_norm(h):
    # h: (H*W, C) float32.  One-pass biased mean/variance over the spatial axis
    # (matches PyTorch InstanceNorm2d with affine=False, eps=1e-5).
    n = h.shape[0]
    inv_n = 1.0 / n
    s = jnp.sum(h, axis=0, keepdims=True)
    s2 = jnp.sum(h * h, axis=0, keepdims=True)
    mean = s * inv_n
    var = jnp.maximum(s2 * inv_n - mean * mean, 0.0)
    return (h - mean) * jax.lax.rsqrt(var + EPS)


def _reflect_pad_into(pad_ref, h, H, W):
    # Write reflect-pad(1) of h (H, W, C) into pad_ref (H+2, W+2, C).
    pad_ref[1:H + 1, 1:W + 1, :] = h
    # top / bottom rows (reflect, no edge repeat): row 0 <- h[1], row H+1 <- h[H-2]
    pad_ref[0:1, 1:W + 1, :] = h[1:2, :, :]
    pad_ref[H + 1:H + 2, 1:W + 1, :] = h[H - 2:H - 1, :, :]
    # left / right columns; corners correctly reflect the already-reflected rows
    pad_ref[:, 0:1, :] = pad_ref[:, 2:3, :]
    pad_ref[:, W + 1:W + 2, :] = pad_ref[:, W - 1:W, :]


def _conv3x3(pad_ref, w_ref, b_ref, H, W, C):
    # pad_ref: (H+2, W+2, C) in the input dtype (already reflect-padded)
    # w_ref:   (3, 3C, C)  -- HWIO weights with (kx, cin) stacked along axis 1
    # b_ref:   (1, C) float32
    # Returns (H*W, C) float32.
    acc = jnp.zeros((H * W, C), jnp.float32)
    for ky in range(3):
        rows = pad_ref[ky:ky + H, :, :]                             # (H, W+2, C)
        patch = jnp.concatenate(
            [rows[:, 0:W, :], rows[:, 1:W + 1, :], rows[:, 2:W + 2, :]],
            axis=-1).reshape(H * W, 3 * C)                          # (H*W, 3C)
        acc = acc + jnp.dot(patch, w_ref[ky],
                            preferred_element_type=jnp.float32)
    return acc + b_ref[...]


def resnet_block_kernel(x_ref, w1_ref, b1_ref, w2_ref, b2_ref, o_ref, pad_ref):
    # Per grid step (one batch element):
    #   x_ref/o_ref: (1, H, W, C)   w*_ref: (3, 3C, C)   b*_ref: (1, C) f32
    #   pad_ref: VMEM scratch (H+2, W+2, C) in the input dtype, reused twice.
    _, H, W, C = x_ref.shape
    x = x_ref[0]                                  # (H, W, C), native dtype

    # --- reflect pad -> conv1 -> InstanceNorm -> ReLU ---
    _reflect_pad_into(pad_ref, x, H, W)
    h = _conv3x3(pad_ref, w1_ref, b1_ref, H, W, C)
    h = jnp.maximum(_instance_norm(h), 0.0)
    # (use_dropout=False in this configuration, so no dropout here)

    # --- reflect pad (same scratch) -> conv2 -> InstanceNorm ---
    _reflect_pad_into(pad_ref, h.reshape(H, W, C).astype(pad_ref.dtype), H, W)
    h2 = _conv3x3(pad_ref, w2_ref, b2_ref, H, W, C)
    h2 = _instance_norm(h2)

    # --- residual add ---
    out = x.astype(jnp.float32) + h2.reshape(H, W, C)
    o_ref[0] = out.astype(o_ref.dtype)


def resnet_block_forward(x_nchw, w1, b1, w2, b2):
    """x_nchw: (N, C, H, W).  w*: (3, 3, C, C) HWIO.  b*: (C,)."""
    x = jnp.transpose(x_nchw, (0, 2, 3, 1))       # NCHW -> NHWC
    N, H, W, C = x.shape

    # Pre-stack weights so each kernel row ky becomes one (3C, C) matmul operand;
    # keep matmul operands in the activation dtype, biases/stats in f32.
    w1s = w1.reshape(3, 3 * C, C).astype(x.dtype)
    w2s = w2.reshape(3, 3 * C, C).astype(x.dtype)
    b1r = b1.reshape(1, C).astype(jnp.float32)
    b2r = b2.reshape(1, C).astype(jnp.float32)

    # Explicit scoped-VMEM budget from the per-step working set (with headroom).
    isz = x.dtype.itemsize
    est = (
        4 * H * W * C * isz                       # double-buffered in + out blocks
        + 4 * 9 * C * C * isz + 4 * C * 4         # double-buffered weights + biases
        + (H + 2) * (W + 2) * C * isz             # reflect-pad scratch
        + 10 * H * W * C * 4                      # f32 temporaries (patch/acc/h/h2)
    )
    vmem_limit = int(min(max(2 * est, 32 * 1024 * 1024), 64 * 1024 * 1024))

    # TODO(synk): for very large spatial extents (or v7x dual-TC at batch 1),
    # tile H across a second "parallel" grid axis with a two-pass instance norm
    # (stats pass, then normalize/residual pass).
    # TODO(synk): at tiny C (e.g. the C=4 test) the lane axis is mostly masked;
    # a lane-dense (H, W*C) layout would fix that, but real CycleGAN uses C=256
    # where NHWC is already lane-dense.
    out_nhwc = pl.pallas_call(
        resnet_block_kernel,
        out_shape=jax.ShapeDtypeStruct((N, H, W, C), x.dtype),
        grid_spec=pltpu.PrefetchScalarGridSpec(
            num_scalar_prefetch=0,
            grid=(N,),
            in_specs=[
                pl.BlockSpec((1, H, W, C), lambda n: (n, 0, 0, 0)),
                pl.BlockSpec((3, 3 * C, C), lambda n: (0, 0, 0)),
                pl.BlockSpec((1, C), lambda n: (0, 0)),
                pl.BlockSpec((3, 3 * C, C), lambda n: (0, 0, 0)),
                pl.BlockSpec((1, C), lambda n: (0, 0)),
            ],
            out_specs=pl.BlockSpec((1, H, W, C), lambda n: (n, 0, 0, 0)),
            scratch_shapes=[pltpu.VMEM((H + 2, W + 2, C), x.dtype)],
        ),
        compiler_params=pltpu.CompilerParams(
            dimension_semantics=("parallel",),
            vmem_limit_bytes=vmem_limit),
    )(x, w1s, b1r, w2s, b2r)

    return jnp.transpose(out_nhwc, (0, 3, 1, 2))  # NHWC -> NCHW


def resnet_block_reference(x_nchw, w1, b1, w2, b2):
    """Pure-JAX reference for correctness checking."""
    x = jnp.transpose(x_nchw, (0, 2, 3, 1))

    def pad(a):
        return jnp.pad(a, ((0, 0), (1, 1), (1, 1), (0, 0)), mode="reflect")

    def conv(a, w, b):
        y = jax.lax.conv_general_dilated(
            a, w, window_strides=(1, 1), padding="VALID",
            dimension_numbers=("NHWC", "HWIO", "NHWC"))
        return y + b

    def inorm(a):
        mean = a.mean(axis=(1, 2), keepdims=True)
        var = ((a - mean) ** 2).mean(axis=(1, 2), keepdims=True)
        return (a - mean) * jax.lax.rsqrt(var + EPS)

    h = jax.nn.relu(inorm(conv(pad(x), w1, b1)))
    h = inorm(conv(pad(h), w2, b2))
    out = x + h
    return jnp.transpose(out, (0, 3, 1, 2))


if __name__ == "__main__":
    # Small deterministic problem: batch=2, dim(channels)=4, spatial=16x16.
    N, C, H, W = 2, 4, 16, 16
    key = jax.random.PRNGKey(0)
    kx, kw1, kb1, kw2, kb2 = jax.random.split(key, 5)

    x = jax.random.normal(kx, (N, C, H, W), dtype=jnp.float32)
    # Conv2d(dim, dim, kernel_size=3, bias=True) weights, stored HWIO.
    w1 = jax.random.normal(kw1, (3, 3, C, C), dtype=jnp.float32) * 0.1
    b1 = jax.random.normal(kb1, (C,), dtype=jnp.float32) * 0.1
    w2 = jax.random.normal(kw2, (3, 3, C, C), dtype=jnp.float32) * 0.1
    b2 = jax.random.normal(kb2, (C,), dtype=jnp.float32) * 0.1

    ref = jax.block_until_ready(resnet_block_reference(x, w1, b1, w2, b2))

    out = resnet_block_forward(x, w1, b1, w2, b2)
    out = jax.block_until_ready(out)

    assert out.shape == (N, C, H, W)
    assert jnp.allclose(out, ref, atol=2e-4, rtol=2e-4), \
        f"max abs err {jnp.max(jnp.abs(out - ref))}"

    print("KERNEL_OK")
</pallas_src>

<mosaic_0001>
module attributes {stable_mosaic.version = 11 : i64} {
  func.func @resnet_block_kernel(%arg0: i32, %arg1: memref<1x16x16x4xf32, #tpu.memory_space<vmem>>, %arg2: memref<3x12x4xf32, #tpu.memory_space<vmem>>, %arg3: memref<1x4xf32, #tpu.memory_space<vmem>>, %arg4: memref<3x12x4xf32, #tpu.memory_space<vmem>>, %arg5: memref<1x4xf32, #tpu.memory_space<vmem>>, %arg6: memref<1x16x16x4xf32, #tpu.memory_space<vmem>>, %arg7: memref<18x18x4xf32, #tpu.memory_space<vmem>>) attributes {dimension_semantics = [#tpu.dimension_semantics<parallel>], iteration_bounds = array<i64: 2>, scalar_prefetch = 0 : i64, scratch_operands = 1 : i64, tpu.core_type = #tpu.core_type<tc>, window_params = [{transform_indices = @transform_0, window_bounds = array<i64: 1, 16, 16, 4>}, {pipeline_mode = #tpu.pipeline_mode<synchronous>, transform_indices = @transform_1, window_bounds = array<i64: 3, 12, 4>}, {pipeline_mode = #tpu.pipeline_mode<synchronous>, transform_indices = @transform_2, window_bounds = array<i64: 1, 4>}, {pipeline_mode = #tpu.pipeline_mode<synchronous>, transform_indices = @transform_3, window_bounds = array<i64: 3, 12, 4>}, {pipeline_mode = #tpu.pipeline_mode<synchronous>, transform_indices = @transform_4, window_bounds = array<i64: 1, 4>}, {transform_indices = @transform_5, window_bounds = array<i64: 1, 16, 16, 4>}]} {
    %c0 = arith.constant 0 : index
    %c0_0 = arith.constant 0 : index
    %c0_1 = arith.constant 0 : index
    %c0_2 = arith.constant 0 : index
    %0 = vector.load %arg1[%c0, %c0_0, %c0_1, %c0_2] : memref<1x16x16x4xf32, #tpu.memory_space<vmem>>, vector<1x16x16x4xf32>
    %1 = vector.shape_cast %0 : vector<1x16x16x4xf32> to vector<16x16x4xf32>
    %c1 = arith.constant 1 : index
    %c1_3 = arith.constant 1 : index
    %c0_4 = arith.constant 0 : index
    %2 = vector.load %arg7[%c1, %c1_3, %c0_4] : memref<18x18x4xf32, #tpu.memory_space<vmem>>, vector<16x16x4xf32>
    tpu.vector_store %arg7[%c1, %c1_3, %c0_4], %1 {strides = array<i32>} : memref<18x18x4xf32, #tpu.memory_space<vmem>>, vector<16x16x4xf32>,
    %3 = vector.extract_strided_slice %1 {offsets = [1, 0, 0], sizes = [1, 16, 4], strides = [1, 1, 1]} : vector<16x16x4xf32> to vector<1x16x4xf32>
    %c0_5 = arith.constant 0 : index
    %c1_6 = arith.constant 1 : index
    %c0_7 = arith.constant 0 : index
    %4 = vector.load %arg7[%c0_5, %c1_6, %c0_7] : memref<18x18x4xf32, #tpu.memory_space<vmem>>, vector<1x16x4xf32>
    tpu.vector_store %arg7[%c0_5, %c1_6, %c0_7], %3 {strides = array<i32>} : memref<18x18x4xf32, #tpu.memory_space<vmem>>, vector<1x16x4xf32>,
    %5 = vector.extract_strided_slice %1 {offsets = [14, 0, 0], sizes = [1, 16, 4], strides = [1, 1, 1]} : vector<16x16x4xf32> to vector<1x16x4xf32>
    %c17 = arith.constant 17 : index
    %c1_8 = arith.constant 1 : index
    %c0_9 = arith.constant 0 : index
    %6 = vector.load %arg7[%c17, %c1_8, %c0_9] : memref<18x18x4xf32, #tpu.memory_space<vmem>>, vector<1x16x4xf32>
    tpu.vector_store %arg7[%c17, %c1_8, %c0_9], %5 {strides = array<i32>} : memref<18x18x4xf32, #tpu.memory_space<vmem>>, vector<1x16x4xf32>,
    %c0_10 = arith.constant 0 : index
    %c2 = arith.constant 2 : index
    %c0_11 = arith.constant 0 : index
    %7 = vector.load %arg7[%c0_10, %c2, %c0_11] : memref<18x18x4xf32, #tpu.memory_space<vmem>>, vector<18x1x4xf32>
    %c0_12 = arith.constant 0 : index
    %c0_13 = arith.constant 0 : index
    %c0_14 = arith.constant 0 : index
    %8 = vector.load %arg7[%c0_12, %c0_13, %c0_14] : memref<18x18x4xf32, #tpu.memory_space<vmem>>, vector<18x1x4xf32>
    tpu.vector_store %arg7[%c0_12, %c0_13, %c0_14], %7 {strides = array<i32>} : memref<18x18x4xf32, #tpu.memory_space<vmem>>, vector<18x1x4xf32>,
    %c0_15 = arith.constant 0 : index
    %c15 = arith.constant 15 : index
    %c0_16 = arith.constant 0 : index
    %9 = vector.load %arg7[%c0_15, %c15, %c0_16] : memref<18x18x4xf32, #tpu.memory_space<vmem>>, vector<18x1x4xf32>
    %c0_17 = arith.constant 0 : index
    %c17_18 = arith.constant 17 : index
    %c0_19 = arith.constant 0 : index
    %10 = vector.load %arg7[%c0_17, %c17_18, %c0_19] : memref<18x18x4xf32, #tpu.memory_space<vmem>>, vector<18x1x4xf32>
    tpu.vector_store %arg7[%c0_17, %c17_18, %c0_19], %9 {strides = array<i32>} : memref<18x18x4xf32, #tpu.memory_space<vmem>>, vector<18x1x4xf32>,
    %cst = arith.constant 0.000000e+00 : f32
    %11 = vector.broadcast %cst : f32 to vector<256x4xf32>
    %c0_20 = arith.constant 0 : index
    %c0_21 = arith.constant 0 : index
    %c0_22 = arith.constant 0 : index
    %12 = vector.load %arg7[%c0_20, %c0_21, %c0_22] : memref<18x18x4xf32, #tpu.memory_space<vmem>>, vector<16x18x4xf32>
    %13 = vector.extract_strided_slice %12 {offsets = [0, 0, 0], sizes = [16, 16, 4], strides = [1, 1, 1]} : vector<16x18x4xf32> to vector<16x16x4xf32>
    %14 = vector.extract_strided_slice %12 {offsets = [0, 1, 0], sizes = [16, 16, 4], strides = [1, 1, 1]} : vector<16x18x4xf32> to vector<16x16x4xf32>
    %15 = vector.extract_strided_slice %12 {offsets = [0, 2, 0], sizes = [16, 16, 4], strides = [1, 1, 1]} : vector<16x18x4xf32> to vector<16x16x4xf32>
    %16 = tpu.concatenate %13, %14, %15 in 2 : vector<16x16x4xf32>, vector<16x16x4xf32>, vector<16x16x4xf32> -> vector<16x16x12xf32>
    %17 = vector.shape_cast %16 : vector<16x16x12xf32> to vector<256x12xf32>
    %c0_23 = arith.constant 0 : index
    %c0_24 = arith.constant 0 : index
    %c0_25 = arith.constant 0 : index
    %18 = vector.load %arg2[%c0_23, %c0_24, %c0_25] : memref<3x12x4xf32, #tpu.memory_space<vmem>>, vector<1x12x4xf32>
    %19 = vector.shape_cast %18 : vector<1x12x4xf32> to vector<12x4xf32>
    %cst_26 = arith.constant dense<0.000000e+00> : vector<256x4xf32>
    %20 = tpu.matmul %17, %19, %cst_26 {dimension_numbers = #tpu.dot_dimension_numbers<[1], [0], [0], [1], [0, 0, 1, 1], [], []>} : vector<256x12xf32>, vector<12x4xf32>, vector<256x4xf32> -> vector<256x4xf32>
    %21 = arith.addf %11, %20 : vector<256x4xf32>
    %c1_27 = arith.constant 1 : index
    %c0_28 = arith.constant 0 : index
    %c0_29 = arith.constant 0 : index
    %22 = vector.load %arg7[%c1_27, %c0_28, %c0_29] : memref<18x18x4xf32, #tpu.memory_space<vmem>>, vector<16x18x4xf32>
    %23 = vector.extract_strided_slice %22 {offsets = [0, 0, 0], sizes = [16, 16, 4], strides = [1, 1, 1]} : vector<16x18x4xf32> to vector<16x16x4xf32>
    %24 = vector.extract_strided_slice %22 {offsets = [0, 1, 0], sizes = [16, 16, 4], strides = [1, 1, 1]} : vector<16x18x4xf32> to vector<16x16x4xf32>
    %25 = vector.extract_strided_slice %22 {offsets = [0, 2, 0], sizes = [16, 16, 4], strides = [1, 1, 1]} : vector<16x18x4xf32> to vector<16x16x4xf32>
    %26 = tpu.concatenate %23, %24, %25 in 2 : vector<16x16x4xf32>, vector<16x16x4xf32>, vector<16x16x4xf32> -> vector<16x16x12xf32>
    %27 = vector.shape_cast %26 : vector<16x16x12xf32> to vector<256x12xf32>
    %c1_30 = arith.constant 1 : index
    %c0_31 = arith.constant 0 : index
    %c0_32 = arith.constant 0 : index
    %28 = vector.load %arg2[%c1_30, %c0_31, %c0_32] : memref<3x12x4xf32, #tpu.memory_space<vmem>>, vector<1x12x4xf32>
    %29 = vector.shape_cast %28 : vector<1x12x4xf32> to vector<12x4xf32>
    %cst_33 = arith.constant dense<0.000000e+00> : vector<256x4xf32>
    %30 = tpu.matmul %27, %29, %cst_33 {dimension_numbers = #tpu.dot_dimension_numbers<[1], [0], [0], [1], [0, 0, 1, 1], [], []>} : vector<256x12xf32>, vector<12x4xf32>, vector<256x4xf32> -> vector<256x4xf32>
    %31 = arith.addf %21, %30 : vector<256x4xf32>
    %c2_34 = arith.constant 2 : index
    %c0_35 = arith.constant 0 : index
    %c0_36 = arith.constant 0 : index
    %32 = vector.load %arg7[%c2_34, %c0_35, %c0_36] : memref<18x18x4xf32, #tpu.memory_space<vmem>>, vector<16x18x4xf32>
    %33 = vector.extract_strided_slice %32 {offsets = [0, 0, 0], sizes = [16, 16, 4], strides = [1, 1, 1]} : vector<16x18x4xf32> to vector<16x16x4xf32>
    %34 = vector.extract_strided_slice %32 {offsets = [0, 1, 0], sizes = [16, 16, 4], strides = [1, 1, 1]} : vector<16x18x4xf32> to vector<16x16x4xf32>
    %35 = vector.extract_strided_slice %32 {offsets = [0, 2, 0], sizes = [16, 16, 4], strides = [1, 1, 1]} : vector<16x18x4xf32> to vector<16x16x4xf32>
    %36 = tpu.concatenate %33, %34, %35 in 2 : vector<16x16x4xf32>, vector<16x16x4xf32>, vector<16x16x4xf32> -> vector<16x16x12xf32>
    %37 = vector.shape_cast %36 : vector<16x16x12xf32> to vector<256x12xf32>
    %c2_37 = arith.constant 2 : index
    %c0_38 = arith.constant 0 : index
    %c0_39 = arith.constant 0 : index
    %38 = vector.load %arg2[%c2_37, %c0_38, %c0_39] : memref<3x12x4xf32, #tpu.memory_space<vmem>>, vector<1x12x4xf32>
    %39 = vector.shape_cast %38 : vector<1x12x4xf32> to vector<12x4xf32>
    %cst_40 = arith.constant dense<0.000000e+00> : vector<256x4xf32>
    %40 = tpu.matmul %37, %39, %cst_40 {dimension_numbers = #tpu.dot_dimension_numbers<[1], [0], [0], [1], [0, 0, 1, 1], [], []>} : vector<256x12xf32>, vector<12x4xf32>, vector<256x4xf32> -> vector<256x4xf32>
    %41 = arith.addf %31, %40 : vector<256x4xf32>
    %c0_41 = arith.constant 0 : index
    %c0_42 = arith.constant 0 : index
    %42 = vector.load %arg3[%c0_41, %c0_42] : memref<1x4xf32, #tpu.memory_space<vmem>>, vector<1x4xf32>
    %43 = vector.broadcast %42 : vector<1x4xf32> to vector<256x4xf32>
    %44 = arith.addf %41, %43 : vector<256x4xf32>
    %cst_43 = arith.constant dense<0.000000e+00> : vector<4xf32>
    %45 = vector.multi_reduction <add>, %44, %cst_43 [0] : vector<256x4xf32> to vector<4xf32>
    %46 = vector.shape_cast %45 : vector<4xf32> to vector<1x4xf32>
    %47 = arith.mulf %44, %44 : vector<256x4xf32>
    %cst_44 = arith.constant dense<0.000000e+00> : vector<4xf32>
    %48 = vector.multi_reduction <add>, %47, %cst_44 [0] : vector<256x4xf32> to vector<4xf32>
    %49 = vector.shape_cast %48 : vector<4xf32> to vector<1x4xf32>
    %cst_45 = arith.constant 3.906250e-03 : f32
    %50 = vector.broadcast %cst_45 : f32 to vector<1x4xf32>
    %51 = arith.mulf %46, %50 : vector<1x4xf32>
    %cst_46 = arith.constant 3.906250e-03 : f32
    %52 = vector.broadcast %cst_46 : f32 to vector<1x4xf32>
    %53 = arith.mulf %49, %52 : vector<1x4xf32>
    %54 = arith.mulf %51, %51 : vector<1x4xf32>
    %55 = arith.subf %53, %54 : vector<1x4xf32>
    %cst_47 = arith.constant 0.000000e+00 : f32
    %56 = vector.broadcast %cst_47 : f32 to vector<1x4xf32>
    %57 = arith.maximumf %55, %56 : vector<1x4xf32>
    %58 = vector.broadcast %51 : vector<1x4xf32> to vector<256x4xf32>
    %59 = arith.subf %44, %58 : vector<256x4xf32>
    %cst_48 = arith.constant 9.99999974E-6 : f32
    %60 = vector.broadcast %cst_48 : f32 to vector<1x4xf32>
    %61 = arith.addf %57, %60 : vector<1x4xf32>
    %62 = math.rsqrt %61 : vector<1x4xf32>
    %63 = vector.broadcast %62 : vector<1x4xf32> to vector<256x4xf32>
    %64 = arith.mulf %59, %63 : vector<256x4xf32>
    %cst_49 = arith.constant 0.000000e+00 : f32
    %65 = vector.broadcast %cst_49 : f32 to vector<256x4xf32>
    %66 = arith.maximumf %64, %65 : vector<256x4xf32>
    %67 = vector.shape_cast %66 : vector<256x4xf32> to vector<16x16x4xf32>
    %c1_50 = arith.constant 1 : index
    %c1_51 = arith.constant 1 : index
    %c0_52 = arith.constant 0 : index
    %68 = vector.load %arg7[%c1_50, %c1_51, %c0_52] : memref<18x18x4xf32, #tpu.memory_space<vmem>>, vector<16x16x4xf32>
    tpu.vector_store %arg7[%c1_50, %c1_51, %c0_52], %67 {strides = array<i32>} : memref<18x18x4xf32, #tpu.memory_space<vmem>>, vector<16x16x4xf32>,
    %69 = vector.extract_strided_slice %67 {offsets = [1, 0, 0], sizes = [1, 16, 4], strides = [1, 1, 1]} : vector<16x16x4xf32> to vector<1x16x4xf32>
    %c0_53 = arith.constant 0 : index
    %c1_54 = arith.constant 1 : index
    %c0_55 = arith.constant 0 : index
    %70 = vector.load %arg7[%c0_53, %c1_54, %c0_55] : memref<18x18x4xf32, #tpu.memory_space<vmem>>, vector<1x16x4xf32>
    tpu.vector_store %arg7[%c0_53, %c1_54, %c0_55], %69 {strides = array<i32>} : memref<18x18x4xf32, #tpu.memory_space<vmem>>, vector<1x16x4xf32>,
    %71 = vector.extract_strided_slice %67 {offsets = [14, 0, 0], sizes = [1, 16, 4], strides = [1, 1, 1]} : vector<16x16x4xf32> to vector<1x16x4xf32>
    %c17_56 = arith.constant 17 : index
    %c1_57 = arith.constant 1 : index
    %c0_58 = arith.constant 0 : index
    %72 = vector.load %arg7[%c17_56, %c1_57, %c0_58] : memref<18x18x4xf32, #tpu.memory_space<vmem>>, vector<1x16x4xf32>
    tpu.vector_store %arg7[%c17_56, %c1_57, %c0_58], %71 {strides = array<i32>} : memref<18x18x4xf32, #tpu.memory_space<vmem>>, vector<1x16x4xf32>,
    %c0_59 = arith.constant 0 : index
    %c2_60 = arith.constant 2 : index
    %c0_61 = arith.constant 0 : index
    %73 = vector.load %arg7[%c0_59, %c2_60, %c0_61] : memref<18x18x4xf32, #tpu.memory_space<vmem>>, vector<18x1x4xf32>
    %c0_62 = arith.constant 0 : index
    %c0_63 = arith.constant 0 : index
    %c0_64 = arith.constant 0 : index
    %74 = vector.load %arg7[%c0_62, %c0_63, %c0_64] : memref<18x18x4xf32, #tpu.memory_space<vmem>>, vector<18x1x4xf32>
    tpu.vector_store %arg7[%c0_62, %c0_63, %c0_64], %73 {strides = array<i32>} : memref<18x18x4xf32, #tpu.memory_space<vmem>>, vector<18x1x4xf32>,
    %c0_65 = arith.constant 0 : index
    %c15_66 = arith.constant 15 : index
    %c0_67 = arith.constant 0 : index
    %75 = vector.load %arg7[%c0_65, %c15_66, %c0_67] : memref<18x18x4xf32, #tpu.memory_space<vmem>>, vector<18x1x4xf32>
    %c0_68 = arith.constant 0 : index
    %c17_69 = arith.constant 17 : index
    %c0_70 = arith.constant 0 : index
    %76 = vector.load %arg7[%c0_68, %c17_69, %c0_70] : memref<18x18x4xf32, #tpu.memory_space<vmem>>, vector<18x1x4xf32>
    tpu.vector_store %arg7[%c0_68, %c17_69, %c0_70], %75 {strides = array<i32>} : memref<18x18x4xf32, #tpu.memory_space<vmem>>, vector<18x1x4xf32>,
    %cst_71 = arith.constant 0.000000e+00 : f32
    %77 = vector.broadcast %cst_71 : f32 to vector<256x4xf32>
    %c0_72 = arith.constant 0 : index
    %c0_73 = arith.constant 0 : index
    %c0_74 = arith.constant 0 : index
    %78 = vector.load %arg7[%c0_72, %c0_73, %c0_74] : memref<18x18x4xf32, #tpu.memory_space<vmem>>, vector<16x18x4xf32>
    %79 = vector.extract_strided_slice %78 {offsets = [0, 0, 0], sizes = [16, 16, 4], strides = [1, 1, 1]} : vector<16x18x4xf32> to vector<16x16x4xf32>
    %80 = vector.extract_strided_slice %78 {offsets = [0, 1, 0], sizes = [16, 16, 4], strides = [1, 1, 1]} : vector<16x18x4xf32> to vector<16x16x4xf32>
    %81 = vector.extract_strided_slice %78 {offsets = [0, 2, 0], sizes = [16, 16, 4], strides = [1, 1, 1]} : vector<16x18x4xf32> to vector<16x16x4xf32>
    %82 = tpu.concatenate %79, %80, %81 in 2 : vector<16x16x4xf32>, vector<16x16x4xf32>, vector<16x16x4xf32> -> vector<16x16x12xf32>
    %83 = vector.shape_cast %82 : vector<16x16x12xf32> to vector<256x12xf32>
    %c0_75 = arith.constant 0 : index
    %c0_76 = arith.constant 0 : index
    %c0_77 = arith.constant 0 : index
    %84 = vector.load %arg4[%c0_75, %c0_76, %c0_77] : memref<3x12x4xf32, #tpu.memory_space<vmem>>, vector<1x12x4xf32>
    %85 = vector.shape_cast %84 : vector<1x12x4xf32> to vector<12x4xf32>
    %cst_78 = arith.constant dense<0.000000e+00> : vector<256x4xf32>
    %86 = tpu.matmul %83, %85, %cst_78 {dimension_numbers = #tpu.dot_dimension_numbers<[1], [0], [0], [1], [0, 0, 1, 1], [], []>} : vector<256x12xf32>, vector<12x4xf32>, vector<256x4xf32> -> vector<256x4xf32>
    %87 = arith.addf %77, %86 : vector<256x4xf32>
    %c1_79 = arith.constant 1 : index
    %c0_80 = arith.constant 0 : index
    %c0_81 = arith.constant 0 : index
    %88 = vector.load %arg7[%c1_79, %c0_80, %c0_81] : memref<18x18x4xf32, #tpu.memory_space<vmem>>, vector<16x18x4xf32>
    %89 = vector.extract_strided_slice %88 {offsets = [0, 0, 0], sizes = [16, 16, 4], strides = [1, 1, 1]} : vector<16x18x4xf32> to vector<16x16x4xf32>
    %90 = vector.extract_strided_slice %88 {offsets = [0, 1, 0], sizes = [16, 16, 4], strides = [1, 1, 1]} : vector<16x18x4xf32> to vector<16x16x4xf32>
    %91 = vector.extract_strided_slice %88 {offsets = [0, 2, 0], sizes = [16, 16, 4], strides = [1, 1, 1]} : vector<16x18x4xf32> to vector<16x16x4xf32>
    %92 = tpu.concatenate %89, %90, %91 in 2 : vector<16x16x4xf32>, vector<16x16x4xf32>, vector<16x16x4xf32> -> vector<16x16x12xf32>
    %93 = vector.shape_cast %92 : vector<16x16x12xf32> to vector<256x12xf32>
    %c1_82 = arith.constant 1 : index
    %c0_83 = arith.constant 0 : index
    %c0_84 = arith.constant 0 : index
    %94 = vector.load %arg4[%c1_82, %c0_83, %c0_84] : memref<3x12x4xf32, #tpu.memory_space<vmem>>, vector<1x12x4xf32>
    %95 = vector.shape_cast %94 : vector<1x12x4xf32> to vector<12x4xf32>
    %cst_85 = arith.constant dense<0.000000e+00> : vector<256x4xf32>
    %96 = tpu.matmul %93, %95, %cst_85 {dimension_numbers = #tpu.dot_dimension_numbers<[1], [0], [0], [1], [0, 0, 1, 1], [], []>} : vector<256x12xf32>, vector<12x4xf32>, vector<256x4xf32> -> vector<256x4xf32>
    %97 = arith.addf %87, %96 : vector<256x4xf32>
    %c2_86 = arith.constant 2 : index
    %c0_87 = arith.constant 0 : index
    %c0_88 = arith.constant 0 : index
    %98 = vector.load %arg7[%c2_86, %c0_87, %c0_88] : memref<18x18x4xf32, #tpu.memory_space<vmem>>, vector<16x18x4xf32>
    %99 = vector.extract_strided_slice %98 {offsets = [0, 0, 0], sizes = [16, 16, 4], strides = [1, 1, 1]} : vector<16x18x4xf32> to vector<16x16x4xf32>
    %100 = vector.extract_strided_slice %98 {offsets = [0, 1, 0], sizes = [16, 16, 4], strides = [1, 1, 1]} : vector<16x18x4xf32> to vector<16x16x4xf32>
    %101 = vector.extract_strided_slice %98 {offsets = [0, 2, 0], sizes = [16, 16, 4], strides = [1, 1, 1]} : vector<16x18x4xf32> to vector<16x16x4xf32>
    %102 = tpu.concatenate %99, %100, %101 in 2 : vector<16x16x4xf32>, vector<16x16x4xf32>, vector<16x16x4xf32> -> vector<16x16x12xf32>
    %103 = vector.shape_cast %102 : vector<16x16x12xf32> to vector<256x12xf32>
    %c2_89 = arith.constant 2 : index
    %c0_90 = arith.constant 0 : index
    %c0_91 = arith.constant 0 : index
    %104 = vector.load %arg4[%c2_89, %c0_90, %c0_91] : memref<3x12x4xf32, #tpu.memory_space<vmem>>, vector<1x12x4xf32>
    %105 = vector.shape_cast %104 : vector<1x12x4xf32> to vector<12x4xf32>
    %cst_92 = arith.constant dense<0.000000e+00> : vector<256x4xf32>
    %106 = tpu.matmul %103, %105, %cst_92 {dimension_numbers = #tpu.dot_dimension_numbers<[1], [0], [0], [1], [0, 0, 1, 1], [], []>} : vector<256x12xf32>, vector<12x4xf32>, vector<256x4xf32> -> vector<256x4xf32>
    %107 = arith.addf %97, %106 : vector<256x4xf32>
    %c0_93 = arith.constant 0 : index
    %c0_94 = arith.constant 0 : index
    %108 = vector.load %arg5[%c0_93, %c0_94] : memref<1x4xf32, #tpu.memory_space<vmem>>, vector<1x4xf32>
    %109 = vector.broadcast %108 : vector<1x4xf32> to vector<256x4xf32>
    %110 = arith.addf %107, %109 : vector<256x4xf32>
    %cst_95 = arith.constant dense<0.000000e+00> : vector<4xf32>
    %111 = vector.multi_reduction <add>, %110, %cst_95 [0] : vector<256x4xf32> to vector<4xf32>
    %112 = vector.shape_cast %111 : vector<4xf32> to vector<1x4xf32>
    %113 = arith.mulf %110, %110 : vector<256x4xf32>
    %cst_96 = arith.constant dense<0.000000e+00> : vector<4xf32>
    %114 = vector.multi_reduction <add>, %113, %cst_96 [0] : vector<256x4xf32> to vector<4xf32>
    %115 = vector.shape_cast %114 : vector<4xf32> to vector<1x4xf32>
    %cst_97 = arith.constant 3.906250e-03 : f32
    %116 = vector.broadcast %cst_97 : f32 to vector<1x4xf32>
    %117 = arith.mulf %112, %116 : vector<1x4xf32>
    %cst_98 = arith.constant 3.906250e-03 : f32
    %118 = vector.broadcast %cst_98 : f32 to vector<1x4xf32>
    %119 = arith.mulf %115, %118 : vector<1x4xf32>
    %120 = arith.mulf %117, %117 : vector<1x4xf32>
    %121 = arith.subf %119, %120 : vector<1x4xf32>
    %cst_99 = arith.constant 0.000000e+00 : f32
    %122 = vector.broadcast %cst_99 : f32 to vector<1x4xf32>
    %123 = arith.maximumf %121, %122 : vector<1x4xf32>
    %124 = vector.broadcast %117 : vector<1x4xf32> to vector<256x4xf32>
    %125 = arith.subf %110, %124 : vector<256x4xf32>
    %cst_100 = arith.constant 9.99999974E-6 : f32
    %126 = vector.broadcast %cst_100 : f32 to vector<1x4xf32>
    %127 = arith.addf %123, %126 : vector<1x4xf32>
    %128 = math.rsqrt %127 : vector<1x4xf32>
    %129 = vector.broadcast %128 : vector<1x4xf32> to vector<256x4xf32>
    %130 = arith.mulf %125, %129 : vector<256x4xf32>
    %131 = vector.shape_cast %130 : vector<256x4xf32> to vector<16x16x4xf32>
    %132 = arith.addf %1, %131 : vector<16x16x4xf32>
    %c0_101 = arith.constant 0 : index
    %c0_102 = arith.constant 0 : index
    %c0_103 = arith.constant 0 : index
    %c0_104 = arith.constant 0 : index
    %133 = vector.load %arg6[%c0_101, %c0_102, %c0_103, %c0_104] : memref<1x16x16x4xf32, #tpu.memory_space<vmem>>, vector<1x16x16x4xf32>
    %134 = vector.shape_cast %133 : vector<1x16x16x4xf32> to vector<16x16x4xf32>
    %135 = vector.shape_cast %132 : vector<16x16x4xf32> to vector<1x16x16x4xf32>
    tpu.vector_store %arg6[%c0_101, %c0_102, %c0_103, %c0_104], %135 {strides = array<i32>} : memref<1x16x16x4xf32, #tpu.memory_space<vmem>>, vector<1x16x16x4xf32>,
    return
  }
  func.func @transform_0(%arg0: i32) -> (i32, i32, i32, i32) {
    %c0_i32 = arith.constant 0 : i32
    %c0_i32_0 = arith.constant 0 : i32
    %c0_i32_1 = arith.constant 0 : i32
    %c0_i32_2 = arith.constant 0 : i32
    return %arg0, %c0_i32, %c0_i32_0, %c0_i32_1 : i32, i32, i32, i32
  }
  func.func @transform_1(%arg0: i32) -> (i32, i32, i32) {
    %c0_i32 = arith.constant 0 : i32
    %c0_i32_0 = arith.constant 0 : i32
    %c0_i32_1 = arith.constant 0 : i32
    %c0_i32_2 = arith.constant 0 : i32
    return %c0_i32, %c0_i32_0, %c0_i32_1 : i32, i32, i32
  }
  func.func @transform_2(%arg0: i32) -> (i32, i32) {
    %c0_i32 = arith.constant 0 : i32
    %c0_i32_0 = arith.constant 0 : i32
    %c0_i32_1 = arith.constant 0 : i32
    return %c0_i32, %c0_i32_0 : i32, i32
  }
  func.func @transform_3(%arg0: i32) -> (i32, i32, i32) {
    %c0_i32 = arith.constant 0 : i32
    %c0_i32_0 = arith.constant 0 : i32
    %c0_i32_1 = arith.constant 0 : i32
    %c0_i32_2 = arith.constant 0 : i32
    return %c0_i32, %c0_i32_0, %c0_i32_1 : i32, i32, i32
  }
  func.func @transform_4(%arg0: i32) -> (i32, i32) {
    %c0_i32 = arith.constant 0 : i32
    %c0_i32_0 = arith.constant 0 : i32
    %c0_i32_1 = arith.constant 0 : i32
    return %c0_i32, %c0_i32_0 : i32, i32
  }
  func.func @transform_5(%arg0: i32) -> (i32, i32, i32, i32) {
    %c0_i32 = arith.constant 0 : i32
    %c0_i32_0 = arith.constant 0 : i32
    %c0_i32_1 = arith.constant 0 : i32
    %c0_i32_2 = arith.constant 0 : i32
    return %arg0, %c0_i32, %c0_i32_0, %c0_i32_1 : i32, i32, i32, i32
  }
}

</mosaic_0001>

<bundles_post_ra>
// kernel: tpu_custom_call.1
= control target key start
LH: loop header
LB: loop body
LE: loop exit
PB: predicated region body
PF: predicated region fallthrough
CT: control target
= control target key end

     0   :  { %s7307_s18 = smov 0   ;;  %s10962_s0 = inlined_call_operand.vmem [shape: f32[2,16,16,4], index: 0, kind: input, shape index: {}]   ;;  %s10963_s1 = inlined_call_operand.vmem [shape: f32[3,12,4], index: 1, kind: input, shape index: {}]   ;;  %s10964_s2 = inlined_call_operand.vmem [shape: f32[1,4], index: 2, kind: input, shape index: {}]   ;;  %s10965_s3 = inlined_call_operand.vmem [shape: f32[3,12,4], index: 3, kind: input, shape index: {}]   ;;  %s10966_s4 = inlined_call_operand.vmem [shape: f32[1,4], index: 4, kind: input, shape index: {}]   ;;  %s10967_s5 = inlined_call_operand.vmem [shape: f32[2,16,16,4], index: 5, kind: output, shape index: {}]  }
   0x1 LB: > { %s6290_s19 = sadd.s32 4294967295, %s7272_s18   ;;  %p6294_p0 = scmp.ge.s32.totalorder %s7272_s18, 1  ;;  %s7272_s18 = sphi %s7307_s18, %s15_s18  }
   0x2   : > { %p187_p1 = scmp.lt.s32.totalorder %s7272_s18, 3 }
   0x4   : > { %p188_p2 = pnand %p6294_p0, %p187_p1 }
   0x6   : > { %191 = sbr.rel (%p188_p2) target bundleno = 1614 (0x64e), region = 40 }
   0xd   : > { %p215_p3 = scmp.lt.s32.totalorder %s6290_s19, 1  ;;  %vm258_vm0 = vcmask 31744   ;;  %vm314_vm1 = vcmask 24576   ;;  %vm642_vm2 = vcmask 1045504   ;;  %vm465_vm3 = vcmask 1046528   ;;  %s7274_s24 = smov 8  }
   0xe   : > { %s7275_s25 = smov 4   ;;  %vm1498_vm4 = vcmask 1043456   ;;  %vm7276_vm5 = vmmov 1   ;;  %vm851_vm7 = vcmask 64512   ;;  %vm1401_vm8 = vcmask 97280  }
   0xf   : > { %s11352_s19 = smov (!%p215_p3, %s6290_s19), 1  ;;  %vm7649_vm6 = vmpackc.low %vm1498_vm4, %vm7276_vm5 }
  0x10   : > { %s6509_s20 = sshll.u32 %s11352_s19, 8 }
  0x11   : > { %s7323_s23 = scalar_lea.vmem %s10962_s0, %s6509_s20  ;;  %s10861_s9 = scalar_lea.vmem %s10967_s5, %s6509_s20 }
  0x12   : > { %v7326_v0 = vld [vmem:[%s7323_s23] sm:$0xff]  ;;  %v7329_v1 = vld [vmem:[%s7323_s23 + $0x8] sm:$0xff]  ;;  %v7332_v2 = vld [vmem:[%s7323_s23 + $0x10] sm:$0xff] }
  0x13   : > { %11095 = vst [vmem:[#allocation3_spill] sm:$0xff] %v7326_v0  ;;  %11096 = vst [vmem:[#allocation4_spill] sm:$0xff] %v7329_v1  ;;  %v7339_v3 = vld [vmem:[%s7323_s23 + $0x18] sm:$0xff]  ;;  %v7346_v4 = vld [vmem:[%s7323_s23 + $0x20] sm:$0xff] }
  0x14   : > { %11097 = vst [vmem:[#allocation5_spill] sm:$0xff] %v7332_v2  ;;  %259 = vst.msk [vmem:[#allocation2 + $0x19] sm:$0xff] %vm258_vm0, %v7326_v0  ;;  %v7349_v5 = vld [vmem:[%s7323_s23 + $0x28] sm:$0xff]  ;;  %v7360_v6 = vld [vmem:[%s7323_s23 + $0x30] sm:$0xff] }
  0x15   : > { %260 = vst.msk [vmem:[#allocation2 + $0x21] sm:$0xff] %vm258_vm0, %v7329_v1  ;;  %11098 = vst [vmem:[#allocation6_spill] sm:$0xff] %v7339_v3  ;;  %v7363_v7 = vld [vmem:[%s7323_s23 + $0x38] sm:$0xff]  ;;  %v7366_v8 = vld [vmem:[%s7323_s23 + $0x40] sm:$0xff] }
  0x16   : > { %261 = vst.msk [vmem:[#allocation2 + $0x31] sm:$0xff] %vm258_vm0, %v7332_v2  ;;  %291 = vst.msk [vmem:[#allocation2 + $0x1] sm:$0xff] %vm258_vm0, %v7332_v2  ;;  %v7373_v9 = vld [vmem:[%s7323_s23 + $0x48] sm:$0xff]  ;;  %v7378_v10 = vld [vmem:[%s7323_s23 + $0x50] sm:$0xff] }
  0x17   : > { %11099 = vst [vmem:[#allocation7_spill] sm:$0xff] %v7346_v4  ;;  %11100 = vst [vmem:[#allocation8_spill] sm:$0xff] %v7349_v5  ;;  %v7381_v11 = vld [vmem:[%s7323_s23 + $0x58] sm:$0xff]  ;;  %v7390_v12 = vld [vmem:[%s7323_s23 + $0x60] sm:$0xff] }
  0x18   : > { %262 = vst.msk [vmem:[#allocation2 + $0x39] sm:$0xff] %vm258_vm0, %v7339_v3  ;;  %292 = vst.msk [vmem:[#allocation2 + $0x9] sm:$0xff] %vm258_vm0, %v7339_v3  ;;  %v7393_v13 = vld [vmem:[%s7323_s23 + $0x68] sm:$0xff]  ;;  %v7396_v14 = vld [vmem:[%s7323_s23 + $0x70] sm:$0xff] }
  0x19   : > { %263 = vst.msk [vmem:[#allocation2 + $0x49] sm:$0xff] %vm258_vm0, %v7346_v4  ;;  %264 = vst.msk [vmem:[#allocation2 + $0x51] sm:$0xff] %vm258_vm0, %v7349_v5  ;;  %v7403_v15 = vld [vmem:[%s7323_s23 + $0x78] sm:$0xff]  ;;  %v7408_v16 = vld [vmem:[%s7323_s23 + $0x80] sm:$0xff] }
  0x1a   : > { %11101 = vst [vmem:[#allocation9_spill] sm:$0xff] %v7360_v6  ;;  %11102 = vst [vmem:[#allocation10_spill] sm:$0xff] %v7363_v7  ;;  %v7411_v17 = vld [vmem:[%s7323_s23 + $0x88] sm:$0xff]  ;;  %v7420_v18 = vld [vmem:[%s7323_s23 + $0x90] sm:$0xff] }
  0x1b   : > { %11103 = vst [vmem:[#allocation11_spill] sm:$0xff] %v7366_v8  ;;  %265 = vst.msk [vmem:[#allocation2 + $0x61] sm:$0xff] %vm258_vm0, %v7360_v6  ;;  %v7423_v19 = vld [vmem:[%s7323_s23 + $0x98] sm:$0xff]  ;;  %v7426_v20 = vld [vmem:[%s7323_s23 + $0xa0] sm:$0xff] }
  0x1c   : > { %266 = vst.msk [vmem:[#allocation2 + $0x69] sm:$0xff] %vm258_vm0, %v7363_v7  ;;  %11104 = vst [vmem:[#allocation12_spill] sm:$0xff] %v7373_v9  ;;  %v7433_v21 = vld [vmem:[%s7323_s23 + $0xa8] sm:$0xff]  ;;  %v7438_v22 = vld [vmem:[%s7323_s23 + $0xb0] sm:$0xff] }
  0x1d   : > { %267 = vst.msk [vmem:[#allocation2 + $0x79] sm:$0xff] %vm258_vm0, %v7366_v8  ;;  %11105 = vst [vmem:[#allocation13_spill] sm:$0xff] %v7378_v10  ;;  %v7441_v23 = vld [vmem:[%s7323_s23 + $0xb8] sm:$0xff]  ;;  %v334_v25 = vld [vmem:[#allocation2 + $0x27] sm:$0x1] }
  0x1e   : > { %11106 = vst [vmem:[#allocation14_spill] sm:$0xff] %v7381_v11  ;;  %268 = vst.msk [vmem:[#allocation2 + $0x81] sm:$0xff] %vm258_vm0, %v7373_v9  ;;  %v297_v24 = vld [vmem:[#allocation2 + $0x1a] sm:$0x1]  ;;  %v298_v27 = vld [vmem:[#allocation2 + $0x32] sm:$0x1] }
  0x1f   : > { %269 = vst.msk [vmem:[#allocation2 + $0x91] sm:$0xff] %vm258_vm0, %v7378_v10  ;;  %270 = vst.msk [vmem:[#allocation2 + $0x99] sm:$0xff] %vm258_vm0, %v7381_v11  ;;  %v335_v26 = vld [vmem:[#allocation2 + $0x3f] sm:$0x1]  ;;  %v7454_v31 = vld [vmem:[#allocation2 + $0x20] sm:$0xff] }
  0x20   : > { %11107 = vst [vmem:[#allocation15_spill] sm:$0xff] %v7390_v12  ;;  %11108 = vst [vmem:[#allocation16_spill] sm:$0xff] %v7393_v13  ;;  %v336_v28 = vld [vmem:[#allocation2 + $0x57] sm:$0x1]  ;;  %v299_v29 = vld [vmem:[#allocation2 + $0x4a] sm:$0x1] }
  0x21   : > { %11109 = vst [vmem:[#allocation17_spill] sm:$0xff] %v7396_v14  ;;  %271 = vst.msk [vmem:[#allocation2 + $0xa9] sm:$0xff] %vm258_vm0, %v7390_v12  ;;  %v7462_v36 = vrot.slane %v7454_v31, 2  ;;  %v7465_v37 = vrot.slane %v7454_v31, 1  ;;  %v7474_v47 = vld [vmem:[#allocation2 + $0x38] sm:$0xff]  ;;  %v7506_v61 = vld [vmem:[#allocation2 + $0x50] sm:$0xff] }
  0x22   : > { %272 = vst.msk [vmem:[#allocation2 + $0xb1] sm:$0xff] %vm258_vm0, %v7393_v13  ;;  %11110 = vst [vmem:[#allocation18_spill] sm:$0xff] %v7403_v15  ;;  %v300_v32 = vld [vmem:[#allocation2 + $0x62] sm:$0x1]  ;;  %v7492_v53 = vrot.slane %v7474_v47, 1  ;;  %v7504_v60 = vrot.slane %v7474_v47, 2 }
  0x23   : > { %273 = vst.msk [vmem:[#allocation2 + $0xc1] sm:$0xff] %vm258_vm0, %v7396_v14  ;;  %11111 = vst [vmem:[#allocation19_spill] sm:$0xff] %v7408_v16  ;;  %v337_v30 = vld [vmem:[#allocation2 + $0x6f] sm:$0x1] }
  0x24   : > { %11112 = vst [vmem:[#allocation20_spill] sm:$0xff] %v7411_v17  ;;  %274 = vst.msk [vmem:[#allocation2 + $0xc9] sm:$0xff] %vm258_vm0, %v7403_v15  ;;  %v301_v34 = vld [vmem:[#allocation2 + $0x7a] sm:$0x1] }
  0x25   : > { %275 = vst.msk [vmem:[#allocation2 + $0xd9] sm:$0xff] %vm258_vm0, %v7408_v16  ;;  %276 = vst.msk [vmem:[#allocation2 + $0xe1] sm:$0xff] %vm258_vm0, %v7411_v17  ;;  %v338_v33 = vld [vmem:[#allocation2 + $0x87] sm:$0x1] }
  0x26   : > { %11113 = vst [vmem:[#allocation21_spill] sm:$0xff] %v7420_v18  ;;  %11114 = vst [vmem:[#allocation22_spill] sm:$0xff] %v7423_v19  ;;  %v339_v35 = vld [vmem:[#allocation2 + $0x9f] sm:$0x1]  ;;  %v302_v38 = vld [vmem:[#allocation2 + $0x92] sm:$0x1] }
  0x27   : > { %11115 = vst [vmem:[#allocation23_spill] sm:$0xff] %v7426_v20  ;;  %277 = vst.msk [vmem:[#allocation2 + $0xf1] sm:$0xff] %vm258_vm0, %v7420_v18 }
  0x28   : > { %278 = vst.msk [vmem:[#allocation2 + $0xf9] sm:$0xff] %vm258_vm0, %v7423_v19  ;;  %11116 = vst [vmem:[#allocation24_spill] sm:$0xff] %v7433_v21  ;;  %v303_v42 = vld [vmem:[#allocation2 + $0xaa] sm:$0x1] }
  0x29   : > { %279 = vst.msk [vmem:[#allocation2 + $0x109] sm:$0xff] %vm258_vm0, %v7426_v20  ;;  %11117 = vst [vmem:[#allocation25_spill] sm:$0xff] %v7438_v22  ;;  %v340_v39 = vld [vmem:[#allocation2 + $0xb7] sm:$0x1] }
  0x2a   : > { %11118 = vst [vmem:[#allocation26_spill] sm:$0xff] %v7441_v23  ;;  %280 = vst.msk [vmem:[#allocation2 + $0x111] sm:$0xff] %vm258_vm0, %v7433_v21  ;;  %v304_v58 = vld [vmem:[#allocation2 + $0xc2] sm:$0x1]  ;;  %v7710_v20 = vld [vmem:[#allocation2 + $0xb0] sm:$0xff] }
  0x2b   : > { %281 = vst.msk [vmem:[#allocation2 + $0x121] sm:$0xff] %vm258_vm0, %v7438_v22  ;;  %282 = vst.msk [vmem:[#allocation2 + $0x129] sm:$0xff] %vm258_vm0, %v7441_v23  ;;  %v341_v52 = vld [vmem:[#allocation2 + $0xcf] sm:$0x1]  ;;  %v7718_v18 = vrot.slane %v7710_v20, 1 }
  0x2c   : > { %316 = vst.msk [vmem:[#allocation2 + $0x18] sm:$0x1] %vm314_vm1, %v297_v24  ;;  %352 = vst.msk [vmem:[#allocation2 + $0x29] sm:$0x1] %vm314_vm1, %v334_v25  ;;  %v342_v59 = vld [vmem:[#allocation2 + $0xe7] sm:$0x1] }
  0x2d   : > { %353 = vst.msk [vmem:[#allocation2 + $0x41] sm:$0x1] %vm314_vm1, %v335_v26  ;;  %317 = vst.msk [vmem:[#allocation2 + $0x30] sm:$0x1] %vm314_vm1, %v298_v27  ;;  %v305_v62 = vld [vmem:[#allocation2 + $0xda] sm:$0x1] }
  0x2e   : > { %354 = vst.msk [vmem:[#allocation2 + $0x59] sm:$0x1] %vm314_vm1, %v336_v28  ;;  %318 = vst.msk [vmem:[#allocation2 + $0x48] sm:$0x1] %vm314_vm1, %v299_v29  ;;  %v7740_v14 = vld [vmem:[#allocation2 + $0xc8] sm:$0xff]  ;;  %v7770_v8 = vld [vmem:[#allocation2 + $0xe0] sm:$0xff] }
  0x2f   : > { %355 = vst.msk [vmem:[#allocation2 + $0x71] sm:$0x1] %vm314_vm1, %v337_v30  ;;  %319 = vst.msk [vmem:[#allocation2 + $0x60] sm:$0x1] %vm314_vm1, %v300_v32  ;;  %v343_v28 = vld [vmem:[#allocation2 + $0xff] sm:$0x1] }
  0x30   : > { %356 = vst.msk [vmem:[#allocation2 + $0x89] sm:$0x1] %vm314_vm1, %v338_v33  ;;  %320 = vst.msk [vmem:[#allocation2 + $0x78] sm:$0x1] %vm314_vm1, %v301_v34  ;;  %v306_v30 = vld [vmem:[#allocation2 + $0xf2] sm:$0x1] }
  0x31   : > { %357 = vst.msk [vmem:[#allocation2 + $0xa1] sm:$0x1] %vm314_vm1, %v339_v35  ;;  %321 = vst.msk [vmem:[#allocation2 + $0x90] sm:$0x1] %vm314_vm1, %v302_v38  ;;  %v344_v32 = vld [vmem:[#allocation2 + $0x117] sm:$0x1] }
  0x32   : > { %358 = vst.msk [vmem:[#allocation2 + $0xb9] sm:$0x1] %vm314_vm1, %v340_v39  ;;  %322 = vst.msk [vmem:[#allocation2 + $0xa8] sm:$0x1] %vm314_vm1, %v303_v42  ;;  %v307_v33 = vld [vmem:[#allocation2 + $0x10a] sm:$0x1] }
  0x33   : > { %v7468_v40 = vld [vmem:[#allocation2 + $0x18] sm:$0xff]  ;;  %v888_v41 = vld [vmem:[#allocation2 + $0x28] sm:$0x3]  ;;  %359 = vst.msk [vmem:[#allocation2 + $0xd1] sm:$0x1] %vm314_vm1, %v341_v52  ;;  %v7526_v34 = vrot.slane %v7506_v61, 1 }
  0x34   : > { %v1158_v43 = vrot.slane %v7468_v40, 2  ;;  %v982_v44 = vrot.slane %v7468_v40, 1  ;;  %v1161_v45 = vrot.slane %v888_v41, 2  ;;  %v985_v46 = vrot.slane %v888_v41, 1  ;;  %v891_v48 = vld [vmem:[#allocation2 + $0x40] sm:$0x3] }
  0x35   : > { %v7477_v49 = vld [vmem:[#allocation2 + $0x30] sm:$0xff]  ;;  %v990_v56 = vrot.slane %v891_v48, 1  ;;  %323 = vst.msk [vmem:[#allocation2 + $0xc0] sm:$0x1] %vm314_vm1, %v304_v58  ;;  %360 = vst.msk [vmem:[#allocation2 + $0xe9] sm:$0x1] %vm314_vm1, %v342_v59 }
  0x36   : > { %v7481_v50 = vsel %vm642_vm2, %v1158_v43, %v7462_v36  ;;  %v7485_v51 = vsel %vm465_vm3, %v982_v44, %v7465_v37  ;;  %v1162_v54 = vsel %vm642_vm2, %v7462_v36, %v1161_v45  ;;  %v986_v55 = vsel %vm465_vm3, %v7465_v37, %v985_v46  ;;  %v894_v27 = vld [vmem:[#allocation2 + $0x58] sm:$0x3]  ;;  %324 = vst.msk [vmem:[#allocation2 + $0xd8] sm:$0x1] %vm314_vm1, %v305_v62  ;;  %v7517_v29 = vld [vmem:[#allocation2 + $0x48] sm:$0xff]  ;;  %v7530_v38 = vld [vmem:[%s7323_s23 + $0xc0] sm:$0xff] }
  0x37   : > { %1238 = vrot.lane.b32.xlu1 %v7481_v50, %s7274_s24  ;;  %1062 = vrot.lane.b32.xlu0 %v7485_v51, %s7275_s25  ;;  %v987_v57 = vrot.slane %v7477_v49, 1  ;;  %v991_v63 = vsel %vm465_vm3, %v7492_v53, %v990_v56  ;;  %v1166_v25 = vrot.slane %v891_v48, 2  ;;  %v1163_v26 = vrot.slane %v7477_v49, 2  ;;  %361 = vst.msk [vmem:[#allocation2 + $0x101] sm:$0x1] %vm314_vm1, %v343_v28  ;;  %11119 = vst [vmem:[#allocation27_spill] sm:$0xff] %v7530_v38 }
  0x38   : > { %325 = vst.msk [vmem:[#allocation2 + $0xf0] sm:$0x1] %vm314_vm1, %v306_v30  ;;  %362 = vst.msk [vmem:[#allocation2 + $0x119] sm:$0x1] %vm314_vm1, %v344_v32  ;;  %v345_v35 = vld [vmem:[#allocation2 + $0x12f] sm:$0x1] }
  0x39   : > { %v7513_v24 = vsel %vm465_vm3, %v987_v57, %v7492_v53  ;;  %326 = vst.msk [vmem:[#allocation2 + $0x108] sm:$0x1] %vm314_vm1, %v307_v33  ;;  %v1167_v39 = vsel %vm642_vm2, %v7504_v60, %v1166_v25  ;;  %v7536_v41 = vsel %vm642_vm2, %v1163_v26, %v7504_v60  ;;  %v995_v42 = vrot.slane %v894_v27, 1  ;;  %363 = vst.msk [vmem:[#allocation2 + $0x131] sm:$0x1] %vm314_vm1, %v345_v35  ;;  %v7544_v45 = vld [vmem:[%s7323_s23 + $0xc8] sm:$0xff] }
  0x3a   : > { %v992_v43 = vrot.slane %v7517_v29, 1  ;;  %v308_v44 = vld [vmem:[#allocation2 + $0x122] sm:$0x1]  ;;  %283 = vst.msk [vmem:[#allocation2 + $0x139] sm:$0xff] %vm258_vm0, %v7530_v38  ;;  %11120 = vst [vmem:[#allocation28_spill] sm:$0xff] %v7544_v45  ;;  %v7547_v46 = vld [vmem:[%s7323_s23 + $0xd0] sm:$0xff] }
  0x3b   : > { %1240 = vrot.lane.b32.xlu1 %v1162_v54, %s7274_s24  ;;  %1064 = vrot.lane.b32.xlu0 %v986_v55, %s7275_s25  ;;  %327 = vst.msk [vmem:[#allocation2 + $0x120] sm:$0x1] %vm314_vm1, %v308_v44  ;;  %11121 = vst [vmem:[#allocation29_spill] sm:$0xff] %v7547_v46  ;;  %v7552_v48 = vld [vmem:[%s7323_s23 + $0xd8] sm:$0xff]  ;;  %v7557_v52 = vld [vmem:[%s7323_s23 + $0xe0] sm:$0xff]  ;;  %v7563_v54 = vrot.slane %v7506_v61, 2  ;;  %v996_v56 = vsel %vm465_vm3, %v7526_v34, %v995_v42 }
  0x3c   : > { %284 = vst.msk [vmem:[#allocation2 + $0x141] sm:$0xff] %vm258_vm0, %v7544_v45  ;;  %11122 = vst [vmem:[#allocation30_spill] sm:$0xff] %v7552_v48  ;;  %v7568_v55 = vld [vmem:[%s7323_s23 + $0xe8] sm:$0xff]  ;;  %v7578_v57 = vsel %vm465_vm3, %v992_v43, %v7526_v34  ;;  %v1171_v58 = vrot.slane %v894_v27, 2  ;;  %v1168_v59 = vrot.slane %v7517_v29, 2  ;;  %v7587_v25 = vld [vmem:[#allocation2 + $0x60] sm:$0xff] }
  0x3d   : > { %285 = vst.msk [vmem:[#allocation2 + $0x151] sm:$0xff] %vm258_vm0, %v7547_v46  ;;  %11123 = vst [vmem:[#allocation31_spill] sm:$0xff] %v7557_v52  ;;  %v7581_v62 = vld [vmem:[#allocation2 + $0x68] sm:$0xff]  ;;  %v7590_v26 = vld [vmem:[%s7323_s23 + $0xf0] sm:$0xff]  ;;  %v997_v35 = vrot.slane %v7587_v25, 1  ;;  %v7748_v12 = vrot.slane %v7740_v14, 1 }
  0x3e   : > { %286 = vst.msk [vmem:[#allocation2 + $0x159] sm:$0xff] %vm258_vm0, %v7552_v48  ;;  %11124 = vst [vmem:[#allocation32_spill] sm:$0xff] %v7568_v55  ;;  %v7593_v28 = vld [vmem:[%s7323_s23 + $0xf8] sm:$0xff]  ;;  %v7601_v27 = vrot.slane %v7581_v62, 1  ;;  %v1172_v30 = vsel %vm642_vm2, %v7563_v54, %v1171_v58  ;;  %v7609_v32 = vsel %vm642_vm2, %v1168_v59, %v7563_v54  ;;  %v7618_v44 = vrot.slane %v7581_v62, 2 }
  0x3f   : > { %1068 = vrot.lane.b32.xlu1 %v991_v63, %s7275_s25  ;;  %1066 = vrot.lane.b32.xlu0 %v7513_v24, %s7275_s25  ;;  %287 = vst.msk [vmem:[#allocation2 + $0x169] sm:$0xff] %vm258_vm0, %v7557_v52  ;;  %294 = vst.msk [vmem:[#allocation2 + $0x199] sm:$0xff] %vm258_vm0, %v7557_v52  ;;  %v897_v63 = vld [vmem:[#allocation2 + $0x70] sm:$0x3]  ;;  %v900_v58 = vld [vmem:[#allocation2 + $0x88] sm:$0x3] }
  0x40   : > { %288 = vst.msk [vmem:[#allocation2 + $0x171] sm:$0xff] %vm258_vm0, %v7568_v55  ;;  %295 = vst.msk [vmem:[#allocation2 + $0x1a1] sm:$0xff] %vm258_vm0, %v7568_v55  ;;  %v1000_v33 = vrot.slane %v897_v63, 1  ;;  %v296_v46 = vld [vmem:[#allocation2 + $0x2] sm:$0x1]  ;;  %v7800_v2 = vld [vmem:[#allocation2 + $0xf8] sm:$0xff] }
  0x41   : > { %11125 = vst [vmem:[#allocation33_spill] sm:$0xff] %v7590_v26  ;;  %11126 = vst [vmem:[#allocation34_spill] sm:$0xff] %v7593_v28  ;;  %v906_v19 = vld [vmem:[#allocation2 + $0xb8] sm:$0x3]  ;;  %v909_v13 = vld [vmem:[#allocation2 + $0xd0] sm:$0x3] }
  0x42   : > { %289 = vst.msk [vmem:[#allocation2 + $0x181] sm:$0xff] %vm258_vm0, %v7590_v26  ;;  %290 = vst.msk [vmem:[#allocation2 + $0x189] sm:$0xff] %vm258_vm0, %v7593_v28  ;;  %v1173_v28 = vrot.slane %v7587_v25, 2  ;;  %v7630_v26 = vld [vmem:[#allocation2 + $0x78] sm:$0xff]  ;;  %v1196_v9 = vrot.slane %v909_v13, 2 }
  0x43   : > { %1244 = vrot.lane.b32.xlu1 %v1167_v39, %s7274_s24  ;;  %1242 = vrot.lane.b32.xlu0 %v7536_v41, %s7274_s24  ;;  %v309_v39 = vld [vmem:[#allocation2 + $0x13a] sm:$0x1]  ;;  %v346_v42 = vld [vmem:[#allocation2 + $0x147] sm:$0x1]  ;;  %v1002_v45 = vrot.slane %v7630_v26, 1  ;;  %11131 = vst [vmem:[#allocation37_spill] sm:$0xff] %v7748_v12 }
  0x44   : > { %328 = vst.msk [vmem:[#allocation2 + $0x138] sm:$0x1] %vm314_vm1, %v309_v39  ;;  %364 = vst.msk [vmem:[#allocation2 + $0x149] sm:$0x1] %vm314_vm1, %v346_v42  ;;  %v310_v59 = vld [vmem:[#allocation2 + $0x152] sm:$0x1]  ;;  %v1001_v39 = vsel %vm465_vm3, %v7601_v27, %v1000_v33  ;;  %v7627_v42 = vsel %vm465_vm3, %v997_v35, %v7601_v27 }
  0x45   : > { %v347_v43 = vld [vmem:[#allocation2 + $0x15f] sm:$0x1]  ;;  %329 = vst.msk [vmem:[#allocation2 + $0x150] sm:$0x1] %vm314_vm1, %v310_v59  ;;  %v6300_v33 = vld [vmem:[%s10963_s1 + $0x18] sm:$0xf] }
  0x46   : > { %365 = vst.msk [vmem:[#allocation2 + $0x161] sm:$0x1] %vm314_vm1, %v347_v43  ;;  %v6299_v43 = vld [vmem:[%s10963_s1 + $0x10] sm:$0xff]  ;;  %v311_v52 = vld [vmem:[#allocation2 + $0x16a] sm:$0x1]  ;;  %11140 = vst [vmem:[#allocation46_spill] sm:$0xff] %v7800_v2 }
  0x47   : > { %1072 = vrot.lane.b32.xlu1 %v996_v56, %s7275_s25  ;;  %1070 = vrot.lane.b32.xlu0 %v7578_v57, %s7275_s25  ;;  %v7620_v56 = vld [vmem:[#allocation2 + $0x80] sm:$0xff]  ;;  %v348_v55 = vld [vmem:[#allocation2 + $0x177] sm:$0x1]  ;;  %330 = vst.msk [vmem:[#allocation2 + $0x168] sm:$0x1] %vm314_vm1, %v311_v52  ;;  %v7027_v38 = vpack.c.bf16 %v6300_v33, %v6299_v43  ;;  %v1181_v33 = vrot.slane %v900_v58, 2 }
  0x48   : > { %366 = vst.msk [vmem:[#allocation2 + $0x179] sm:$0x1] %vm314_vm1, %v348_v55  ;;  %v7646_v59 = vrot.slane %v7620_v56, 1  ;;  %v1005_v55 = vrot.slane %v900_v58, 1  ;;  %v333_v52 = vld [vmem:[#allocation2 + $0xf] sm:$0x1] }
  0x49   : > { %v312_v35 = vld [vmem:[#allocation2 + $0x182] sm:$0x1]  ;;  %351 = vst.msk [vmem:[#allocation2 + $0x11] sm:$0x1] %vm314_vm1, %v333_v52  ;;  %315 = vst.msk [vmem:[#allocation2] sm:$0x1] %vm314_vm1, %v296_v46  ;;  %7029 = vmatprep.subr.msk.bf16.mxu0 %vm7649_vm6, %v7027_v38 }
  0x4a   : > { %331 = vst.msk [vmem:[#allocation2 + $0x180] sm:$0x1] %vm314_vm1, %v312_v35  ;;  %v7658_v35 = vsel %vm642_vm2, %v1173_v28, %v7618_v44  ;;  %v1006_v28 = vsel %vm465_vm3, %v7646_v59, %v1005_v55  ;;  %v7675_v43 = vsel %vm465_vm3, %v1002_v45, %v7646_v59  ;;  %v1178_v46 = vrot.slane %v7630_v26, 2  ;;  %7032 = vmatpush3.bf16.msk.msra.mxu0 %vm7649_vm6, %v7027_v38  ;;  %v903_v52 = vld [vmem:[#allocation2 + $0xa0] sm:$0x3] }
  0x4b   : > { %1248 = vrot.lane.b32.xlu1 %v1172_v30, %s7274_s24  ;;  %1246 = vrot.lane.b32.xlu0 %v7609_v32, %s7274_s24  ;;  %v1176_v30 = vrot.slane %v897_v63, 2  ;;  %v349_v63 = vld [vmem:[#allocation2 + $0x18f] sm:$0x1]  ;;  %v1010_v23 = vrot.slane %v903_v52, 1  ;;  %v912_v7 = vld [vmem:[#allocation2 + $0xe8] sm:$0x3] }
  0x4c   : > { %367 = vst.msk [vmem:[#allocation2 + $0x191] sm:$0x1] %vm314_vm1, %v349_v63  ;;  %v7678_v63 = vld [vmem:[#allocation2 + $0x98] sm:$0xff]  ;;  %v1025_v6 = vrot.slane %v912_v7, 1  ;;  %v1201_v4 = vrot.slane %v912_v7, 2 }
  0x4d   : > { %v7688_v55 = vrot.slane %v7678_v63, 1  ;;  %v915_v1 = vld [vmem:[#allocation2 + $0x100] sm:$0x3] }
  0x4e   : > { %v1030_v0 = vrot.slane %v915_v1, 1 }
  0x4f   : > { %1076 = vrot.lane.b32.xlu1 %v1001_v39, %s7275_s25  ;;  %1074 = vrot.lane.b32.xlu0 %v7627_v42, %s7275_s25  ;;  %v1177_v39 = vsel %vm642_vm2, %v7618_v44, %v1176_v30  ;;  %v7669_v30 = vrot.slane %v7620_v56, 2  ;;  %v1011_v22 = vsel %vm465_vm3, %v7688_v55, %v1010_v23 }
  0x51   : > { %v1182_v45 = vsel %vm642_vm2, %v7669_v30, %v1181_v33  ;;  %v7694_v58 = vsel %vm642_vm2, %v1178_v46, %v7669_v30  ;;  %v1186_v46 = vrot.slane %v903_v52, 2 }
  0x53   : > { %1252 = vrot.lane.b32.xlu1 %v1177_v39, %s7274_s24  ;;  %1250 = vrot.lane.b32.xlu0 %v7658_v35, %s7274_s24  ;;  %v7682_v39 = vld [vmem:[#allocation2 + $0x90] sm:$0xff] }
  0x54   : > { %v1007_v38 = vrot.slane %v7682_v39, 1  ;;  %v1183_v21 = vrot.slane %v7682_v39, 2 }
  0x56   : > { %v7707_v33 = vsel %vm465_vm3, %v1007_v38, %v7688_v55  ;;  %v1015_v38 = vrot.slane %v906_v19, 1 }
  0x57   : > { %1080 = vrot.lane.b32.xlu1 %v1006_v28, %s7275_s25  ;;  %1078 = vrot.lane.b32.xlu0 %v7675_v43, %s7275_s25  ;;  %v7701_v28 = vrot.slane %v7678_v63, 2 }
  0x58   : > { %v1016_v16 = vsel %vm465_vm3, %v7718_v18, %v1015_v38  ;;  %v1020_v38 = vrot.slane %v909_v13, 1 }
  0x59   : > { %v1187_v23 = vsel %vm642_vm2, %v7701_v28, %v1186_v46  ;;  %v7724_v52 = vsel %vm642_vm2, %v1183_v21, %v7701_v28  ;;  %v1191_v21 = vrot.slane %v906_v19, 2 }
  0x5b   : > { %1256 = vrot.lane.b32.xlu1 %v1182_v45, %s7274_s24  ;;  %1254 = vrot.lane.b32.xlu0 %v7694_v58, %s7274_s24  ;;  %v7712_v45 = vld [vmem:[#allocation2 + $0xa8] sm:$0xff] }
  0x5c   : > { %v1012_v17 = vrot.slane %v7712_v45, 1  ;;  %v1188_v15 = vrot.slane %v7712_v45, 2 }
  0x5e   : > { %v7737_v46 = vsel %vm465_vm3, %v1012_v17, %v7718_v18 }
  0x5f   : > { %1084 = vrot.lane.b32.xlu1 %v1011_v22, %s7275_s25  ;;  %1082 = vrot.lane.b32.xlu0 %v7707_v33, %s7275_s25  ;;  %v7731_v22 = vrot.slane %v7710_v20, 2  ;;  %11130 = vst [vmem:[#allocation36_spill] sm:$0xff] %v7737_v46 }
  0x61   : > { %11129 = vst [vmem:[#allocation35_spill] sm:$0xff] %v7731_v22  ;;  %v1192_v17 = vsel %vm642_vm2, %v7731_v22, %v1191_v21  ;;  %v7754_v19 = vsel %vm642_vm2, %v1188_v15, %v7731_v22  ;;  %v7767_v21 = vrot.slane %v7740_v14, 2  ;;  %v8012_v22 = vld [vmem:[#allocation2 + $0x8] sm:$0xff] }
  0x62   : > { %11132 = vst [vmem:[#allocation38_spill] sm:$0xff] %v7754_v19 }
  0x63   : > { %1260 = vrot.lane.b32.xlu1 %v1187_v23, %s7274_s24  ;;  %1258 = vrot.lane.b32.xlu0 %v7724_v52, %s7274_s24  ;;  %v7742_v23 = vld [vmem:[#allocation2 + $0xc0] sm:$0xff]  ;;  %11134 = vst [vmem:[#allocation40_spill] sm:$0xff] %v7767_v21 }
  0x64   : > { %v1017_v11 = vrot.slane %v7742_v23, 1  ;;  %v1193_v15 = vrot.slane %v7742_v23, 2 }
  0x66   : > { %v7764_v10 = vsel %vm465_vm3, %v1017_v11, %v7748_v12  ;;  %v1197_v11 = vsel %vm642_vm2, %v7767_v21, %v1196_v9  ;;  %v7784_v13 = vsel %vm642_vm2, %v1193_v15, %v7767_v21  ;;  %v918_v21 = vld [vmem:[#allocation2 + $0x118] sm:$0x3] }
  0x67   : > { %1088 = vrot.lane.b32.xlu1 %v1016_v16, %s7275_s25  ;;  %1086 = vrot.lane.b32.xlu0 %v7737_v46, %s7275_s25  ;;  %v1021_v16 = vsel %vm465_vm3, %v7748_v12, %v1020_v38  ;;  %11133 = vst [vmem:[#allocation39_spill] sm:$0xff] %v7764_v10  ;;  %v7778_v38 = vrot.slane %v7770_v8, 1  ;;  %11137 = vst [vmem:[#allocation43_spill] sm:$0xff] %v7784_v13 }
  0x69   : > { %11136 = vst [vmem:[#allocation42_spill] sm:$0xff] %v7778_v38  ;;  %v1026_v3 = vsel %vm465_vm3, %v7778_v38, %v1025_v6 }
  0x6b   : > { %1264 = vrot.lane.b32.xlu1 %v1192_v17, %s7274_s24  ;;  %1262 = vrot.lane.b32.xlu0 %v7754_v19, %s7274_s24  ;;  %v7772_v17 = vld [vmem:[#allocation2 + $0xd8] sm:$0xff] }
  0x6c   : > { %11135 = vst [vmem:[#allocation41_spill] sm:$0xff] %v7772_v17  ;;  %v1022_v5 = vrot.slane %v7772_v17, 1  ;;  %v1198_v15 = vrot.slane %v7772_v17, 2  ;;  %v371_v17 = vld [vmem:[#allocation2 + $0x10] sm:$0x3] }
  0x6e   : > { %v7797_v9 = vsel %vm465_vm3, %v1022_v5, %v7778_v38  ;;  %v7814_v5 = vrot.slane %v7800_v2, 1 }
  0x6f   : > { %1092 = vrot.lane.b32.xlu1 %v1021_v16, %s7275_s25  ;;  %1090 = vrot.lane.b32.xlu0 %v7764_v10, %s7275_s25  ;;  %v7791_v16 = vrot.slane %v7770_v8, 2  ;;  %11139 = vst [vmem:[#allocation45_spill] sm:$0xff] %v7797_v9  ;;  %v7860_v10 = vld [vmem:[#allocation2 + $0x128] sm:$0xff] }
  0x70   : > { %11143 = vst [vmem:[#allocation49_spill] sm:$0xff] %v7814_v5  ;;  %11152 = vst [vmem:[#allocation58_spill] sm:$0xff] %v7860_v10 }
  0x71   : > { %11138 = vst [vmem:[#allocation44_spill] sm:$0xff] %v7791_v16  ;;  %v1202_v7 = vsel %vm642_vm2, %v7791_v16, %v1201_v4  ;;  %v7811_v6 = vsel %vm642_vm2, %v1198_v15, %v7791_v16  ;;  %v1031_v4 = vsel %vm465_vm3, %v7814_v5, %v1030_v0  ;;  %v1206_v16 = vrot.slane %v915_v1, 2 }
  0x72   : > { %11142 = vst [vmem:[#allocation48_spill] sm:$0xff] %v7811_v6 }
  0x73   : > { %1268 = vrot.lane.b32.xlu1 %v1197_v11, %s7274_s24  ;;  %1266 = vrot.lane.b32.xlu0 %v7784_v13, %s7274_s24  ;;  %v7802_v11 = vld [vmem:[#allocation2 + $0xf0] sm:$0xff] }
  0x74   : > { %11141 = vst [vmem:[#allocation47_spill] sm:$0xff] %v7802_v11  ;;  %v1027_v38 = vrot.slane %v7802_v11, 1  ;;  %v7830_v13 = vld [vmem:[#allocation2 + $0x110] sm:$0xff] }
  0x75   : > { %11146 = vst [vmem:[#allocation52_spill] sm:$0xff] %v7830_v13 }
  0x76   : > { %v7827_v15 = vsel %vm465_vm3, %v1027_v38, %v7814_v5  ;;  %v1035_v38 = vrot.slane %v918_v21, 1 }
  0x77   : > { %1096 = vrot.lane.b32.xlu1 %v1026_v3, %s7275_s25  ;;  %1094 = vrot.lane.b32.xlu0 %v7797_v9, %s7275_s25  ;;  %v7821_v3 = vrot.slane %v7800_v2, 2  ;;  %11145 = vst [vmem:[#allocation51_spill] sm:$0xff] %v7827_v15  ;;  %v1203_v9 = vrot.slane %v7802_v11, 2  ;;  %v921_v11 = vld [vmem:[#allocation2 + $0x130] sm:$0x3] }
  0x79   : > { %11144 = vst [vmem:[#allocation50_spill] sm:$0xff] %v7821_v3  ;;  %v1207_v0 = vsel %vm642_vm2, %v7821_v3, %v1206_v16  ;;  %v7844_v1 = vsel %vm642_vm2, %v1203_v9, %v7821_v3  ;;  %v1211_v9 = vrot.slane %v918_v21, 2 }
  0x7a   : > { %11149 = vst [vmem:[#allocation55_spill] sm:$0xff] %v7844_v1 }
  0x7b   : > { %1272 = vrot.lane.b32.xlu1 %v1202_v7, %s7274_s24  ;;  %1270 = vrot.lane.b32.xlu0 %v7811_v6, %s7274_s24  ;;  %v7832_v7 = vld [vmem:[#allocation2 + $0x108] sm:$0xff]  ;;  %v7838_v6 = vrot.slane %v7830_v13, 1 }
  0x7c   : > { %11147 = vst [vmem:[#allocation53_spill] sm:$0xff] %v7832_v7  ;;  %v1032_v5 = vrot.slane %v7832_v7, 1  ;;  %v1208_v3 = vrot.slane %v7832_v7, 2  ;;  %v7890_v7 = vld [vmem:[#allocation2 + $0x140] sm:$0xff] }
  0x7d   : > { %11148 = vst [vmem:[#allocation54_spill] sm:$0xff] %v7838_v6  ;;  %11158 = vst [vmem:[#allocation64_spill] sm:$0xff] %v7890_v7 }
  0x7e   : > { %v7857_v16 = vsel %vm465_vm3, %v1032_v5, %v7838_v6 }
  0x7f   : > { %1100 = vrot.lane.b32.xlu1 %v1031_v4, %s7275_s25  ;;  %1098 = vrot.lane.b32.xlu0 %v7827_v15, %s7275_s25  ;;  %v7851_v4 = vrot.slane %v7830_v13, 2  ;;  %v1036_v15 = vsel %vm465_vm3, %v7838_v6, %v1035_v38  ;;  %11151 = vst [vmem:[#allocation57_spill] sm:$0xff] %v7857_v16  ;;  %v1040_v38 = vrot.slane %v921_v11, 1  ;;  %v924_v13 = vld [vmem:[#allocation2 + $0x148] sm:$0x3] }
  0x81   : > { %11150 = vst [vmem:[#allocation56_spill] sm:$0xff] %v7851_v4  ;;  %v1212_v5 = vsel %vm642_vm2, %v7851_v4, %v1211_v9  ;;  %v7874_v21 = vsel %vm642_vm2, %v1208_v3, %v7851_v4  ;;  %v1216_v3 = vrot.slane %v921_v11, 2 }
  0x82   : > { %11155 = vst [vmem:[#allocation61_spill] sm:$0xff] %v7874_v21 }
  0x83   : > { %1276 = vrot.lane.b32.xlu1 %v1207_v0, %s7274_s24  ;;  %1274 = vrot.lane.b32.xlu0 %v7844_v1, %s7274_s24  ;;  %v7862_v0 = vld [vmem:[#allocation2 + $0x120] sm:$0xff]  ;;  %v7868_v1 = vrot.slane %v7860_v10, 1 }
  0x84   : > { %11153 = vst [vmem:[#allocation59_spill] sm:$0xff] %v7862_v0  ;;  %v1037_v6 = vrot.slane %v7862_v0, 1  ;;  %v1213_v4 = vrot.slane %v7862_v0, 2  ;;  %v7920_v0 = vld [vmem:[#allocation2 + $0x158] sm:$0xff] }
  0x85   : > { %11154 = vst [vmem:[#allocation60_spill] sm:$0xff] %v7868_v1  ;;  %11164 = vst [vmem:[#allocation70_spill] sm:$0xff] %v7920_v0 }
  0x86   : > { %v7887_v9 = vsel %vm465_vm3, %v1037_v6, %v7868_v1 }
  0x87   : > { %1104 = vrot.lane.b32.xlu1 %v1036_v15, %s7275_s25  ;;  %1102 = vrot.lane.b32.xlu0 %v7857_v16, %s7275_s25  ;;  %v7881_v15 = vrot.slane %v7860_v10, 2  ;;  %v1041_v16 = vsel %vm465_vm3, %v7868_v1, %v1040_v38  ;;  %11157 = vst [vmem:[#allocation63_spill] sm:$0xff] %v7887_v9  ;;  %v1045_v38 = vrot.slane %v924_v13, 1  ;;  %v927_v10 = vld [vmem:[#allocation2 + $0x160] sm:$0x3] }
  0x89   : > { %11156 = vst [vmem:[#allocation62_spill] sm:$0xff] %v7881_v15  ;;  %v1217_v6 = vsel %vm642_vm2, %v7881_v15, %v1216_v3  ;;  %v7904_v11 = vsel %vm642_vm2, %v1213_v4, %v7881_v15  ;;  %v1221_v4 = vrot.slane %v924_v13, 2 }
  0x8a   : > { %11161 = vst [vmem:[#allocation67_spill] sm:$0xff] %v7904_v11 }
  0x8b   : > { %1280 = vrot.lane.b32.xlu1 %v1212_v5, %s7274_s24  ;;  %1278 = vrot.lane.b32.xlu0 %v7874_v21, %s7274_s24  ;;  %v7892_v5 = vld [vmem:[#allocation2 + $0x138] sm:$0xff]  ;;  %v7898_v21 = vrot.slane %v7890_v7, 1 }
  0x8c   : > { %11159 = vst [vmem:[#allocation65_spill] sm:$0xff] %v7892_v5  ;;  %v1042_v1 = vrot.slane %v7892_v5, 1  ;;  %v1218_v15 = vrot.slane %v7892_v5, 2  ;;  %v7950_v5 = vld [vmem:[#allocation2 + $0x170] sm:$0xff] }
  0x8d   : > { %11160 = vst [vmem:[#allocation66_spill] sm:$0xff] %v7898_v21  ;;  %11170 = vst [vmem:[#allocation76_spill] sm:$0xff] %v7950_v5 }
  0x8e   : > { %v7917_v3 = vsel %vm465_vm3, %v1042_v1, %v7898_v21 }
  0x8f   : > { %1108 = vrot.lane.b32.xlu1 %v1041_v16, %s7275_s25  ;;  %1106 = vrot.lane.b32.xlu0 %v7887_v9, %s7275_s25  ;;  %v7911_v16 = vrot.slane %v7890_v7, 2  ;;  %v1046_v9 = vsel %vm465_vm3, %v7898_v21, %v1045_v38  ;;  %11163 = vst [vmem:[#allocation69_spill] sm:$0xff] %v7917_v3  ;;  %v1050_v38 = vrot.slane %v927_v10, 1  ;;  %v930_v7 = vld [vmem:[#allocation2 + $0x178] sm:$0x3] }
  0x91   : > { %11162 = vst [vmem:[#allocation68_spill] sm:$0xff] %v7911_v16  ;;  %v1222_v1 = vsel %vm642_vm2, %v7911_v16, %v1221_v4  ;;  %v7934_v13 = vsel %vm642_vm2, %v1218_v15, %v7911_v16  ;;  %v1226_v15 = vrot.slane %v927_v10, 2 }
  0x92   : > { %11167 = vst [vmem:[#allocation73_spill] sm:$0xff] %v7934_v13 }
  0x93   : > { %1284 = vrot.lane.b32.xlu1 %v1217_v6, %s7274_s24  ;;  %1282 = vrot.lane.b32.xlu0 %v7904_v11, %s7274_s24  ;;  %v7922_v6 = vld [vmem:[#allocation2 + $0x150] sm:$0xff]  ;;  %v7928_v11 = vrot.slane %v7920_v0, 1 }
  0x94   : > { %11165 = vst [vmem:[#allocation71_spill] sm:$0xff] %v7922_v6  ;;  %v1047_v21 = vrot.slane %v7922_v6, 1  ;;  %v1223_v16 = vrot.slane %v7922_v6, 2  ;;  %v7980_v6 = vld [vmem:[#allocation2 + $0x188] sm:$0xff] }
  0x95   : > { %11166 = vst [vmem:[#allocation72_spill] sm:$0xff] %v7928_v11 }
  0x96   : > { %v7947_v4 = vsel %vm465_vm3, %v1047_v21, %v7928_v11 }
  0x97   : > { %1112 = vrot.lane.b32.xlu1 %v1046_v9, %s7275_s25  ;;  %1110 = vrot.lane.b32.xlu0 %v7917_v3, %s7275_s25  ;;  %v7941_v9 = vrot.slane %v7920_v0, 2  ;;  %v1051_v3 = vsel %vm465_vm3, %v7928_v11, %v1050_v38  ;;  %11169 = vst [vmem:[#allocation75_spill] sm:$0xff] %v7947_v4  ;;  %v1055_v38 = vrot.slane %v930_v7, 1  ;;  %v933_v0 = vld [vmem:[#allocation2 + $0x190] sm:$0x3] }
  0x98   : > { %v1236_v12 = vrot.slane %v933_v0, 2 }
  0x99   : > { %11168 = vst [vmem:[#allocation74_spill] sm:$0xff] %v7941_v9  ;;  %v1227_v21 = vsel %vm642_vm2, %v7941_v9, %v1226_v15  ;;  %v7964_v10 = vsel %vm642_vm2, %v1223_v16, %v7941_v9  ;;  %v1231_v16 = vrot.slane %v930_v7, 2 }
  0x9a   : > { %11173 = vst [vmem:[#allocation79_spill] sm:$0xff] %v7964_v10 }
  0x9b   : > { %1288 = vrot.lane.b32.xlu1 %v1222_v1, %s7274_s24  ;;  %1286 = vrot.lane.b32.xlu0 %v7934_v13, %s7274_s24  ;;  %v7952_v1 = vld [vmem:[#allocation2 + $0x168] sm:$0xff]  ;;  %v7958_v13 = vrot.slane %v7950_v5, 1 }
  0x9c   : > { %11171 = vst [vmem:[#allocation77_spill] sm:$0xff] %v7952_v1  ;;  %v1052_v11 = vrot.slane %v7952_v1, 1  ;;  %v1228_v9 = vrot.slane %v7952_v1, 2 }
  0x9d   : > { %11172 = vst [vmem:[#allocation78_spill] sm:$0xff] %v7958_v13 }
  0x9e   : > { %v7977_v15 = vsel %vm465_vm3, %v1052_v11, %v7958_v13 }
  0x9f   : > { %1116 = vrot.lane.b32.xlu1 %v1051_v3, %s7275_s25  ;;  %1114 = vrot.lane.b32.xlu0 %v7947_v4, %s7275_s25  ;;  %v7971_v3 = vrot.slane %v7950_v5, 2  ;;  %v1056_v4 = vsel %vm465_vm3, %v7958_v13, %v1055_v38  ;;  %11175 = vst [vmem:[#allocation81_spill] sm:$0xff] %v7977_v15  ;;  %v1058_v38 = vrot.slane %v7980_v6, 1  ;;  %v1060_v13 = vrot.slane %v933_v0, 1 }
  0xa1   : > { %11174 = vst [vmem:[#allocation80_spill] sm:$0xff] %v7971_v3  ;;  %v1232_v11 = vsel %vm642_vm2, %v7971_v3, %v1231_v16  ;;  %v7992_v7 = vsel %vm642_vm2, %v1228_v9, %v7971_v3  ;;  %v885_v16 = vld [vmem:[%s10963_s1 + $0x8] sm:$0xf]  ;;  %v1234_v3 = vrot.slane %v7980_v6, 2 }
  0xa2   : > { %11176 = vst [vmem:[#allocation82_spill] sm:$0xff] %v7992_v7 }
  0xa3   : > { %1292 = vrot.lane.b32.xlu1 %v1227_v21, %s7274_s24  ;;  %1290 = vrot.lane.b32.xlu0 %v7964_v10, %s7274_s24  ;;  %v7982_v21 = vld [vmem:[#allocation2 + $0x180] sm:$0xff] }
  0xa4   : > { %v1057_v10 = vrot.slane %v7982_v21, 1  ;;  %v1233_v19 = vrot.slane %v7982_v21, 2 }
  0xa7   : > { %1120 = vrot.lane.b32.xlu1 %v1056_v4, %s7275_s25  ;;  %1118 = vrot.lane.b32.xlu0 %v7977_v15, %s7275_s25  ;;  %v884_v15 = vld [vmem:[%s10963_s1] sm:$0xff] }
  0xa8   : > { %v7033_v2 = vpack.c.bf16 %v885_v16, %v884_v15  ;;  %v1235_v15 = vsel %vm642_vm2, %v1233_v19, %v1234_v3 }
  0xa9   : > { %v1239_v1 = vpop.permute.xlu1 %1238  ;;  %v1063_v5 = vpop.permute.xlu0 %1062 }
  0xaa   : > { %v1334_v4 = vsel %vm258_vm0, %v7468_v40, %v1063_v5  ;;  %v1061_v40 = vsel %vm465_vm3, %v1058_v38, %v1060_v13  ;;  %v1059_v5 = vsel %vm465_vm3, %v1057_v10, %v1058_v38  ;;  %7035 = vmatprep.subr.msk.bf16.mxu0 %vm7649_vm6, %v7033_v2  ;;  %v467_v13 = vrot.slane %v8012_v22, 1 }
  0xab   : > { %1296 = vrot.lane.b32.xlu1 %v1232_v11, %s7274_s24  ;;  %1294 = vrot.lane.b32.xlu0 %v7992_v7, %s7274_s24  ;;  %v1366_v9 = vsel %vm851_vm7, %v1334_v4, %v1239_v1  ;;  %v8014_v7 = vld [vmem:[#allocation2] sm:$0xff]  ;;  %v1237_v10 = vsel %vm642_vm2, %v1234_v3, %v1236_v12  ;;  %v469_v38 = vrot.slane %v371_v17, 1 }
  0xac   : > { %6719 = vmatprep.mubr.msk.f32.mxu0 %vm1401_vm8, %v1366_v9  ;;  %v466_v4 = vrot.slane %v8014_v7, 1  ;;  %v643_v19 = vrot.slane %v8014_v7, 2 }
  0xad   : > { %v1241_v11 = vpop.permute.xlu1 %1240  ;;  %v1065_v46 = vpop.permute.xlu0 %1064 }
  0xae   : > { %v1335_v1 = vsel %vm258_vm0, %v7454_v31, %v1065_v46  ;;  %v644_v31 = vrot.slane %v8012_v22, 2  ;;  %v470_v46 = vsel %vm465_vm3, %v467_v13, %v469_v38  ;;  %v468_v12 = vsel %vm465_vm3, %v466_v4, %v467_v13 }
  0xaf   : > { %1124 = vrot.lane.b32.xlu1 %v1061_v40, %s7275_s25  ;;  %1122 = vrot.lane.b32.xlu0 %v1059_v5, %s7275_s25  ;;  %v1367_v0 = vsel %vm851_vm7, %v1335_v1, %v1241_v11  ;;  %v646_v40 = vrot.slane %v371_v17, 2  ;;  %v374_v1 = vld [vmem:[#allocation2 + $0x28] sm:$0x3] }
  0xb0   : > { %6720 = vmatmul.mubr.msk.f32.vlgmr.msra.gmra.mrb[0].mxu0 %vm1401_vm8, %v1367_v0  ;;  %v474_v13 = vrot.slane %v374_v1, 1  ;;  %v651_v4 = vrot.slane %v374_v1, 2 }
  0xb1   : > { %v1069_v16 = vpop.permute.xlu1 %1068  ;;  %v1067_v9 = vpop.permute.xlu0 %1066  ;;  %7038 = vmatpush3.bf16.msk.msra.mxu0 %vm7649_vm6, %v7033_v2  ;;  %v647_v17 = vsel %vm642_vm2, %v644_v31, %v646_v40 }
  0xb2   : > { %v1337_v3 = vsel %vm258_vm0, %v7474_v47, %v1069_v16  ;;  %v1336_v5 = vsel %vm258_vm0, %v7477_v49, %v1067_v9  ;;  %v645_v47 = vsel %vm642_vm2, %v643_v19, %v644_v31  ;;  %v475_v38 = vsel %vm465_vm3, %v7465_v37, %v474_v13 }
  0xb3   : > { %1300 = vrot.lane.b32.xlu1 %v1237_v10, %s7274_s24  ;;  %1298 = vrot.lane.b32.xlu0 %v1235_v15, %s7274_s24  ;;  %v652_v37 = vsel %vm642_vm2, %v7462_v36, %v651_v4 }
  0xb5   : > { %v1245_v2 = vpop.permute.xlu1 %1244  ;;  %v1243_v11 = vpop.permute.xlu0 %1242 }
  0xb6   : > { %v1369_v0 = vsel %vm851_vm7, %v1337_v3, %v1245_v2  ;;  %v1368_v10 = vsel %vm851_vm7, %v1336_v5, %v1243_v11 }
  0xb7   : > { %548 = vrot.lane.b32.xlu1 %v470_v46, %s7275_s25  ;;  %546 = vrot.lane.b32.xlu0 %v468_v12, %s7275_s25  ;;  %v377_v12 = vld [vmem:[#allocation2 + $0x40] sm:$0x3] }
  0xb8   : > { %6722 = vmatprep.mubr.msk.f32.mxu0 %vm1401_vm8, %v1368_v10  ;;  %v656_v2 = vrot.slane %v377_v12, 2 }
  0xb9   : > { %6723 = vmatmul.mubr.msk.f32.gmra.mrb[2].mxu0 %vm1401_vm8, %v1369_v0  ;;  %v1073_v49 = vpop.permute.xlu1 %1072  ;;  %v1071_v15 = vpop.permute.xlu0 %1070  ;;  %v380_v0 = vld [vmem:[#allocation2 + $0x58] sm:$0x3] }
  0xba   : > { %v1339_v16 = vsel %vm258_vm0, %v7506_v61, %v1073_v49  ;;  %v1338_v9 = vsel %vm258_vm0, %v7517_v29, %v1071_v15  ;;  %v479_v61 = vrot.slane %v377_v12, 1  ;;  %v661_v13 = vrot.slane %v380_v0, 2 }
  0xbb   : > { %725 = vrot.lane.b32.xlu1 %v647_v17, %s7274_s24  ;;  %723 = vrot.lane.b32.xlu0 %v645_v47, %s7274_s24 }
  0xbc   : > { %v480_v5 = vsel %vm465_vm3, %v7492_v53, %v479_v61  ;;  %v484_v53 = vrot.slane %v380_v0, 1 }
  0xbd   : > { %v1249_v31 = vpop.permute.xlu1 %1248  ;;  %v1247_v46 = vpop.permute.xlu0 %1246 }
  0xbe   : > { %v1371_v40 = vsel %vm851_vm7, %v1339_v16, %v1249_v31  ;;  %v1370_v19 = vsel %vm851_vm7, %v1338_v9, %v1247_v46  ;;  %v485_v47 = vsel %vm465_vm3, %v7526_v34, %v484_v53  ;;  %v662_v34 = vsel %vm642_vm2, %v7563_v54, %v661_v13 }
  0xbf   : > { %552 = vrot.lane.b32.xlu1 %v475_v38, %s7275_s25  ;;  %6725 = vmatprep.mubr.msk.f32.mxu0 %vm1401_vm8, %v1370_v19  ;;  %v383_v38 = vld [vmem:[#allocation2 + $0x70] sm:$0x3] }
  0xc0   : > { %550 = vrot.lane.b32.xlu0 %v7485_v51, %s7275_s25  ;;  %6726 = vmatmul.mubr.msk.f32.gmra.mrb[4].mxu0 %vm1401_vm8, %v1371_v40  ;;  %v666_v31 = vrot.slane %v383_v38, 2  ;;  %v386_v40 = vld [vmem:[#allocation2 + $0x88] sm:$0x3] }
  0xc1   : > { %v1077_v29 = vpop.permute.xlu1 %1076  ;;  %v1075_v3 = vpop.permute.xlu0 %1074 }
  0xc2   : > { %v1341_v51 = vsel %vm258_vm0, %v7581_v62, %v1077_v29  ;;  %v1340_v11 = vsel %vm258_vm0, %v7587_v25, %v1075_v3  ;;  %v671_v29 = vrot.slane %v386_v40, 2 }
  0xc3   : > { %729 = vrot.lane.b32.xlu1 %v652_v37, %s7274_s24 }
  0xc4   : > { %727 = vrot.lane.b32.xlu0 %v7481_v50, %s7274_s24  ;;  %v657_v50 = vsel %vm642_vm2, %v7504_v60, %v656_v2  ;;  %v389_v2 = vld [vmem:[#allocation2 + $0xa0] sm:$0x3] }
  0xc5   : > { %v1253_v1 = vpop.permute.xlu1 %1252  ;;  %v1251_v36 = vpop.permute.xlu0 %1250 }
  0xc6   : > { %v1373_v10 = vsel %vm851_vm7, %v1341_v51, %v1253_v1  ;;  %v1372_v17 = vsel %vm851_vm7, %v1340_v11, %v1251_v36  ;;  %v676_v36 = vrot.slane %v389_v2, 2 }
  0xc7   : > { %556 = vrot.lane.b32.xlu1 %v480_v5, %s7275_s25  ;;  %6728 = vmatprep.mubr.msk.f32.mxu0 %vm1401_vm8, %v1372_v17  ;;  %v392_v17 = vld [vmem:[#allocation2 + $0xb8] sm:$0x3] }
  0xc8   : > { %554 = vrot.lane.b32.xlu0 %v7513_v24, %s7275_s25  ;;  %6729 = vmatmul.mubr.msk.f32.gmra.mrb[6].mxu0 %vm1401_vm8, %v1373_v10 }
  0xc9   : > { %v1081_v62 = vpop.permute.xlu1 %1080  ;;  %v1079_v25 = vpop.permute.xlu0 %1078 }
  0xca   : > { %v1343_v24 = vsel %vm258_vm0, %v7620_v56, %v1081_v62  ;;  %v1342_v49 = vsel %vm258_vm0, %v7630_v26, %v1079_v25  ;;  %v681_v25 = vrot.slane %v392_v17, 2 }
  0xcb   : > { %733 = vrot.lane.b32.xlu1 %v657_v50, %s7274_s24 }
  0xcc   : > { %731 = vrot.lane.b32.xlu0 %v7536_v41, %s7274_s24  ;;  %v489_v41 = vrot.slane %v383_v38, 1 }
  0xcd   : > { %v1257_v15 = vpop.permute.xlu1 %1256  ;;  %v1255_v60 = vpop.permute.xlu0 %1254 }
  0xce   : > { %v1375_v4 = vsel %vm851_vm7, %v1343_v24, %v1257_v15  ;;  %v1374_v16 = vsel %vm851_vm7, %v1342_v49, %v1255_v60  ;;  %v490_v9 = vsel %vm465_vm3, %v7601_v27, %v489_v41  ;;  %v667_v27 = vsel %vm642_vm2, %v7618_v44, %v666_v31  ;;  %v395_v49 = vld [vmem:[#allocation2 + $0xd0] sm:$0x3]  ;;  %v11181_v41 = vld [vmem:[#allocation37_spill] sm:$0xff] }
  0xcf   : > { %560 = vrot.lane.b32.xlu1 %v485_v47, %s7275_s25  ;;  %6731 = vmatprep.mubr.msk.f32.mxu0 %vm1401_vm8, %v1374_v16  ;;  %v11177_v47 = vld [vmem:[#allocation41_spill] sm:$0xff]  ;;  %v509_v38 = vrot.slane %v395_v49, 1 }
  0xd0   : > { %558 = vrot.lane.b32.xlu0 %v7578_v57, %s7275_s25  ;;  %6732 = vmatmul.mubr.msk.f32.gmra.mrb[8].mxu0 %vm1401_vm8, %v1375_v4 }
  0xd1   : > { %v1085_v26 = vpop.permute.xlu1 %1084  ;;  %v1083_v56 = vpop.permute.xlu0 %1082 }
  0xd2   : > { %v1345_v57 = vsel %vm258_vm0, %v7678_v63, %v1085_v26  ;;  %v1344_v46 = vsel %vm258_vm0, %v7682_v39, %v1083_v56  ;;  %v510_v26 = vsel %vm465_vm3, %v11181_v41, %v509_v38  ;;  %v686_v56 = vrot.slane %v395_v49, 2 }
  0xd3   : > { %737 = vrot.lane.b32.xlu1 %v662_v34, %s7274_s24  ;;  %v11180_v34 = vld [vmem:[#allocation38_spill] sm:$0xff] }
  0xd4   : > { %735 = vrot.lane.b32.xlu0 %v7609_v32, %s7274_s24  ;;  %v494_v32 = vrot.slane %v386_v40, 1  ;;  %v398_v40 = vld [vmem:[#allocation2 + $0xe8] sm:$0x3] }
  0xd5   : > { %v1261_v12 = vpop.permute.xlu1 %1260  ;;  %v1259_v54 = vpop.permute.xlu0 %1258 }
  0xd6   : > { %v1377_v19 = vsel %vm851_vm7, %v1345_v57, %v1261_v12  ;;  %v1376_v37 = vsel %vm851_vm7, %v1344_v46, %v1259_v54  ;;  %v495_v61 = vsel %vm465_vm3, %v7646_v59, %v494_v32  ;;  %v499_v59 = vrot.slane %v389_v2, 1  ;;  %v11183_v57 = vld [vmem:[#allocation47_spill] sm:$0xff]  ;;  %v11185_v32 = vld [vmem:[#allocation40_spill] sm:$0xff] }
  0xd7   : > { %564 = vrot.lane.b32.xlu1 %v490_v9, %s7275_s25  ;;  %6734 = vmatprep.mubr.msk.f32.mxu0 %vm1401_vm8, %v1376_v37  ;;  %v11182_v9 = vld [vmem:[#allocation46_spill] sm:$0xff]  ;;  %v11188_v2 = vld [vmem:[#allocation52_spill] sm:$0xff] }
  0xd8   : > { %562 = vrot.lane.b32.xlu0 %v7627_v42, %s7275_s25  ;;  %6735 = vmatmul.mubr.msk.f32.gmra.mrb[10].mxu0 %vm1401_vm8, %v1377_v19  ;;  %v500_v1 = vsel %vm465_vm3, %v7688_v55, %v499_v59  ;;  %v504_v55 = vrot.slane %v392_v17, 1 }
  0xd9   : > { %v1089_v63 = vpop.permute.xlu1 %1088  ;;  %v1087_v39 = vpop.permute.xlu0 %1086 }
  0xda   : > { %v1347_v42 = vsel %vm258_vm0, %v7710_v20, %v1089_v63  ;;  %v1346_v3 = vsel %vm258_vm0, %v7712_v45, %v1087_v39  ;;  %v672_v20 = vsel %vm642_vm2, %v7669_v30, %v671_v29  ;;  %v505_v62 = vsel %vm465_vm3, %v7718_v18, %v504_v55  ;;  %v11178_v18 = vld [vmem:[#allocation36_spill] sm:$0xff] }
  0xdb   : > { %741 = vrot.lane.b32.xlu1 %v667_v27, %s7274_s24  ;;  %v11184_v27 = vld [vmem:[#allocation39_spill] sm:$0xff]  ;;  %v687_v63 = vsel %vm642_vm2, %v11185_v32, %v686_v56  ;;  %v514_v39 = vrot.slane %v398_v40, 1 }
  0xdc   : > { %739 = vrot.lane.b32.xlu0 %v7658_v35, %s7274_s24 }
  0xdd   : > { %v1265_v5 = vpop.permute.xlu1 %1264  ;;  %v1263_v44 = vpop.permute.xlu0 %1262 }
  0xde   : > { %v1379_v51 = vsel %vm851_vm7, %v1347_v42, %v1265_v5  ;;  %v1378_v11 = vsel %vm851_vm7, %v1346_v3, %v1263_v44  ;;  %v11186_v42 = vld [vmem:[#allocation43_spill] sm:$0xff]  ;;  %v11187_v3 = vld [vmem:[#allocation42_spill] sm:$0xff]  ;;  %v691_v44 = vrot.slane %v398_v40, 2 }
  0xdf   : > { %568 = vrot.lane.b32.xlu1 %v495_v61, %s7275_s25  ;;  %6737 = vmatprep.mubr.msk.f32.mxu0 %vm1401_vm8, %v1378_v11  ;;  %v515_v5 = vsel %vm465_vm3, %v11187_v3, %v514_v39  ;;  %v11189_v11 = vld [vmem:[#allocation53_spill] sm:$0xff] }
  0xe0   : > { %566 = vrot.lane.b32.xlu0 %v7675_v43, %s7275_s25  ;;  %6738 = vmatmul.mubr.msk.f32.gmra.mrb[12].mxu0 %vm1401_vm8, %v1379_v51 }
  0xe1   : > { %v1093_v35 = vpop.permute.xlu1 %1092  ;;  %v1091_v45 = vpop.permute.xlu0 %1090 }
  0xe2   : > { %v1349_v43 = vsel %vm258_vm0, %v7740_v14, %v1093_v35  ;;  %v1348_v0 = vsel %vm258_vm0, %v7742_v23, %v1091_v45  ;;  %v677_v14 = vsel %vm642_vm2, %v7701_v28, %v676_v36  ;;  %v401_v45 = vld [vmem:[#allocation2 + $0x100] sm:$0x3] }
  0xe3   : > { %745 = vrot.lane.b32.xlu1 %v672_v20, %s7274_s24 }
  0xe4   : > { %743 = vrot.lane.b32.xlu0 %v7694_v58, %s7274_s24 }
  0xe5   : > { %v1269_v10 = vpop.permute.xlu1 %1268  ;;  %v1267_v30 = vpop.permute.xlu0 %1266 }
  0xe6   : > { %v1381_v50 = vsel %vm851_vm7, %v1349_v43, %v1269_v10  ;;  %v1380_v53 = vsel %vm851_vm7, %v1348_v0, %v1267_v30  ;;  %v11190_v43 = vld [vmem:[#allocation45_spill] sm:$0xff]  ;;  %v11191_v0 = vld [vmem:[#allocation44_spill] sm:$0xff]  ;;  %v519_v30 = vrot.slane %v401_v45, 1 }
  0xe7   : > { %572 = vrot.lane.b32.xlu1 %v500_v1, %s7275_s25  ;;  %6740 = vmatprep.mubr.msk.f32.mxu0 %vm1401_vm8, %v1380_v53  ;;  %v692_v10 = vsel %vm642_vm2, %v11191_v0, %v691_v44  ;;  %v11192_v53 = vld [vmem:[#allocation48_spill] sm:$0xff] }
  0xe8   : > { %570 = vrot.lane.b32.xlu0 %v7707_v33, %s7275_s25  ;;  %6741 = vmatmul.mubr.msk.f32.gmra.mrb[14].mxu0 %vm1401_vm8, %v1381_v50 }
  0xe9   : > { %v1097_v58 = vpop.permute.xlu1 %1096  ;;  %v1095_v23 = vpop.permute.xlu0 %1094 }
  0xea   : > { %v1351_v33 = vsel %vm258_vm0, %v7770_v8, %v1097_v58  ;;  %v1350_v13 = vsel %vm258_vm0, %v11177_v47, %v1095_v23  ;;  %v11179_v8 = vld [vmem:[#allocation35_spill] sm:$0xff]  ;;  %v696_v58 = vrot.slane %v401_v45, 2  ;;  %v11194_v23 = vld [vmem:[#allocation58_spill] sm:$0xff] }
  0xeb   : > { %749 = vrot.lane.b32.xlu1 %v677_v14, %s7274_s24  ;;  %v11193_v14 = vld [vmem:[#allocation49_spill] sm:$0xff] }
  0xec   : > { %747 = vrot.lane.b32.xlu0 %v7724_v52, %s7274_s24  ;;  %v682_v52 = vsel %vm642_vm2, %v11179_v8, %v681_v25  ;;  %v520_v55 = vsel %vm465_vm3, %v11193_v14, %v519_v30  ;;  %v11195_v25 = vld [vmem:[#allocation59_spill] sm:$0xff] }
  0xed   : > { %v1273_v24 = vpop.permute.xlu1 %1272  ;;  %v1271_v28 = vpop.permute.xlu0 %1270 }
  0xee   : > { %v1383_v15 = vsel %vm851_vm7, %v1351_v33, %v1273_v24  ;;  %v1382_v60 = vsel %vm851_vm7, %v1350_v13, %v1271_v28  ;;  %v404_v24 = vld [vmem:[#allocation2 + $0x118] sm:$0x3] }
  0xef   : > { %576 = vrot.lane.b32.xlu1 %v505_v62, %s7275_s25  ;;  %6743 = vmatprep.mubr.msk.f32.mxu0 %vm1401_vm8, %v1382_v60  ;;  %v11197_v60 = vld [vmem:[#allocation50_spill] sm:$0xff]  ;;  %v524_v8 = vrot.slane %v404_v24, 1  ;;  %v701_v41 = vrot.slane %v404_v24, 2 }
  0xf0   : > { %574 = vrot.lane.b32.xlu0 %v11178_v18, %s7275_s25  ;;  %6744 = vmatmul.mubr.msk.f32.gmra.mrb[16].mxu0 %vm1401_vm8, %v1383_v15  ;;  %v11196_v15 = vld [vmem:[#allocation51_spill] sm:$0xff]  ;;  %v697_v18 = vsel %vm642_vm2, %v11197_v60, %v696_v58 }
  0xf1   : > { %v1101_v4 = vpop.permute.xlu1 %1100  ;;  %v1099_v16 = vpop.permute.xlu0 %1098 }
  0xf2   : > { %v1353_v31 = vsel %vm258_vm0, %v11182_v9, %v1101_v4  ;;  %v1352_v46 = vsel %vm258_vm0, %v11183_v57, %v1099_v16  ;;  %v11198_v4 = vld [vmem:[#allocation55_spill] sm:$0xff]  ;;  %v11199_v16 = vld [vmem:[#allocation54_spill] sm:$0xff]  ;;  %v11201_v9 = vld [vmem:[#allocation65_spill] sm:$0xff] }
  0xf3   : > { %753 = vrot.lane.b32.xlu1 %v682_v52, %s7274_s24 }
  0xf4   : > { %751 = vrot.lane.b32.xlu0 %v11180_v34, %s7274_s24  ;;  %v525_v34 = vsel %vm465_vm3, %v11199_v16, %v524_v8 }
  0xf5   : > { %v1277_v12 = vpop.permute.xlu1 %1276  ;;  %v1275_v54 = vpop.permute.xlu0 %1274 }
  0xf6   : > { %v1385_v19 = vsel %vm851_vm7, %v1353_v31, %v1277_v12  ;;  %v1384_v37 = vsel %vm851_vm7, %v1352_v46, %v1275_v54  ;;  %v407_v12 = vld [vmem:[#allocation2 + $0x130] sm:$0x3] }
  0xf7   : > { %580 = vrot.lane.b32.xlu1 %v510_v26, %s7275_s25  ;;  %6746 = vmatprep.mubr.msk.f32.mxu0 %vm1401_vm8, %v1384_v37  ;;  %v11200_v26 = vld [vmem:[#allocation64_spill] sm:$0xff]  ;;  %v529_v32 = vrot.slane %v407_v12, 1  ;;  %v706_v3 = vrot.slane %v407_v12, 2 }
  0xf8   : > { %578 = vrot.lane.b32.xlu0 %v11184_v27, %s7275_s25  ;;  %6747 = vmatmul.mubr.msk.f32.gmra.mrb[18].mxu0 %vm1401_vm8, %v1385_v19  ;;  %v11202_v19 = vld [vmem:[#allocation57_spill] sm:$0xff]  ;;  %v11203_v37 = vld [vmem:[#allocation56_spill] sm:$0xff] }
  0xf9   : > { %v1105_v61 = vpop.permute.xlu1 %1104  ;;  %v1103_v29 = vpop.permute.xlu0 %1102  ;;  %v702_v27 = vsel %vm642_vm2, %v11203_v37, %v701_v41  ;;  %v313_v12 = vld [vmem:[#allocation2 + $0x19a] sm:$0x1] }
  0xfa   : > { %v1355_v51 = vsel %vm258_vm0, %v11188_v2, %v1105_v61  ;;  %v1354_v20 = vsel %vm258_vm0, %v11189_v11, %v1103_v29  ;;  %v11204_v61 = vld [vmem:[#allocation61_spill] sm:$0xff]  ;;  %v11205_v29 = vld [vmem:[#allocation60_spill] sm:$0xff]  ;;  %v11207_v2 = vld [vmem:[#allocation71_spill] sm:$0xff]  ;;  %332 = vst.msk [vmem:[#allocation2 + $0x198] sm:$0x1] %vm314_vm1, %v313_v12 }
  0xfb   : > { %757 = vrot.lane.b32.xlu1 %v687_v63, %s7274_s24  ;;  %v8365_v12 = vld [vmem:[#allocation2 + $0x68] sm:$0xff] }
  0xfc   : > { %755 = vrot.lane.b32.xlu0 %v11186_v42, %s7274_s24  ;;  %v530_v42 = vsel %vm465_vm3, %v11205_v29, %v529_v32  ;;  %v6368_v32 = vld [vmem:[%s10963_s1 + $0x28] sm:$0xf] }
  0xfd   : > { %v1281_v59 = vpop.permute.xlu1 %1280  ;;  %v1279_v35 = vpop.permute.xlu0 %1278 }
  0xfe   : > { %v1387_v1 = vsel %vm851_vm7, %v1355_v51, %v1281_v59  ;;  %v1386_v36 = vsel %vm851_vm7, %v1354_v20, %v1279_v35  ;;  %v410_v59 = vld [vmem:[#allocation2 + $0x148] sm:$0x3] }
  0xff   : > { %584 = vrot.lane.b32.xlu1 %v515_v5, %s7275_s25  ;;  %6749 = vmatprep.mubr.msk.f32.mxu0 %vm1401_vm8, %v1386_v36  ;;  %v11206_v5 = vld [vmem:[#allocation70_spill] sm:$0xff]  ;;  %v534_v0 = vrot.slane %v410_v59, 1  ;;  %v711_v14 = vrot.slane %v410_v59, 2 }
 0x100   : > { %582 = vrot.lane.b32.xlu0 %v11190_v43, %s7275_s25  ;;  %6750 = vmatmul.mubr.msk.f32.gmra.mrb[20].mxu0 %vm1401_vm8, %v1387_v1  ;;  %v11208_v1 = vld [vmem:[#allocation63_spill] sm:$0xff]  ;;  %v11209_v36 = vld [vmem:[#allocation62_spill] sm:$0xff] }
 0x101   : > { %v1109_v17 = vpop.permute.xlu1 %1108  ;;  %v1107_v50 = vpop.permute.xlu0 %1106  ;;  %v707_v43 = vsel %vm642_vm2, %v11209_v36, %v706_v3 }
 0x102   : > { %v1357_v62 = vsel %vm258_vm0, %v11194_v23, %v1109_v17  ;;  %v1356_v33 = vsel %vm258_vm0, %v11195_v25, %v1107_v50  ;;  %v11210_v17 = vld [vmem:[#allocation67_spill] sm:$0xff]  ;;  %v11211_v50 = vld [vmem:[#allocation66_spill] sm:$0xff]  ;;  %v11213_v23 = vld [vmem:[#allocation77_spill] sm:$0xff] }
 0x103   : > { %761 = vrot.lane.b32.xlu1 %v692_v10, %s7274_s24 }
 0x104   : > { %759 = vrot.lane.b32.xlu0 %v11192_v53, %s7274_s24  ;;  %v535_v53 = vsel %vm465_vm3, %v11211_v50, %v534_v0 }
 0x105   : > { %v1285_v47 = vpop.permute.xlu1 %1284  ;;  %v1283_v13 = vpop.permute.xlu0 %1282 }
 0x106   : > { %v1389_v28 = vsel %vm851_vm7, %v1357_v62, %v1285_v47  ;;  %v1388_v49 = vsel %vm851_vm7, %v1356_v33, %v1283_v13  ;;  %v413_v47 = vld [vmem:[#allocation2 + $0x160] sm:$0x3] }
 0x107   : > { %588 = vrot.lane.b32.xlu1 %v520_v55, %s7275_s25  ;;  %6752 = vmatprep.mubr.msk.f32.mxu0 %vm1401_vm8, %v1388_v49  ;;  %v11212_v55 = vld [vmem:[#allocation76_spill] sm:$0xff]  ;;  %v539_v60 = vrot.slane %v413_v47, 1  ;;  %v716_v16 = vrot.slane %v413_v47, 2 }
 0x108   : > { %586 = vrot.lane.b32.xlu0 %v11196_v15, %s7275_s25  ;;  %6753 = vmatmul.mubr.msk.f32.gmra.mrb[22].mxu0 %vm1401_vm8, %v1389_v28  ;;  %v11214_v28 = vld [vmem:[#allocation69_spill] sm:$0xff]  ;;  %v11215_v49 = vld [vmem:[#allocation68_spill] sm:$0xff] }
 0x109   : > { %v1113_v52 = vpop.permute.xlu1 %1112  ;;  %v1111_v38 = vpop.permute.xlu0 %1110  ;;  %v712_v15 = vsel %vm642_vm2, %v11215_v49, %v711_v14  ;;  %v7206_v14 = vld [vmem:[#allocation2 + $0x20] sm:$0xff]  ;;  %v7207_v47 = vld [vmem:[#allocation2 + $0x18] sm:$0xff]  ;;  %v8347_v49 = vld [vmem:[#allocation2 + $0x48] sm:$0xff] }
 0x10a   : > { %v1359_v56 = vsel %vm258_vm0, %v11200_v26, %v1113_v52  ;;  %v1358_v31 = vsel %vm258_vm0, %v11201_v9, %v1111_v38  ;;  %v11216_v52 = vld [vmem:[#allocation73_spill] sm:$0xff]  ;;  %v11217_v38 = vld [vmem:[#allocation72_spill] sm:$0xff] }
 0x10b   : > { %765 = vrot.lane.b32.xlu1 %v697_v18, %s7274_s24  ;;  %v416_v9 = vld [vmem:[#allocation2 + $0x178] sm:$0x3] }
 0x10c   : > { %763 = vrot.lane.b32.xlu0 %v11198_v4, %s7274_s24  ;;  %v540_v4 = vsel %vm465_vm3, %v11217_v38, %v539_v60 }
 0x10d   : > { %v1289_v57 = vpop.permute.xlu1 %1288  ;;  %v1287_v46 = vpop.permute.xlu0 %1286 }
 0x10e   : > { %v1391_v54 = vsel %vm851_vm7, %v1359_v56, %v1289_v57  ;;  %v1390_v40 = vsel %vm851_vm7, %v1358_v31, %v1287_v46  ;;  %v350_v31 = vld [vmem:[#allocation2 + $0x1a7] sm:$0x1] }
 0x10f   : > { %592 = vrot.lane.b32.xlu1 %v525_v34, %s7275_s25  ;;  %6755 = vmatprep.mubr.msk.f32.mxu0 %vm1401_vm8, %v1390_v40  ;;  %368 = vst.msk [vmem:[#allocation2 + $0x1a9] sm:$0x1] %vm314_vm1, %v350_v31  ;;  %v544_v40 = vrot.slane %v416_v9, 1 }
 0x110   : > { %590 = vrot.lane.b32.xlu0 %v11202_v19, %s7275_s25  ;;  %6756 = vmatmul.mubr.msk.f32.gmra.mrb[24].mxu0 %vm1401_vm8, %v1391_v54 }
 0x111   : > { %v1117_v63 = vpop.permute.xlu1 %1116  ;;  %v1115_v39 = vpop.permute.xlu0 %1114 }
 0x112   : > { %v1361_v44 = vsel %vm258_vm0, %v11206_v5, %v1117_v63  ;;  %v1360_v51 = vsel %vm258_vm0, %v11207_v2, %v1115_v39  ;;  %v11220_v39 = vld [vmem:[#allocation79_spill] sm:$0xff] }
 0x113   : > { %769 = vrot.lane.b32.xlu1 %v702_v27, %s7274_s24  ;;  %v6367_v27 = vld [vmem:[%s10963_s1 + $0x20] sm:$0xff] }
 0x114   : > { %767 = vrot.lane.b32.xlu0 %v11204_v61, %s7274_s24  ;;  %v7039_v63 = vpack.c.bf16 %v6368_v32, %v6367_v27  ;;  %v11221_v61 = vld [vmem:[#allocation78_spill] sm:$0xff] }
 0x115   : > { %v1293_v11 = vpop.permute.xlu1 %1292  ;;  %v1291_v20 = vpop.permute.xlu0 %1290  ;;  %v545_v29 = vsel %vm465_vm3, %v11221_v61, %v544_v40 }
 0x116   : > { %v1393_v35 = vsel %vm851_vm7, %v1361_v44, %v1293_v11  ;;  %v1392_v45 = vsel %vm851_vm7, %v1360_v51, %v1291_v20  ;;  %v8316_v51 = vld [vmem:[#allocation2 + $0x38] sm:$0xff]  ;;  %v2054_v11 = vld [vmem:[#allocation2 + $0x40] sm:$0x3]  ;;  %7041 = vmatprep.subr.msk.bf16.mxu0 %vm7649_vm6, %v7039_v63 }
 0x117   : > { %596 = vrot.lane.b32.xlu1 %v530_v42, %s7275_s25  ;;  %6758 = vmatprep.mubr.msk.f32.mxu0 %vm1401_vm8, %v1392_v45  ;;  %v721_v42 = vrot.slane %v416_v9, 2  ;;  %v2151_v36 = vrot.slane %v2054_v11, 1  ;;  %v2325_v50 = vrot.slane %v8316_v51, 2 }
 0x118   : > { %594 = vrot.lane.b32.xlu0 %v11208_v1, %s7275_s25  ;;  %6759 = vmatmul.mubr.msk.f32.gmra.mrb[26].mxu0 %vm1401_vm8, %v1393_v35  ;;  %v8322_v35 = vld [vmem:[#allocation2 + $0x30] sm:$0xff]  ;;  %v2149_v1 = vrot.slane %v8316_v51, 1 }
 0x119   : > { %v1121_v10 = vpop.permute.xlu1 %1120  ;;  %v1119_v30 = vpop.permute.xlu0 %1118  ;;  %v2148_v0 = vrot.slane %v8322_v35, 1 }
 0x11a   : > { %v1363_v58 = vsel %vm258_vm0, %v11212_v55, %v1121_v10  ;;  %v1362_v62 = vsel %vm258_vm0, %v11213_v23, %v1119_v30  ;;  %v11224_v30 = vld [vmem:[#allocation82_spill] sm:$0xff] }
 0x11b   : > { %773 = vrot.lane.b32.xlu1 %v707_v43, %s7274_s24  ;;  %v2150_v23 = vsel %vm465_vm3, %v2148_v0, %v2149_v1 }
 0x11c   : > { %771 = vrot.lane.b32.xlu0 %v11210_v17, %s7274_s24  ;;  %v2152_v17 = vsel %vm465_vm3, %v2149_v1, %v2151_v36  ;;  %v2063_v1 = vld [vmem:[#allocation2 + $0x88] sm:$0x3] }
 0x11d   : > { %v1297_v25 = vpop.permute.xlu1 %1296  ;;  %v1295_v33 = vpop.permute.xlu0 %1294  ;;  %v7211_v36 = vld [vmem:[#allocation2 + $0x48] sm:$0xff] }
 0x11e   : > { %v1395_v13 = vsel %vm851_vm7, %v1363_v58, %v1297_v25  ;;  %v1394_v24 = vsel %vm851_vm7, %v1362_v62, %v1295_v33  ;;  %v2324_v62 = vrot.slane %v8322_v35, 2  ;;  %v8343_v25 = vld [vmem:[#allocation2 + $0x50] sm:$0xff]  ;;  %v2057_v33 = vld [vmem:[#allocation2 + $0x58] sm:$0x3] }
 0x11f   : > { %600 = vrot.lane.b32.xlu1 %v535_v53, %s7275_s25  ;;  %6761 = vmatprep.mubr.msk.f32.mxu0 %vm1401_vm8, %v1394_v24  ;;  %v2327_v53 = vrot.slane %v2054_v11, 2  ;;  %v7210_v11 = vld [vmem:[#allocation2 + $0x50] sm:$0xff] }
 0x120   : > { %598 = vrot.lane.b32.xlu0 %v11214_v28, %s7275_s25  ;;  %6762 = vmatmul.mubr.msk.f32.gmra.mrb[28].mxu0 %vm1401_vm8, %v1395_v13  ;;  %v2326_v38 = vsel %vm642_vm2, %v2324_v62, %v2325_v50 }
 0x121   : > { %v1125_v18 = vpop.permute.xlu1 %1124  ;;  %v1123_v8 = vpop.permute.xlu0 %1122  ;;  %v2328_v60 = vsel %vm642_vm2, %v2325_v50, %v2327_v53 }
 0x122   : > { %v1365_v34 = vsel %vm258_vm0, %v7980_v6, %v1125_v18  ;;  %v1364_v41 = vsel %vm258_vm0, %v7982_v21, %v1123_v8  ;;  %v11218_v6 = vld [vmem:[#allocation75_spill] sm:$0xff]  ;;  %v11219_v21 = vld [vmem:[#allocation74_spill] sm:$0xff]  ;;  %v2154_v18 = vrot.slane %v8343_v25, 1  ;;  %v2156_v8 = vrot.slane %v2057_v33, 1 }
 0x123   : > { %777 = vrot.lane.b32.xlu1 %v712_v15, %s7274_s24  ;;  %v717_v54 = vsel %vm642_vm2, %v11219_v21, %v716_v16  ;;  %v7209_v21 = vld [vmem:[#allocation2 + $0x30] sm:$0xff] }
 0x124   : > { %775 = vrot.lane.b32.xlu0 %v11216_v52, %s7274_s24 }
 0x125   : > { %v1301_v26 = vpop.permute.xlu1 %1300  ;;  %v1299_v56 = vpop.permute.xlu0 %1298 }
 0x126   : > { %v1397_v57 = vsel %vm851_vm7, %v1365_v34, %v1301_v26  ;;  %v1396_v46 = vsel %vm851_vm7, %v1364_v41, %v1299_v56  ;;  %v2157_v34 = vsel %vm465_vm3, %v2154_v18, %v2156_v8  ;;  %v2330_v41 = vrot.slane %v8343_v25, 2  ;;  %v7208_v56 = vld [vmem:[#allocation2 + $0x38] sm:$0xff] }
 0x127   : > { %604 = vrot.lane.b32.xlu1 %v540_v4, %s7275_s25  ;;  %6764 = vmatprep.mubr.msk.f32.mxu0 %vm1401_vm8, %v1396_v46  ;;  %v2153_v4 = vrot.slane %v8347_v49, 1  ;;  %v2332_v26 = vrot.slane %v2057_v33, 2  ;;  %v2329_v46 = vrot.slane %v8347_v49, 2  ;;  %v8409_v8 = vld [vmem:[#allocation2 + $0x98] sm:$0xff] }
 0x128   : > { %602 = vrot.lane.b32.xlu0 %v11218_v6, %s7275_s25  ;;  %6765 = vmatmul.mubr.msk.f32.gmra.mrb[30].mxu0 %vm1401_vm8, %v1397_v57  ;;  %v2060_v6 = vld [vmem:[#allocation2 + $0x70] sm:$0x3] }
 0x129   : > { %v549_v19 = vpop.permute.xlu1 %548  ;;  %v547_v37 = vpop.permute.xlu0 %546  ;;  %v2155_v57 = vsel %vm465_vm3, %v2153_v4, %v2154_v18  ;;  %v2333_v32 = vsel %vm642_vm2, %v2330_v41, %v2332_v26 }
 0x12a   : > { %v820_v3 = vsel %vm258_vm0, %v8012_v22, %v549_v19  ;;  %v819_v5 = vsel %vm258_vm0, %v8014_v7, %v547_v37  ;;  %v11222_v22 = vld [vmem:[#allocation81_spill] sm:$0xff]  ;;  %v11223_v7 = vld [vmem:[#allocation80_spill] sm:$0xff] }
 0x12b   : > { %781 = vrot.lane.b32.xlu1 %v717_v54, %s7274_s24  ;;  %v722_v45 = vsel %vm642_vm2, %v11223_v7, %v721_v42  ;;  %v8369_v37 = vld [vmem:[#allocation2 + $0x60] sm:$0xff] }
 0x12c   : > { %779 = vrot.lane.b32.xlu0 %v11220_v39, %s7274_s24  ;;  %v2161_v39 = vrot.slane %v2060_v6, 1  ;;  %v2158_v42 = vrot.slane %v8369_v37, 1  ;;  %v2334_v7 = vrot.slane %v8369_v37, 2 }
 0x12d   : > { %v726_v44 = vpop.permute.xlu1 %725  ;;  %v724_v2 = vpop.permute.xlu0 %723 }
 0x12e   : > { %v853_v20 = vsel %vm851_vm7, %v820_v3, %v726_v44  ;;  %v852_v59 = vsel %vm851_vm7, %v819_v5, %v724_v2  ;;  %v2335_v44 = vrot.slane %v8365_v12, 2  ;;  %v2337_v2 = vrot.slane %v2060_v6, 2 }
 0x12f   : > { %608 = vrot.lane.b32.xlu1 %v545_v29, %s7275_s25  ;;  %6771 = vmatprep.mubr.msk.f32.mxu0 %vm1401_vm8, %v852_v59  ;;  %v2331_v29 = vsel %vm642_vm2, %v2329_v46, %v2330_v41  ;;  %v8413_v41 = vld [vmem:[#allocation2 + $0x90] sm:$0xff] }
 0x130   : > { %606 = vrot.lane.b32.xlu0 %v11222_v22, %s7275_s25  ;;  %6772 = vmatmul.mubr.msk.f32.vlgmr.msra.gmra.mrb[0].mxu0 %vm1401_vm8, %v853_v20  ;;  %v2338_v50 = vsel %vm642_vm2, %v2335_v44, %v2337_v2  ;;  %v2168_v6 = vrot.slane %v8413_v41, 1 }
 0x131   : > { %v553_v43 = vpop.permute.xlu1 %552  ;;  %7044 = vmatpush3.bf16.msk.msra.mxu0 %vm7649_vm6, %v7039_v63  ;;  %v2159_v63 = vrot.slane %v8365_v12, 1 }
 0x132   : > { %v551_v10 = vpop.permute.xlu0 %550  ;;  %v822_v55 = vsel %vm258_vm0, %v7206_v14, %v553_v43  ;;  %v2166_v14 = vrot.slane %v2063_v1, 1 }
 0x133   : > { %785 = vrot.lane.b32.xlu1 %v722_v45, %s7274_s24  ;;  %v821_v13 = vsel %vm258_vm0, %v7207_v47, %v551_v10  ;;  %v2162_v5 = vsel %vm465_vm3, %v2159_v63, %v2161_v39  ;;  %v2160_v22 = vsel %vm465_vm3, %v2158_v42, %v2159_v63  ;;  %v8387_v45 = vld [vmem:[#allocation2 + $0x80] sm:$0xff]  ;;  %v2069_v42 = vld [vmem:[#allocation2 + $0xb8] sm:$0x3] }
 0x134   : > { %783 = vrot.lane.b32.xlu0 %v11224_v30, %s7274_s24  ;;  %v8391_v30 = vld [vmem:[#allocation2 + $0x78] sm:$0xff]  ;;  %v2164_v53 = vrot.slane %v8387_v45, 1  ;;  %v2340_v47 = vrot.slane %v8387_v45, 2 }
 0x135   : > { %v730_v58 = vpop.permute.xlu1 %729  ;;  %v2339_v18 = vrot.slane %v8391_v30, 2 }
 0x136   : > { %v855_v24 = vsel %vm851_vm7, %v822_v55, %v730_v58  ;;  %v728_v28 = vpop.permute.xlu0 %727  ;;  %v2336_v58 = vsel %vm642_vm2, %v2334_v7, %v2335_v44  ;;  %v2167_v33 = vsel %vm465_vm3, %v2164_v53, %v2166_v14  ;;  %v2176_v7 = vrot.slane %v2069_v42, 1 }
 0x137   : > { %v854_v15 = vsel %vm851_vm7, %v821_v13, %v728_v28  ;;  %2230 = vrot.lane.b32.xlu1 %v2152_v17, %s7275_s25  ;;  %v2342_v13 = vrot.slane %v2063_v1, 2  ;;  %v2341_v46 = vsel %vm642_vm2, %v2339_v18, %v2340_v47 }
 0x138   : > { %2228 = vrot.lane.b32.xlu0 %v2150_v23, %s7275_s25  ;;  %6774 = vmatprep.mubr.msk.f32.mxu0 %vm1401_vm8, %v854_v15  ;;  %v2163_v23 = vrot.slane %v8391_v30, 1 }
 0x139   : > { %6775 = vmatmul.mubr.msk.f32.gmra.mrb[2].mxu0 %vm1401_vm8, %v855_v24  ;;  %v557_v52 = vpop.permute.xlu1 %556  ;;  %v7212_v24 = vld [vmem:[#allocation2 + $0x68] sm:$0xff] }
 0x13a   : > { %v555_v16 = vpop.permute.xlu0 %554  ;;  %v824_v9 = vsel %vm258_vm0, %v7208_v56, %v557_v52  ;;  %v2066_v52 = vld [vmem:[#allocation2 + $0xa0] sm:$0x3]  ;;  %v2343_v56 = vsel %vm642_vm2, %v2340_v47, %v2342_v13  ;;  %v7217_v47 = vld [vmem:[#allocation2 + $0x90] sm:$0xff] }
 0x13b   : > { %2406 = vrot.lane.b32.xlu1 %v2328_v60, %s7274_s24  ;;  %v823_v54 = vsel %vm258_vm0, %v7209_v21, %v555_v16  ;;  %v2165_v60 = vsel %vm465_vm3, %v2163_v23, %v2164_v53  ;;  %v7216_v53 = vld [vmem:[#allocation2 + $0x98] sm:$0xff] }
 0x13c   : > { %2404 = vrot.lane.b32.xlu0 %v2326_v38, %s7274_s24  ;;  %v7213_v38 = vld [vmem:[#allocation2 + $0x60] sm:$0xff] }
 0x13d   : > { %v734_v31 = vpop.permute.xlu1 %733 }
 0x13e   : > { %v857_v40 = vsel %vm851_vm7, %v824_v9, %v734_v31  ;;  %v732_v19 = vpop.permute.xlu0 %731  ;;  %v2169_v9 = vrot.slane %v8409_v8, 1  ;;  %v2171_v31 = vrot.slane %v2066_v52, 1 }
 0x13f   : > { %v856_v27 = vsel %vm851_vm7, %v823_v54, %v732_v19  ;;  %2234 = vrot.lane.b32.xlu1 %v2157_v34, %s7275_s25  ;;  %v2347_v19 = vrot.slane %v2066_v52, 2 }
 0x140   : > { %2232 = vrot.lane.b32.xlu0 %v2155_v57, %s7275_s25  ;;  %6777 = vmatprep.mubr.msk.f32.mxu0 %vm1401_vm8, %v856_v27  ;;  %v2172_v54 = vsel %vm465_vm3, %v2169_v9, %v2171_v31  ;;  %v7214_v27 = vld [vmem:[#allocation2 + $0x80] sm:$0xff]  ;;  %v2170_v39 = vsel %vm465_vm3, %v2168_v6, %v2169_v9 }
 0x141   : > { %6778 = vmatmul.mubr.msk.f32.gmra.mrb[4].mxu0 %vm1401_vm8, %v857_v40  ;;  %v561_v61 = vpop.permute.xlu1 %560  ;;  %v2345_v40 = vrot.slane %v8409_v8, 2 }
 0x142   : > { %v559_v3 = vpop.permute.xlu0 %558  ;;  %v826_v20 = vsel %vm258_vm0, %v7210_v11, %v561_v61  ;;  %v2344_v61 = vrot.slane %v8413_v41, 2  ;;  %v8435_v11 = vld [vmem:[#allocation2 + $0xa8] sm:$0xff] }
 0x143   : > { %2410 = vrot.lane.b32.xlu1 %v2333_v32, %s7274_s24  ;;  %v825_v43 = vsel %vm258_vm0, %v7211_v36, %v559_v3  ;;  %v7215_v3 = vld [vmem:[#allocation2 + $0x78] sm:$0xff]  ;;  %v2349_v23 = vrot.slane %v8435_v11, 2 }
 0x144   : > { %2408 = vrot.lane.b32.xlu0 %v2331_v29, %s7274_s24  ;;  %v8431_v29 = vld [vmem:[#allocation2 + $0xb0] sm:$0xff]  ;;  %v2346_v36 = vsel %vm642_vm2, %v2344_v61, %v2345_v40  ;;  %v8479_v61 = vld [vmem:[#allocation2 + $0xd8] sm:$0xff] }
 0x145   : > { %v738_v59 = vpop.permute.xlu1 %737 }
 0x146   : > { %v859_v0 = vsel %vm851_vm7, %v826_v20, %v738_v59  ;;  %v736_v10 = vpop.permute.xlu0 %735  ;;  %v2348_v59 = vsel %vm642_vm2, %v2345_v40, %v2347_v19  ;;  %v8475_v40 = vld [vmem:[#allocation2 + $0xe0] sm:$0xff]  ;;  %v2075_v19 = vld [vmem:[#allocation2 + $0xe8] sm:$0x3] }
 0x147   : > { %v858_v17 = vsel %vm851_vm7, %v825_v43, %v736_v10  ;;  %2238 = vrot.lane.b32.xlu1 %v2162_v5, %s7275_s25  ;;  %v2173_v43 = vrot.slane %v8435_v11, 1 }
 0x148   : > { %2236 = vrot.lane.b32.xlu0 %v2160_v22, %s7275_s25  ;;  %6780 = vmatprep.mubr.msk.f32.mxu0 %vm1401_vm8, %v858_v17  ;;  %v2174_v22 = vrot.slane %v8431_v29, 1  ;;  %v2350_v17 = vrot.slane %v8431_v29, 2 }
 0x149   : > { %6781 = vmatmul.mubr.msk.f32.gmra.mrb[6].mxu0 %vm1401_vm8, %v859_v0  ;;  %v565_v55 = vpop.permute.xlu1 %564 }
 0x14a   : > { %v563_v62 = vpop.permute.xlu0 %562  ;;  %v828_v28 = vsel %vm258_vm0, %v7212_v24, %v565_v55  ;;  %v2177_v10 = vsel %vm465_vm3, %v2174_v22, %v2176_v7 }
 0x14b   : > { %2414 = vrot.lane.b32.xlu1 %v2338_v50, %s7274_s24  ;;  %v827_v4 = vsel %vm258_vm0, %v7213_v38, %v563_v62  ;;  %v2352_v50 = vrot.slane %v2069_v42, 2  ;;  %v8453_v62 = vld [vmem:[#allocation2 + $0xc8] sm:$0xff] }
 0x14c   : > { %2412 = vrot.lane.b32.xlu0 %v2336_v58, %s7274_s24  ;;  %v2175_v58 = vsel %vm465_vm3, %v2173_v43, %v2174_v22  ;;  %v2179_v52 = vrot.slane %v8453_v62, 1  ;;  %v2355_v9 = vrot.slane %v8453_v62, 2  ;;  %v7220_v43 = vld [vmem:[#allocation2 + $0xc8] sm:$0xff] }
 0x14d   : > { %v742_v15 = vpop.permute.xlu1 %741  ;;  %v2353_v18 = vsel %vm642_vm2, %v2350_v17, %v2352_v50  ;;  %v2359_v50 = vrot.slane %v8479_v61, 2 }
 0x14e   : > { %v861_v16 = vsel %vm851_vm7, %v828_v28, %v742_v15  ;;  %v740_v34 = vpop.permute.xlu0 %739  ;;  %v8457_v15 = vld [vmem:[#allocation2 + $0xc0] sm:$0xff] }
 0x14f   : > { %v860_v26 = vsel %vm851_vm7, %v827_v4, %v740_v34  ;;  %2242 = vrot.lane.b32.xlu1 %v2167_v33, %s7275_s25  ;;  %v2072_v33 = vld [vmem:[#allocation2 + $0xd0] sm:$0x3]  ;;  %v2178_v34 = vrot.slane %v8457_v15, 1 }
 0x150   : > { %2240 = vrot.lane.b32.xlu0 %v2165_v60, %s7275_s25  ;;  %6783 = vmatprep.mubr.msk.f32.mxu0 %vm1401_vm8, %v860_v26  ;;  %v2181_v38 = vrot.slane %v2072_v33, 1  ;;  %v2357_v31 = vrot.slane %v2072_v33, 2 }
 0x151   : > { %6784 = vmatmul.mubr.msk.f32.gmra.mrb[8].mxu0 %vm1401_vm8, %v861_v16  ;;  %v569_v57 = vpop.permute.xlu1 %568  ;;  %v2351_v16 = vsel %vm642_vm2, %v2349_v23, %v2350_v17 }
 0x152   : > { %v567_v21 = vpop.permute.xlu0 %566  ;;  %v830_v32 = vsel %vm258_vm0, %v7214_v27, %v569_v57  ;;  %v7218_v57 = vld [vmem:[#allocation2 + $0xb0] sm:$0xff]  ;;  %v7219_v27 = vld [vmem:[#allocation2 + $0xa8] sm:$0xff] }
 0x153   : > { %2418 = vrot.lane.b32.xlu1 %v2343_v56, %s7274_s24  ;;  %v829_v5 = vsel %vm258_vm0, %v7215_v3, %v567_v21  ;;  %v2182_v56 = vsel %vm465_vm3, %v2179_v52, %v2181_v38  ;;  %v2180_v21 = vsel %vm465_vm3, %v2178_v34, %v2179_v52  ;;  %v2358_v3 = vsel %vm642_vm2, %v2355_v9, %v2357_v31 }
 0x154   : > { %2416 = vrot.lane.b32.xlu0 %v2341_v46, %s7274_s24 }
 0x155   : > { %v746_v63 = vpop.permute.xlu1 %745 }
 0x156   : > { %v863_v44 = vsel %vm851_vm7, %v830_v32, %v746_v63  ;;  %v744_v2 = vpop.permute.xlu0 %743 }
 0x157   : > { %v862_v20 = vsel %vm851_vm7, %v829_v5, %v744_v2  ;;  %2246 = vrot.lane.b32.xlu1 %v2172_v54, %s7275_s25  ;;  %v2354_v54 = vrot.slane %v8457_v15, 2  ;;  %v2184_v5 = vrot.slane %v8475_v40, 1 }
 0x158   : > { %2244 = vrot.lane.b32.xlu0 %v2170_v39, %s7275_s25  ;;  %6786 = vmatprep.mubr.msk.f32.mxu0 %vm1401_vm8, %v862_v20 }
 0x159   : > { %6787 = vmatmul.mubr.msk.f32.gmra.mrb[10].mxu0 %vm1401_vm8, %v863_v44  ;;  %v573_v1 = vpop.permute.xlu1 %572  ;;  %v2186_v44 = vrot.slane %v2075_v19, 1  ;;  %v2356_v20 = vsel %vm642_vm2, %v2354_v54, %v2355_v9  ;;  %v7223_v54 = vld [vmem:[#allocation2 + $0xd8] sm:$0xff] }
 0x15a   : > { %v571_v0 = vpop.permute.xlu0 %570  ;;  %v832_v14 = vsel %vm258_vm0, %v7216_v53, %v573_v1  ;;  %v2360_v1 = vrot.slane %v8475_v40, 2  ;;  %v8497_v53 = vld [vmem:[#allocation2 + $0xf8] sm:$0xff] }
 0x15b   : > { %2422 = vrot.lane.b32.xlu1 %v2348_v59, %s7274_s24  ;;  %v831_v13 = vsel %vm258_vm0, %v7217_v47, %v571_v0  ;;  %v2183_v59 = vrot.slane %v8479_v61, 1  ;;  %v2187_v7 = vsel %vm465_vm3, %v2184_v5, %v2186_v44  ;;  %v8501_v47 = vld [vmem:[#allocation2 + $0xf0] sm:$0xff]  ;;  %v2365_v34 = vrot.slane %v8497_v53, 2 }
 0x15c   : > { %2420 = vrot.lane.b32.xlu0 %v2346_v36, %s7274_s24  ;;  %v2362_v36 = vrot.slane %v2075_v19, 2  ;;  %v2361_v52 = vsel %vm642_vm2, %v2359_v50, %v2360_v1  ;;  %v2188_v38 = vrot.slane %v8501_v47, 1  ;;  %v8541_v50 = vld [vmem:[#allocation2 + $0x128] sm:$0xff] }
 0x15d   : > { %v750_v55 = vpop.permute.xlu1 %749  ;;  %v2185_v17 = vsel %vm465_vm3, %v2183_v59, %v2184_v5 }
 0x15e   : > { %v865_v24 = vsel %vm851_vm7, %v832_v14, %v750_v55  ;;  %v748_v28 = vpop.permute.xlu0 %747  ;;  %v2078_v14 = vld [vmem:[#allocation2 + $0x100] sm:$0x3] }
 0x15f   : > { %v864_v60 = vsel %vm851_vm7, %v831_v13, %v748_v28  ;;  %2250 = vrot.lane.b32.xlu1 %v2177_v10, %s7275_s25  ;;  %v7221_v55 = vld [vmem:[#allocation2 + $0xc0] sm:$0xff]  ;;  %v2189_v28 = vrot.slane %v8497_v53, 1 }
 0x160   : > { %2248 = vrot.lane.b32.xlu0 %v2175_v58, %s7275_s25  ;;  %6789 = vmatprep.mubr.msk.f32.mxu0 %vm1401_vm8, %v864_v60  ;;  %v2191_v60 = vrot.slane %v2078_v14, 1 }
 0x161   : > { %6790 = vmatmul.mubr.msk.f32.gmra.mrb[12].mxu0 %vm1401_vm8, %v865_v24  ;;  %v577_v4 = vpop.permute.xlu1 %576  ;;  %v2363_v24 = vsel %vm642_vm2, %v2360_v1, %v2362_v36  ;;  %v7224_v36 = vld [vmem:[#allocation2 + $0xf8] sm:$0xff] }
 0x162   : > { %v575_v26 = vpop.permute.xlu0 %574  ;;  %v834_v46 = vsel %vm258_vm0, %v7218_v57, %v577_v4  ;;  %v2190_v57 = vsel %vm465_vm3, %v2188_v38, %v2189_v28 }
 0x163   : > { %2426 = vrot.lane.b32.xlu1 %v2353_v18, %s7274_s24  ;;  %v833_v32 = vsel %vm258_vm0, %v7219_v27, %v575_v26  ;;  %v2367_v26 = vrot.slane %v2078_v14, 2  ;;  %v2084_v14 = vld [vmem:[#allocation2 + $0x130] sm:$0x3] }
 0x164   : > { %2424 = vrot.lane.b32.xlu0 %v2351_v16, %s7274_s24  ;;  %v2192_v16 = vsel %vm465_vm3, %v2189_v28, %v2191_v60  ;;  %v2199_v60 = vrot.slane %v8541_v50, 1 }
 0x165   : > { %v754_v6 = vpop.permute.xlu1 %753 }
 0x166   : > { %v867_v63 = vsel %vm851_vm7, %v834_v46, %v754_v6  ;;  %v752_v39 = vpop.permute.xlu0 %751  ;;  %v2364_v46 = vrot.slane %v8501_v47, 2  ;;  %v8519_v6 = vld [vmem:[#allocation2 + $0x110] sm:$0xff] }
 0x167   : > { %v866_v42 = vsel %vm851_vm7, %v833_v32, %v752_v39  ;;  %2254 = vrot.lane.b32.xlu1 %v2182_v56, %s7275_s25  ;;  %v7222_v56 = vld [vmem:[#allocation2 + $0xe0] sm:$0xff] }
 0x168   : > { %2252 = vrot.lane.b32.xlu0 %v2180_v21, %s7275_s25  ;;  %6792 = vmatprep.mubr.msk.f32.mxu0 %vm1401_vm8, %v866_v42  ;;  %v2081_v21 = vld [vmem:[#allocation2 + $0x118] sm:$0x3]  ;;  %v2368_v42 = vsel %vm642_vm2, %v2365_v34, %v2367_v26  ;;  %v2375_v26 = vrot.slane %v8541_v50, 2 }
 0x169   : > { %6793 = vmatmul.mubr.msk.f32.gmra.mrb[14].mxu0 %vm1401_vm8, %v867_v63  ;;  %v581_v2 = vpop.permute.xlu1 %580  ;;  %v8523_v63 = vld [vmem:[#allocation2 + $0x108] sm:$0xff]  ;;  %v2196_v5 = vrot.slane %v2081_v21, 1  ;;  %v2372_v1 = vrot.slane %v2081_v21, 2 }
 0x16a   : > { %v579_v22 = vpop.permute.xlu0 %578  ;;  %v836_v0 = vsel %vm258_vm0, %v7220_v43, %v581_v2  ;;  %v2366_v2 = vsel %vm642_vm2, %v2364_v46, %v2365_v34 }
 0x16b   : > { %2430 = vrot.lane.b32.xlu1 %v2358_v3, %s7274_s24  ;;  %v835_v58 = vsel %vm258_vm0, %v7221_v55, %v579_v22  ;;  %v2194_v3 = vrot.slane %v8519_v6, 1  ;;  %v7225_v55 = vld [vmem:[#allocation2 + $0xf0] sm:$0xff] }
 0x16c   : > { %2428 = vrot.lane.b32.xlu0 %v2356_v20, %s7274_s24  ;;  %v2193_v20 = vrot.slane %v8523_v63, 1 }
 0x16d   : > { %v758_v10 = vpop.permute.xlu1 %757  ;;  %v2197_v22 = vsel %vm465_vm3, %v2194_v3, %v2196_v5 }
 0x16e   : > { %v869_v23 = vsel %vm851_vm7, %v836_v0, %v758_v10  ;;  %v756_v33 = vpop.permute.xlu0 %755  ;;  %v2195_v10 = vsel %vm465_vm3, %v2193_v20, %v2194_v3  ;;  %v8567_v3 = vld [vmem:[#allocation2 + $0x138] sm:$0xff] }
 0x16f   : > { %v868_v13 = vsel %vm851_vm7, %v835_v58, %v756_v33  ;;  %2258 = vrot.lane.b32.xlu1 %v2187_v7, %s7275_s25  ;;  %v2370_v7 = vrot.slane %v8519_v6, 2 }
 0x170   : > { %2256 = vrot.lane.b32.xlu0 %v2185_v17, %s7275_s25  ;;  %6795 = vmatprep.mubr.msk.f32.mxu0 %vm1401_vm8, %v868_v13  ;;  %v2369_v17 = vrot.slane %v8523_v63, 2  ;;  %v8545_v13 = vld [vmem:[#allocation2 + $0x120] sm:$0xff] }
 0x171   : > { %6796 = vmatmul.mubr.msk.f32.gmra.mrb[16].mxu0 %vm1401_vm8, %v869_v23  ;;  %v585_v18 = vpop.permute.xlu1 %584  ;;  %v2373_v28 = vsel %vm642_vm2, %v2370_v7, %v2372_v1  ;;  %v2374_v21 = vrot.slane %v8545_v13, 2 }
 0x172   : > { %v583_v4 = vpop.permute.xlu0 %582  ;;  %v838_v9 = vsel %vm258_vm0, %v7222_v56, %v585_v18  ;;  %v2201_v18 = vrot.slane %v2084_v14, 1  ;;  %v2371_v38 = vsel %vm642_vm2, %v2369_v17, %v2370_v7  ;;  %v2377_v56 = vrot.slane %v2084_v14, 2 }
 0x173   : > { %2434 = vrot.lane.b32.xlu1 %v2363_v24, %s7274_s24  ;;  %v837_v19 = vsel %vm258_vm0, %v7223_v54, %v583_v4  ;;  %v2198_v4 = vrot.slane %v8545_v13, 1  ;;  %v8563_v54 = vld [vmem:[#allocation2 + $0x140] sm:$0xff]  ;;  %v2203_v7 = vrot.slane %v8567_v3, 1 }
 0x174   : > { %2432 = vrot.lane.b32.xlu0 %v2361_v52, %s7274_s24  ;;  %v2202_v34 = vsel %vm465_vm3, %v2199_v60, %v2201_v18 }
 0x175   : > { %v762_v31 = vpop.permute.xlu1 %761  ;;  %v2200_v46 = vsel %vm465_vm3, %v2198_v4, %v2199_v60 }
 0x176   : > { %v871_v27 = vsel %vm851_vm7, %v838_v9, %v762_v31  ;;  %v760_v32 = vpop.permute.xlu0 %759  ;;  %v7226_v9 = vld [vmem:[#allocation2 + $0x110] sm:$0xff] }
 0x177   : > { %v870_v39 = vsel %vm851_vm7, %v837_v19, %v760_v32  ;;  %2262 = vrot.lane.b32.xlu1 %v2192_v16, %s7275_s25  ;;  %v2087_v19 = vld [vmem:[#allocation2 + $0x148] sm:$0x3] }
 0x178   : > { %2260 = vrot.lane.b32.xlu0 %v2190_v57, %s7275_s25  ;;  %6798 = vmatprep.mubr.msk.f32.mxu0 %vm1401_vm8, %v870_v39  ;;  %v2206_v20 = vrot.slane %v2087_v19, 1 }
 0x179   : > { %6799 = vmatmul.mubr.msk.f32.gmra.mrb[18].mxu0 %vm1401_vm8, %v871_v27  ;;  %v589_v44 = vpop.permute.xlu1 %588  ;;  %v7227_v27 = vld [vmem:[#allocation2 + $0x108] sm:$0xff] }
 0x17a   : > { %v587_v59 = vpop.permute.xlu0 %586  ;;  %v840_v43 = vsel %vm258_vm0, %v7224_v36, %v589_v44  ;;  %v2378_v44 = vsel %vm642_vm2, %v2375_v26, %v2377_v56 }
 0x17b   : > { %2438 = vrot.lane.b32.xlu1 %v2368_v42, %s7274_s24  ;;  %v839_v58 = vsel %vm258_vm0, %v7225_v55, %v587_v59 }
 0x17c   : > { %2436 = vrot.lane.b32.xlu0 %v2366_v2, %s7274_s24  ;;  %v2204_v2 = vrot.slane %v8563_v54, 1 }
 0x17d   : > { %v766_v0 = vpop.permute.xlu1 %765 }
 0x17e   : > { %v873_v23 = vsel %vm851_vm7, %v840_v43, %v766_v0  ;;  %v764_v33 = vpop.permute.xlu0 %763  ;;  %v2207_v36 = vsel %vm465_vm3, %v2204_v2, %v2206_v20  ;;  %v2380_v43 = vrot.slane %v8563_v54, 2  ;;  %v2382_v0 = vrot.slane %v2087_v19, 2  ;;  %v7230_v19 = vld [vmem:[#allocation2 + $0x140] sm:$0xff] }
 0x17f   : > { %v872_v24 = vsel %vm851_vm7, %v839_v58, %v764_v33  ;;  %2266 = vrot.lane.b32.xlu1 %v2197_v22, %s7275_s25  ;;  %v2376_v22 = vsel %vm642_vm2, %v2374_v21, %v2375_v26  ;;  %v2205_v55 = vsel %vm465_vm3, %v2203_v7, %v2204_v2  ;;  %v2379_v58 = vrot.slane %v8567_v3, 2  ;;  %v2090_v33 = vld [vmem:[#allocation2 + $0x160] sm:$0x3]  ;;  %v7231_v2 = vld [vmem:[#allocation2 + $0x138] sm:$0xff]  ;;  %v8611_v7 = vld [vmem:[#allocation2 + $0x168] sm:$0xff] }
 0x180   : > { %2264 = vrot.lane.b32.xlu0 %v2195_v10, %s7275_s25  ;;  %6801 = vmatprep.mubr.msk.f32.mxu0 %vm1401_vm8, %v872_v24  ;;  %v7228_v10 = vld [vmem:[#allocation2 + $0x128] sm:$0xff]  ;;  %v7229_v24 = vld [vmem:[#allocation2 + $0x120] sm:$0xff]  ;;  %v2383_v4 = vsel %vm642_vm2, %v2380_v43, %v2382_v0  ;;  %v2387_v21 = vrot.slane %v2090_v33, 2 }
 0x181   : > { %6802 = vmatmul.mubr.msk.f32.gmra.mrb[20].mxu0 %vm1401_vm8, %v873_v23  ;;  %v593_v52 = vpop.permute.xlu1 %592  ;;  %v8585_v23 = vld [vmem:[#allocation2 + $0x158] sm:$0xff]  ;;  %v2381_v56 = vsel %vm642_vm2, %v2379_v58, %v2380_v43 }
 0x182   : > { %v591_v16 = vpop.permute.xlu0 %590  ;;  %v842_v31 = vsel %vm258_vm0, %v7226_v9, %v593_v52  ;;  %v8589_v52 = vld [vmem:[#allocation2 + $0x150] sm:$0xff] }
 0x183   : > { %2442 = vrot.lane.b32.xlu1 %v2373_v28, %s7274_s24  ;;  %v841_v32 = vsel %vm258_vm0, %v7227_v27, %v591_v16  ;;  %v2209_v16 = vrot.slane %v8585_v23, 1  ;;  %v2208_v9 = vrot.slane %v8589_v52, 1 }
 0x184   : > { %2440 = vrot.lane.b32.xlu0 %v2371_v38, %s7274_s24 }
 0x185   : > { %v770_v57 = vpop.permute.xlu1 %769 }
 0x186   : > { %v875_v39 = vsel %vm851_vm7, %v842_v31, %v770_v57  ;;  %v768_v42 = vpop.permute.xlu0 %767 }
 0x187   : > { %v874_v5 = vsel %vm851_vm7, %v841_v32, %v768_v42  ;;  %2270 = vrot.lane.b32.xlu1 %v2202_v34, %s7275_s25  ;;  %v2211_v34 = vrot.slane %v2090_v33, 1  ;;  %v2384_v42 = vrot.slane %v8589_v52, 2 }
 0x188   : > { %2268 = vrot.lane.b32.xlu0 %v2200_v46, %s7275_s25  ;;  %6804 = vmatprep.mubr.msk.f32.mxu0 %vm1401_vm8, %v874_v5  ;;  %v2385_v46 = vrot.slane %v8585_v23, 2  ;;  %v8607_v5 = vld [vmem:[#allocation2 + $0x170] sm:$0xff] }
 0x189   : > { %6805 = vmatmul.mubr.msk.f32.gmra.mrb[22].mxu0 %vm1401_vm8, %v875_v39  ;;  %v597_v59 = vpop.permute.xlu1 %596  ;;  %v2212_v57 = vsel %vm465_vm3, %v2209_v16, %v2211_v34  ;;  %v2210_v39 = vsel %vm465_vm3, %v2208_v9, %v2209_v16  ;;  %v2214_v43 = vrot.slane %v8607_v5, 1  ;;  %v2390_v33 = vrot.slane %v8607_v5, 2  ;;  %v8629_v16 = vld [vmem:[#allocation2 + $0x188] sm:$0xff]  ;;  %v2096_v34 = vld [vmem:[#allocation2 + $0x190] sm:$0x3] }
 0x18a   : > { %v595_v1 = vpop.permute.xlu0 %594  ;;  %v844_v17 = vsel %vm258_vm0, %v7228_v10, %v597_v59 }
 0x18b   : > { %2446 = vrot.lane.b32.xlu1 %v2378_v44, %s7274_s24  ;;  %v843_v28 = vsel %vm258_vm0, %v7229_v24, %v595_v1  ;;  %v2093_v44 = vld [vmem:[#allocation2 + $0x178] sm:$0x3] }
 0x18c   : > { %2444 = vrot.lane.b32.xlu0 %v2376_v22, %s7274_s24  ;;  %v2216_v0 = vrot.slane %v2093_v44, 1  ;;  %v2392_v24 = vrot.slane %v2093_v44, 2 }
 0x18d   : > { %v774_v14 = vpop.permute.xlu1 %773 }
 0x18e   : > { %v877_v60 = vsel %vm851_vm7, %v844_v17, %v774_v14  ;;  %v772_v18 = vpop.permute.xlu0 %771  ;;  %v2386_v17 = vsel %vm642_vm2, %v2384_v42, %v2385_v46  ;;  %v2213_v14 = vrot.slane %v8611_v7, 1  ;;  %v2217_v58 = vsel %vm465_vm3, %v2214_v43, %v2216_v0 }
 0x18f   : > { %v876_v38 = vsel %vm851_vm7, %v843_v28, %v772_v18  ;;  %2274 = vrot.lane.b32.xlu1 %v2207_v36, %s7275_s25  ;;  %v2388_v36 = vsel %vm642_vm2, %v2385_v46, %v2387_v21  ;;  %v7232_v28 = vld [vmem:[#allocation2 + $0x158] sm:$0xff]  ;;  %v2393_v21 = vsel %vm642_vm2, %v2390_v33, %v2392_v24 }
 0x190   : > { %2272 = vrot.lane.b32.xlu0 %v2205_v55, %s7275_s25  ;;  %6807 = vmatprep.mubr.msk.f32.mxu0 %vm1401_vm8, %v876_v38  ;;  %v2215_v38 = vsel %vm465_vm3, %v2213_v14, %v2214_v43  ;;  %v7235_v14 = vld [vmem:[#allocation2 + $0x168] sm:$0xff]  ;;  %v8655_v24 = vld [vmem:[#allocation2 + $0x198] sm:$0xff] }
 0x191   : > { %6808 = vmatmul.mubr.msk.f32.gmra.mrb[24].mxu0 %vm1401_vm8, %v877_v60  ;;  %v601_v26 = vpop.permute.xlu1 %600 }
 0x192   : > { %v599_v31 = vpop.permute.xlu0 %598  ;;  %v846_v27 = vsel %vm258_vm0, %v7230_v19, %v601_v26  ;;  %v7233_v26 = vld [vmem:[#allocation2 + $0x150] sm:$0xff]  ;;  %v2219_v19 = vrot.slane %v8629_v16, 1 }
 0x193   : > { %2450 = vrot.lane.b32.xlu1 %v2383_v4, %s7274_s24  ;;  %v845_v20 = vsel %vm258_vm0, %v7231_v2, %v599_v31  ;;  %v2389_v4 = vrot.slane %v8611_v7, 2 }
 0x194   : > { %2448 = vrot.lane.b32.xlu0 %v2381_v56, %s7274_s24 }
 0x195   : > { %v778_v32 = vpop.permute.xlu1 %777 }
 0x196   : > { %v879_v59 = vsel %vm851_vm7, %v846_v27, %v778_v32  ;;  %v776_v22 = vpop.permute.xlu0 %775  ;;  %v2221_v27 = vrot.slane %v2096_v34, 1 }
 0x197   : > { %v878_v1 = vsel %vm851_vm7, %v845_v20, %v776_v22  ;;  %2278 = vrot.lane.b32.xlu1 %v2212_v57, %s7275_s25  ;;  %v8633_v57 = vld [vmem:[#allocation2 + $0x180] sm:$0xff]  ;;  %v2395_v20 = vrot.slane %v8629_v16, 2  ;;  %v7234_v22 = vld [vmem:[#allocation2 + $0x170] sm:$0xff] }
 0x198   : > { %2276 = vrot.lane.b32.xlu0 %v2210_v39, %s7275_s25  ;;  %6810 = vmatprep.mubr.msk.f32.mxu0 %vm1401_vm8, %v878_v1  ;;  %v2391_v39 = vsel %vm642_vm2, %v2389_v4, %v2390_v33  ;;  %v2218_v42 = vrot.slane %v8633_v57, 1  ;;  %v2222_v2 = vsel %vm465_vm3, %v2219_v19, %v2221_v27  ;;  %v2394_v0 = vrot.slane %v8633_v57, 2 }
 0x199   : > { %6811 = vmatmul.mubr.msk.f32.gmra.mrb[26].mxu0 %vm1401_vm8, %v879_v59  ;;  %v605_v10 = vpop.permute.xlu1 %604  ;;  %v2397_v59 = vrot.slane %v2096_v34, 2 }
 0x19a   : > { %v603_v55 = vpop.permute.xlu0 %602  ;;  %v848_v60 = vsel %vm258_vm0, %v7232_v28, %v605_v10  ;;  %v2220_v43 = vsel %vm465_vm3, %v2218_v42, %v2219_v19  ;;  %v8651_v10 = vld [vmem:[#allocation2 + $0x1a0] sm:$0xff]  ;;  %v2396_v34 = vsel %vm642_vm2, %v2394_v0, %v2395_v20 }
 0x19b   : > { %2454 = vrot.lane.b32.xlu1 %v2388_v36, %s7274_s24  ;;  %v847_v56 = vsel %vm258_vm0, %v7233_v26, %v603_v55  ;;  %v2223_v26 = vrot.slane %v8655_v24, 1 }
 0x19c   : > { %2452 = vrot.lane.b32.xlu0 %v2386_v17, %s7274_s24  ;;  %v2099_v17 = vld [vmem:[#allocation2 + $0x1a8] sm:$0x3] }
 0x19d   : > { %v782_v18 = vpop.permute.xlu1 %781 }
 0x19e   : > { %v881_v9 = vsel %vm851_vm7, %v848_v60, %v782_v18  ;;  %v780_v31 = vpop.permute.xlu0 %779  ;;  %v2398_v60 = vsel %vm642_vm2, %v2395_v20, %v2397_v59  ;;  %v2224_v18 = vrot.slane %v8651_v10, 1 }
 0x19f   : > { %v880_v46 = vsel %vm851_vm7, %v847_v56, %v780_v31  ;;  %2282 = vrot.lane.b32.xlu1 %v2217_v58, %s7275_s25  ;;  %v2400_v31 = vrot.slane %v8651_v10, 2 }
 0x1a0   : > { %2280 = vrot.lane.b32.xlu0 %v2215_v38, %s7275_s25  ;;  %6813 = vmatprep.mubr.msk.f32.mxu0 %vm1401_vm8, %v880_v46  ;;  %v2226_v38 = vrot.slane %v2099_v17, 1  ;;  %v2402_v46 = vrot.slane %v2099_v17, 2  ;;  %v2225_v27 = vsel %vm465_vm3, %v2223_v26, %v2224_v18 }
 0x1a1   : > { %6814 = vmatmul.mubr.msk.f32.gmra.mrb[28].mxu0 %vm1401_vm8, %v881_v9  ;;  %v609_v32 = vpop.permute.xlu1 %608 }
 0x1a2   : > { %v607_v44 = vpop.permute.xlu0 %606  ;;  %v850_v1 = vsel %vm258_vm0, %v7234_v22, %v609_v32  ;;  %v2227_v9 = vsel %vm465_vm3, %v2224_v18, %v2226_v38  ;;  %v2399_v32 = vrot.slane %v8655_v24, 2 }
 0x1a3   : > { %2458 = vrot.lane.b32.xlu1 %v2393_v21, %s7274_s24  ;;  %v849_v55 = vsel %vm258_vm0, %v7235_v14, %v607_v44 }
 0x1a4   : > { %2456 = vrot.lane.b32.xlu0 %v2391_v39, %s7274_s24  ;;  %v2401_v59 = vsel %vm642_vm2, %v2399_v32, %v2400_v31 }
 0x1a5   : > { %v786_v36 = vpop.permute.xlu1 %785 }
 0x1a6   : > { %v883_v58 = vsel %vm851_vm7, %v850_v1, %v786_v36  ;;  %v784_v33 = vpop.permute.xlu0 %783 }
 0x1a7   : > { %v882_v28 = vsel %vm851_vm7, %v849_v55, %v784_v33  ;;  %2286 = vrot.lane.b32.xlu1 %v2222_v2, %s7275_s25 }
 0x1a8   : > { %2284 = vrot.lane.b32.xlu0 %v2220_v43, %s7275_s25  ;;  %6816 = vmatprep.mubr.msk.f32.mxu0 %vm1401_vm8, %v882_v28 }
 0x1a9   : > { %6817 = vmatmul.mubr.msk.f32.gmra.mrb[30].mxu0 %vm1401_vm8, %v883_v58  ;;  %v2231_v4 = vpop.permute.xlu1 %2230 }
 0x1aa   : > { %v2229_v56 = vpop.permute.xlu0 %2228  ;;  %v2501_v21 = vsel %vm258_vm0, %v8316_v51, %v2231_v4  ;;  %v2403_v51 = vsel %vm642_vm2, %v2400_v31, %v2402_v46 }
 0x1ab   : > { %2462 = vrot.lane.b32.xlu1 %v2398_v60, %s7274_s24  ;;  %v2500_v39 = vsel %vm258_vm0, %v8322_v35, %v2229_v56 }
 0x1ac   : > { %2460 = vrot.lane.b32.xlu0 %v2396_v34, %s7274_s24 }
 0x1ad   : > { %v2407_v19 = vpop.permute.xlu1 %2406 }
 0x1ae   : > { %v2533_v42 = vsel %vm851_vm7, %v2501_v21, %v2407_v19  ;;  %v2405_v44 = vpop.permute.xlu0 %2404 }
 0x1af   : > { %v2532_v2 = vsel %vm851_vm7, %v2500_v39, %v2405_v44  ;;  %2290 = vrot.lane.b32.xlu1 %v2227_v9, %s7275_s25 }
 0x1b0   : > { %2288 = vrot.lane.b32.xlu0 %v2225_v27, %s7275_s25  ;;  %6823 = vmatprep.mubr.msk.f32.mxu0 %vm1401_vm8, %v2532_v2 }
 0x1b1   : > { %6824 = vmatmul.mubr.msk.f32.vlgmr.msra.gmra.mrb[0].mxu0 %vm1401_vm8, %v2533_v42  ;;  %v2235_v20 = vpop.permute.xlu1 %2234 }
 0x1b2   : > { %v2233_v22 = vpop.permute.xlu0 %2232  ;;  %v2503_v35 = vsel %vm258_vm0, %v8343_v25, %v2235_v20 }
 0x1b3   : > { %2466 = vrot.lane.b32.xlu1 %v2403_v51, %s7274_s24  ;;  %v2502_v36 = vsel %vm258_vm0, %v8347_v49, %v2233_v22 }
 0x1b4   : > { %2464 = vrot.lane.b32.xlu0 %v2401_v59, %s7274_s24 }
 0x1b5   : > { %v2411_v1 = vpop.permute.xlu1 %2410 }
 0x1b6   : > { %v2535_v43 = vsel %vm851_vm7, %v2503_v35, %v2411_v1  ;;  %v2409_v0 = vpop.permute.xlu0 %2408 }
 0x1b7   : > { %v2534_v17 = vsel %vm851_vm7, %v2502_v36, %v2409_v0 }
 0x1b8   : > { %6826 = vmatprep.mubr.msk.f32.mxu0 %vm1401_vm8, %v2534_v17 }
 0x1b9   : > { %6827 = vmatmul.mubr.msk.f32.gmra.mrb[2].mxu0 %vm1401_vm8, %v2535_v43  ;;  %v2239_v14 = vpop.permute.xlu1 %2238 }
 0x1ba   : > { %v2237_v55 = vpop.permute.xlu0 %2236  ;;  %v2505_v58 = vsel %vm258_vm0, %v8365_v12, %v2239_v14 }
 0x1bb   : > { %v2504_v25 = vsel %vm258_vm0, %v8369_v37, %v2237_v55 }
 0x1bd   : > { %v2415_v33 = vpop.permute.xlu1 %2414 }
 0x1be   : > { %v2537_v49 = vsel %vm851_vm7, %v2505_v58, %v2415_v33  ;;  %v2413_v28 = vpop.permute.xlu0 %2412 }
 0x1bf   : > { %v2536_v60 = vsel %vm851_vm7, %v2504_v25, %v2413_v28 }
 0x1c0   : > { %6829 = vmatprep.mubr.msk.f32.mxu0 %vm1401_vm8, %v2536_v60 }
 0x1c1   : > { %6830 = vmatmul.mubr.msk.f32.gmra.mrb[4].mxu0 %vm1401_vm8, %v2537_v49  ;;  %v2243_v18 = vpop.permute.xlu1 %2242 }
 0x1c2   : > { %v2241_v38 = vpop.permute.xlu0 %2240  ;;  %v2507_v4 = vsel %vm258_vm0, %v8387_v45, %v2243_v18 }
 0x1c3   : > { %v2506_v12 = vsel %vm258_vm0, %v8391_v30, %v2241_v38 }
 0x1c5   : > { %v2419_v34 = vpop.permute.xlu1 %2418 }
 0x1c6   : > { %v2539_v37 = vsel %vm851_vm7, %v2507_v4, %v2419_v34  ;;  %v2417_v26 = vpop.permute.xlu0 %2416 }
 0x1c7   : > { %v2538_v56 = vsel %vm851_vm7, %v2506_v12, %v2417_v26 }
 0x1c8   : > { %6832 = vmatprep.mubr.msk.f32.mxu0 %vm1401_vm8, %v2538_v56 }
 0x1c9   : > { %6833 = vmatmul.mubr.msk.f32.gmra.mrb[6].mxu0 %vm1401_vm8, %v2539_v37  ;;  %v2247_v9 = vpop.permute.xlu1 %2246 }
 0x1ca   : > { %v2245_v31 = vpop.permute.xlu0 %2244  ;;  %v2509_v46 = vsel %vm258_vm0, %v8409_v8, %v2247_v9 }
 0x1cb   : > { %v2508_v45 = vsel %vm258_vm0, %v8413_v41, %v2245_v31 }
 0x1cd   : > { %v2423_v21 = vpop.permute.xlu1 %2422 }
 0x1ce   : > { %v2541_v30 = vsel %vm851_vm7, %v2509_v46, %v2423_v21  ;;  %v2421_v19 = vpop.permute.xlu0 %2420 }
 0x1cf   : > { %v2540_v27 = vsel %vm851_vm7, %v2508_v45, %v2421_v19 }
 0x1d0   : > { %6835 = vmatprep.mubr.msk.f32.mxu0 %vm1401_vm8, %v2540_v27 }
 0x1d1   : > { %6836 = vmatmul.mubr.msk.f32.gmra.mrb[8].mxu0 %vm1401_vm8, %v2541_v30  ;;  %v2251_v32 = vpop.permute.xlu1 %2250 }
 0x1d2   : > { %v2249_v39 = vpop.permute.xlu0 %2248  ;;  %v2511_v42 = vsel %vm258_vm0, %v8431_v29, %v2251_v32 }
 0x1d3   : > { %v2510_v8 = vsel %vm258_vm0, %v8435_v11, %v2249_v39 }
 0x1d5   : > { %v2427_v44 = vpop.permute.xlu1 %2426 }
 0x1d6   : > { %v2543_v41 = vsel %vm851_vm7, %v2511_v42, %v2427_v44  ;;  %v2425_v2 = vpop.permute.xlu0 %2424 }
 0x1d7   : > { %v2542_v51 = vsel %vm851_vm7, %v2510_v8, %v2425_v2 }
 0x1d8   : > { %6838 = vmatprep.mubr.msk.f32.mxu0 %vm1401_vm8, %v2542_v51 }
 0x1d9   : > { %6839 = vmatmul.mubr.msk.f32.gmra.mrb[10].mxu0 %vm1401_vm8, %v2543_v41  ;;  %v2255_v20 = vpop.permute.xlu1 %2254 }
 0x1da   : > { %v2253_v59 = vpop.permute.xlu0 %2252  ;;  %v2513_v22 = vsel %vm258_vm0, %v8453_v62, %v2255_v20 }
 0x1db   : > { %v2512_v29 = vsel %vm258_vm0, %v8457_v15, %v2253_v59 }
 0x1dd   : > { %v2431_v35 = vpop.permute.xlu1 %2430 }
 0x1de   : > { %v2545_v11 = vsel %vm851_vm7, %v2513_v22, %v2431_v35  ;;  %v2429_v1 = vpop.permute.xlu0 %2428 }
 0x1df   : > { %v2544_v36 = vsel %vm851_vm7, %v2512_v29, %v2429_v1 }
 0x1e0   : > { %6841 = vmatprep.mubr.msk.f32.mxu0 %vm1401_vm8, %v2544_v36 }
 0x1e1   : > { %6842 = vmatmul.mubr.msk.f32.gmra.mrb[12].mxu0 %vm1401_vm8, %v2545_v11  ;;  %v2259_v43 = vpop.permute.xlu1 %2258 }
 0x1e2   : > { %v2257_v0 = vpop.permute.xlu0 %2256  ;;  %v2515_v17 = vsel %vm258_vm0, %v8475_v40, %v2259_v43 }
 0x1e3   : > { %v2514_v62 = vsel %vm258_vm0, %v8479_v61, %v2257_v0 }
 0x1e5   : > { %v2435_v14 = vpop.permute.xlu1 %2434 }
 0x1e6   : > { %v2547_v15 = vsel %vm851_vm7, %v2515_v17, %v2435_v14  ;;  %v2433_v55 = vpop.permute.xlu0 %2432 }
 0x1e7   : > { %v2546_v58 = vsel %vm851_vm7, %v2514_v62, %v2433_v55 }
 0x1e8   : > { %6844 = vmatprep.mubr.msk.f32.mxu0 %vm1401_vm8, %v2546_v58 }
 0x1e9   : > { %6845 = vmatmul.mubr.msk.f32.gmra.mrb[14].mxu0 %vm1401_vm8, %v2547_v15  ;;  %v2263_v33 = vpop.permute.xlu1 %2262 }
 0x1ea   : > { %v2261_v25 = vpop.permute.xlu0 %2260  ;;  %v2517_v49 = vsel %vm258_vm0, %v8497_v53, %v2263_v33 }
 0x1eb   : > { %v2516_v40 = vsel %vm258_vm0, %v8501_v47, %v2261_v25 }
 0x1ed   : > { %v2439_v28 = vpop.permute.xlu1 %2438 }
 0x1ee   : > { %v2549_v61 = vsel %vm851_vm7, %v2517_v49, %v2439_v28  ;;  %v2437_v60 = vpop.permute.xlu0 %2436 }
 0x1ef   : > { %v2548_v18 = vsel %vm851_vm7, %v2516_v40, %v2437_v60 }
 0x1f0   : > { %6847 = vmatprep.mubr.msk.f32.mxu0 %vm1401_vm8, %v2548_v18 }
 0x1f1   : > { %6848 = vmatmul.mubr.msk.f32.gmra.mrb[16].mxu0 %vm1401_vm8, %v2549_v61  ;;  %v2267_v38 = vpop.permute.xlu1 %2266 }
 0x1f2   : > { %v2265_v4 = vpop.permute.xlu0 %2264  ;;  %v2519_v34 = vsel %vm258_vm0, %v8519_v6, %v2267_v38 }
 0x1f3   : > { %v2518_v53 = vsel %vm258_vm0, %v8523_v63, %v2265_v4 }
 0x1f5   : > { %v2443_v12 = vpop.permute.xlu1 %2442 }
 0x1f6   : > { %v2551_v47 = vsel %vm851_vm7, %v2519_v34, %v2443_v12  ;;  %v2441_v37 = vpop.permute.xlu0 %2440 }
 0x1f7   : > { %v2550_v26 = vsel %vm851_vm7, %v2518_v53, %v2441_v37 }
 0x1f8   : > { %6850 = vmatprep.mubr.msk.f32.mxu0 %vm1401_vm8, %v2550_v26 }
 0x1f9   : > { %6851 = vmatmul.mubr.msk.f32.gmra.mrb[18].mxu0 %vm1401_vm8, %v2551_v47  ;;  %v2271_v56 = vpop.permute.xlu1 %2270 }
 0x1fa   : > { %v2269_v9 = vpop.permute.xlu0 %2268  ;;  %v2521_v31 = vsel %vm258_vm0, %v8541_v50, %v2271_v56 }
 0x1fb   : > { %v2520_v6 = vsel %vm258_vm0, %v8545_v13, %v2269_v9 }
 0x1fd   : > { %v2447_v46 = vpop.permute.xlu1 %2446 }
 0x1fe   : > { %v2553_v63 = vsel %vm851_vm7, %v2521_v31, %v2447_v46  ;;  %v2445_v21 = vpop.permute.xlu0 %2444 }
 0x1ff   : > { %v2552_v45 = vsel %vm851_vm7, %v2520_v6, %v2445_v21 }
 0x200   : > { %6853 = vmatprep.mubr.msk.f32.mxu0 %vm1401_vm8, %v2552_v45 }
 0x201   : > { %6854 = vmatmul.mubr.msk.f32.gmra.mrb[20].mxu0 %vm1401_vm8, %v2553_v63  ;;  %v2275_v30 = vpop.permute.xlu1 %2274 }
 0x202   : > { %v2273_v19 = vpop.permute.xlu0 %2272  ;;  %v2523_v27 = vsel %vm258_vm0, %v8563_v54, %v2275_v30 }
 0x203   : > { %v2522_v50 = vsel %vm258_vm0, %v8567_v3, %v2273_v19 }
 0x205   : > { %v2451_v32 = vpop.permute.xlu1 %2450 }
 0x206   : > { %v2555_v13 = vsel %vm851_vm7, %v2523_v27, %v2451_v32  ;;  %v2449_v39 = vpop.permute.xlu0 %2448 }
 0x207   : > { %v2554_v42 = vsel %vm851_vm7, %v2522_v50, %v2449_v39 }
 0x208   : > { %6856 = vmatprep.mubr.msk.f32.mxu0 %vm1401_vm8, %v2554_v42 }
 0x209   : > { %6857 = vmatmul.mubr.msk.f32.gmra.mrb[22].mxu0 %vm1401_vm8, %v2555_v13  ;;  %v2279_v44 = vpop.permute.xlu1 %2278 }
 0x20a   : > { %v2277_v8 = vpop.permute.xlu0 %2276  ;;  %v2525_v41 = vsel %vm258_vm0, %v8585_v23, %v2279_v44 }
 0x20b   : > { %v2524_v54 = vsel %vm258_vm0, %v8589_v52, %v2277_v8 }
 0x20d   : > { %v2455_v2 = vpop.permute.xlu1 %2454 }
 0x20e   : > { %v2557_v3 = vsel %vm851_vm7, %v2525_v41, %v2455_v2  ;;  %v2453_v51 = vpop.permute.xlu0 %2452 }
 0x20f   : > { %v2556_v20 = vsel %vm851_vm7, %v2524_v54, %v2453_v51 }
 0x210   : > { %6859 = vmatprep.mubr.msk.f32.mxu0 %vm1401_vm8, %v2556_v20 }
 0x211   : > { %6860 = vmatmul.mubr.msk.f32.gmra.mrb[24].mxu0 %vm1401_vm8, %v2557_v3  ;;  %v2283_v59 = vpop.permute.xlu1 %2282 }
 0x212   : > { %v2281_v22 = vpop.permute.xlu0 %2280  ;;  %v2527_v35 = vsel %vm258_vm0, %v8607_v5, %v2283_v59 }
 0x213   : > { %v2526_v23 = vsel %vm258_vm0, %v8611_v7, %v2281_v22 }
 0x215   : > { %v2459_v29 = vpop.permute.xlu1 %2458 }
 0x216   : > { %v2559_v52 = vsel %vm851_vm7, %v2527_v35, %v2459_v29  ;;  %v2457_v11 = vpop.permute.xlu0 %2456 }
 0x217   : > { %v2558_v1 = vsel %vm851_vm7, %v2526_v23, %v2457_v11 }
 0x218   : > { %6862 = vmatprep.mubr.msk.f32.mxu0 %vm1401_vm8, %v2558_v1 }
 0x219   : > { %6863 = vmatmul.mubr.msk.f32.gmra.mrb[26].mxu0 %vm1401_vm8, %v2559_v52  ;;  %v2287_v36 = vpop.permute.xlu1 %2286 }
 0x21a   : > { %v2285_v43 = vpop.permute.xlu0 %2284  ;;  %v2529_v0 = vsel %vm258_vm0, %v8629_v16, %v2287_v36 }
 0x21b   : > { %v2528_v5 = vsel %vm258_vm0, %v8633_v57, %v2285_v43 }
 0x21d   : > { %v2463_v17 = vpop.permute.xlu1 %2462 }
 0x21e   : > { %v2561_v7 = vsel %vm851_vm7, %v2529_v0, %v2463_v17  ;;  %v2461_v14 = vpop.permute.xlu0 %2460 }
 0x21f   : > { %v2560_v62 = vsel %vm851_vm7, %v2528_v5, %v2461_v14 }
 0x220   : > { %6865 = vmatprep.mubr.msk.f32.mxu0 %vm1401_vm8, %v2560_v62 }
 0x221   : > { %6866 = vmatmul.mubr.msk.f32.gmra.mrb[28].mxu0 %vm1401_vm8, %v2561_v7  ;;  %v2291_v15 = vpop.permute.xlu1 %2290 }
 0x222   : > { %v2289_v55 = vpop.permute.xlu0 %2288  ;;  %v2531_v58 = vsel %vm258_vm0, %v8651_v10, %v2291_v15  ;;  %v8809_v10 = vld [vmem:[%s10964_s2] ss:$0 sm:$0xff] }
 0x223   : > { %v2530_v16 = vsel %vm258_vm0, %v8655_v24, %v2289_v55 }
 0x225   : > { %v2467_v33 = vpop.permute.xlu1 %2466 }
 0x226   : > { %v2563_v57 = vsel %vm851_vm7, %v2531_v58, %v2467_v33  ;;  %v2465_v25 = vpop.permute.xlu0 %2464 }
 0x227   : > { %v2562_v49 = vsel %vm851_vm7, %v2530_v16, %v2465_v25 }
 0x228   : > { %6868 = vmatprep.mubr.msk.f32.mxu0 %vm1401_vm8, %v2562_v49 }
 0x229   : > { %6869 = vmatmul.mubr.msk.f32.gmra.mrb[30].mxu0 %vm1401_vm8, %v2563_v57 }
 0x284   : > { %v6825_v28 = vpop.f32.mrb[0].mxu0 }
 0x285   : > { %v2732_v40 = vpop.f32.mrb[1].mxu0  ;;  %v8812_v24 = vadd.f32 %v6825_v28, %v8809_v10 }
 0x286   : > { %v8815_v4 = vadd.f32 %v8809_v10, %v2732_v40 }
 0x287   : > { %v3032_v53 = vmul.f32 %v8812_v24, %v8812_v24  ;;  %v2963_v26 = vsel %vm258_vm0, %v8812_v24, 0.0 }
 0x288   : > { %v3031_v37 = vmul.f32 %v8815_v4, %v8815_v4  ;;  %v2962_v56 = vsel %vm258_vm0, %v8815_v4, 0.0 }
 0x289   : > { %v3064_v31 = vsel %vm258_vm0, %v3032_v53, 0.0  ;;  %v2964_v45 = vadd.f32 %v2963_v26, %v2962_v56 }
 0x28a   : > { %v3063_v46 = vsel %vm258_vm0, %v3031_v37, 0.0 }
 0x28b   : > { %v3065_v27 = vadd.f32 %v3064_v31, %v3063_v46 }
 0x28c   : > { %v6828_v61 = vpop.f32.mrb[2].mxu0 }
 0x28d   : > { %v2742_v60 = vpop.f32.mrb[3].mxu0  ;;  %v8833_v6 = vadd.f32 %v6828_v61, %v8809_v10 }
 0x28e   : > { %v8818_v34 = vadd.f32 %v8809_v10, %v2742_v60 }
 0x28f   : > { %v3034_v13 = vmul.f32 %v8833_v6, %v8833_v6  ;;  %v2967_v44 = vsel %vm258_vm0, %v8833_v6, 0.0 }
 0x290   : > { %v3033_v9 = vmul.f32 %v8818_v34, %v8818_v34  ;;  %v2965_v63 = vsel %vm258_vm0, %v8818_v34, 0.0 }
 0x291   : > { %v2966_v32 = vadd.f32 %v2965_v63, %v2964_v45  ;;  %v3068_v3 = vsel %vm258_vm0, %v3034_v13, 0.0 }
 0x292   : > { %v3066_v30 = vsel %vm258_vm0, %v3033_v9, 0.0 }
 0x293   : > { %v3067_v42 = vadd.f32 %v3066_v30, %v3065_v27  ;;  %v2968_v54 = vadd.f32 %v2967_v44, %v2966_v32 }
 0x294   : > { %v6831_v18 = vpop.f32.mrb[4].mxu0 }
 0x295   : > { %v2752_v38 = vpop.f32.mrb[5].mxu0  ;;  %v8848_v8 = vadd.f32 %v6831_v18, %v8809_v10  ;;  %v3069_v59 = vadd.f32 %v3068_v3, %v3067_v42 }
 0x296   : > { %v8838_v21 = vadd.f32 %v8809_v10, %v2752_v38 }
 0x297   : > { %v3036_v22 = vmul.f32 %v8848_v8, %v8848_v8  ;;  %v2971_v11 = vsel %vm258_vm0, %v8848_v8, 0.0 }
 0x298   : > { %v3035_v39 = vmul.f32 %v8838_v21, %v8838_v21  ;;  %v2969_v41 = vsel %vm258_vm0, %v8838_v21, 0.0 }
 0x299   : > { %v2970_v20 = vadd.f32 %v2969_v41, %v2968_v54  ;;  %v3072_v17 = vsel %vm258_vm0, %v3036_v22, 0.0 }
 0x29a   : > { %v3070_v51 = vsel %vm258_vm0, %v3035_v39, 0.0 }
 0x29b   : > { %v3071_v23 = vadd.f32 %v3070_v51, %v3069_v59  ;;  %v2972_v0 = vadd.f32 %v2971_v11, %v2970_v20 }
 0x29c   : > { %v6834_v12 = vpop.f32.mrb[6].mxu0 }
 0x29d   : > { %v2762_v47 = vpop.f32.mrb[7].mxu0  ;;  %v8864_v1 = vadd.f32 %v6834_v12, %v8809_v10  ;;  %v3073_v14 = vadd.f32 %v3072_v17, %v3071_v23 }
 0x29e   : > { %v8853_v2 = vadd.f32 %v8809_v10, %v2762_v47 }
 0x29f   : > { %v3038_v62 = vmul.f32 %v8864_v1, %v8864_v1  ;;  %v2975_v58 = vsel %vm258_vm0, %v8864_v1, 0.0 }
 0x2a0   : > { %v3037_v35 = vmul.f32 %v8853_v2, %v8853_v2  ;;  %v2973_v36 = vsel %vm258_vm0, %v8853_v2, 0.0 }
 0x2a1   : > { %v2974_v7 = vadd.f32 %v2973_v36, %v2972_v0  ;;  %v3076_v40 = vsel %vm258_vm0, %v3038_v62, 0.0 }
 0x2a2   : > { %v3074_v5 = vsel %vm258_vm0, %v3037_v35, 0.0 }
 0x2a3   : > { %v3075_v55 = vadd.f32 %v3074_v5, %v3073_v14  ;;  %v2976_v49 = vadd.f32 %v2975_v58, %v2974_v7 }
 0x2a4   : > { %v6837_v19 = vpop.f32.mrb[8].mxu0 }
 0x2a5   : > { %v2772_v50 = vpop.f32.mrb[9].mxu0  ;;  %v8880_v33 = vadd.f32 %v6837_v19, %v8809_v10  ;;  %v3077_v18 = vadd.f32 %v3076_v40, %v3075_v55 }
 0x2a6   : > { %v8869_v43 = vadd.f32 %v8809_v10, %v2772_v50 }
 0x2a7   : > { %v3040_v38 = vmul.f32 %v8880_v33, %v8880_v33  ;;  %v2979_v47 = vsel %vm258_vm0, %v8880_v33, 0.0 }
 0x2a8   : > { %v3039_v15 = vmul.f32 %v8869_v43, %v8869_v43  ;;  %v2977_v16 = vsel %vm258_vm0, %v8869_v43, 0.0 }
 0x2a9   : > { %v2978_v60 = vadd.f32 %v2977_v16, %v2976_v49  ;;  %v3080_v31 = vsel %vm258_vm0, %v3040_v38, 0.0 }
 0x2aa   : > { %v3078_v61 = vsel %vm258_vm0, %v3039_v15, 0.0 }
 0x2ab   : > { %v3079_v53 = vadd.f32 %v3078_v61, %v3077_v18  ;;  %v2980_v9 = vadd.f32 %v2979_v47, %v2978_v60 }
 0x2ac   : > { %v6840_v29 = vpop.f32.mrb[10].mxu0 }
 0x2ad   : > { %v2782_v52 = vpop.f32.mrb[11].mxu0  ;;  %v8896_v37 = vadd.f32 %v6840_v29, %v8809_v10  ;;  %v3081_v30 = vadd.f32 %v3080_v31, %v3079_v53 }
 0x2ae   : > { %v8885_v57 = vadd.f32 %v8809_v10, %v2782_v52 }
 0x2af   : > { %v3042_v27 = vmul.f32 %v8896_v37, %v8896_v37  ;;  %v2983_v13 = vsel %vm258_vm0, %v8896_v37, 0.0 }
 0x2b0   : > { %v3041_v12 = vmul.f32 %v8885_v57, %v8885_v57  ;;  %v2981_v26 = vsel %vm258_vm0, %v8885_v57, 0.0 }
 0x2b1   : > { %v2982_v45 = vadd.f32 %v2981_v26, %v2980_v9  ;;  %v3084_v54 = vsel %vm258_vm0, %v3042_v27, 0.0 }
 0x2b2   : > { %v3082_v46 = vsel %vm258_vm0, %v3041_v12, 0.0 }
 0x2b3   : > { %v3083_v50 = vadd.f32 %v3082_v46, %v3081_v30  ;;  %v2984_v41 = vadd.f32 %v2983_v13, %v2982_v45 }
 0x2b4   : > { %v6843_v25 = vpop.f32.mrb[12].mxu0 }
 0x2b5   : > { %v2792_v28 = vpop.f32.mrb[13].mxu0  ;;  %v8912_v39 = vadd.f32 %v6843_v25, %v8809_v10  ;;  %v3085_v20 = vadd.f32 %v3084_v54, %v3083_v50 }
 0x2b6   : > { %v8901_v56 = vadd.f32 %v8809_v10, %v2792_v28 }
 0x2b7   : > { %v3044_v59 = vmul.f32 %v8912_v39, %v8912_v39  ;;  %v2987_v52 = vsel %vm258_vm0, %v8912_v39, 0.0 }
 0x2b8   : > { %v3043_v32 = vmul.f32 %v8901_v56, %v8901_v56  ;;  %v2985_v42 = vsel %vm258_vm0, %v8901_v56, 0.0 }
 0x2b9   : > { %v2986_v51 = vadd.f32 %v2985_v42, %v2984_v41  ;;  %v3088_v5 = vsel %vm258_vm0, %v3044_v59, 0.0 }
 0x2ba   : > { %v3086_v3 = vsel %vm258_vm0, %v3043_v32, 0.0 }
 0x2bb   : > { %v3087_v29 = vadd.f32 %v3086_v3, %v3085_v20  ;;  %v2988_v17 = vadd.f32 %v2987_v52, %v2986_v51 }
 0x2bc   : > { %v6846_v63 = vpop.f32.mrb[14].mxu0 }
 0x2bd   : > { %v2802_v19 = vpop.f32.mrb[15].mxu0  ;;  %v8928_v11 = vadd.f32 %v6846_v63, %v8809_v10  ;;  %v3089_v62 = vadd.f32 %v3088_v5, %v3087_v29 }
 0x2be   : > { %v8917_v44 = vadd.f32 %v8809_v10, %v2802_v19 }
 0x2bf   : > { %v3046_v15 = vmul.f32 %v8928_v11, %v8928_v11  ;;  %v2991_v16 = vsel %vm258_vm0, %v8928_v11, 0.0 }
 0x2c0   : > { %v3045_v22 = vmul.f32 %v8917_v44, %v8917_v44  ;;  %v2989_v36 = vsel %vm258_vm0, %v8917_v44, 0.0 }
 0x2c1   : > { %v2990_v14 = vadd.f32 %v2989_v36, %v2988_v17  ;;  %v3092_v60 = vsel %vm258_vm0, %v3046_v15, 0.0 }
 0x2c2   : > { %v3090_v7 = vsel %vm258_vm0, %v3045_v22, 0.0 }
 0x2c3   : > { %v3091_v58 = vadd.f32 %v3090_v7, %v3089_v62  ;;  %v2992_v40 = vadd.f32 %v2991_v16, %v2990_v14 }
 0x2c4   : > { %v6849_v35 = vpop.f32.mrb[16].mxu0 }
 0x2c5   : > { %v2812_v23 = vpop.f32.mrb[17].mxu0  ;;  %v8944_v25 = vadd.f32 %v6849_v35, %v8809_v10  ;;  %v3093_v53 = vadd.f32 %v3092_v60, %v3091_v58 }
 0x2c6   : > { %v8933_v0 = vadd.f32 %v8809_v10, %v2812_v23 }
 0x2c7   : > { %v3048_v47 = vmul.f32 %v8944_v25, %v8944_v25  ;;  %v2995_v31 = vsel %vm258_vm0, %v8944_v25, 0.0 }
 0x2c8   : > { %v3047_v55 = vmul.f32 %v8933_v0, %v8933_v0  ;;  %v2993_v49 = vsel %vm258_vm0, %v8933_v0, 0.0 }
 0x2c9   : > { %v2994_v12 = vadd.f32 %v2993_v49, %v2992_v40  ;;  %v3096_v30 = vsel %vm258_vm0, %v3048_v47, 0.0 }
 0x2ca   : > { %v3094_v18 = vsel %vm258_vm0, %v3047_v55, 0.0 }
 0x2cb   : > { %v3095_v9 = vadd.f32 %v3094_v18, %v3093_v53  ;;  %v2996_v45 = vadd.f32 %v2995_v31, %v2994_v12 }
 0x2cc   : > { %v6852_v28 = vpop.f32.mrb[18].mxu0 }
 0x2cd   : > { %v2822_v61 = vpop.f32.mrb[19].mxu0  ;;  %v8960_v46 = vadd.f32 %v6852_v28, %v8809_v10  ;;  %v3097_v50 = vadd.f32 %v3096_v30, %v3095_v9 }
 0x2ce   : > { %v8951_v38 = vadd.f32 %v8809_v10, %v2822_v61 }
 0x2cf   : > { %v3050_v42 = vmul.f32 %v8960_v46, %v8960_v46  ;;  %v2999_v3 = vsel %vm258_vm0, %v8960_v46, 0.0 }
 0x2d0   : > { %v3049_v26 = vmul.f32 %v8951_v38, %v8951_v38  ;;  %v2997_v63 = vsel %vm258_vm0, %v8951_v38, 0.0 }
 0x2d1   : > { %v2998_v32 = vadd.f32 %v2997_v63, %v2996_v45  ;;  %v3100_v35 = vsel %vm258_vm0, %v3050_v42, 0.0 }
 0x2d2   : > { %v3098_v19 = vsel %vm258_vm0, %v3049_v26, 0.0 }
 0x2d3   : > { %v3099_v54 = vadd.f32 %v3098_v19, %v3097_v50  ;;  %v3000_v22 = vadd.f32 %v2999_v3, %v2998_v32 }
 0x2d4   : > { %v6855_v27 = vpop.f32.mrb[20].mxu0 }
 0x2d5   : > { %v2832_v13 = vpop.f32.mrb[21].mxu0  ;;  %v8974_v51 = vadd.f32 %v6855_v27, %v8809_v10  ;;  %v3101_v52 = vadd.f32 %v3100_v35, %v3099_v54 }
 0x2d6   : > { %v8969_v41 = vadd.f32 %v8809_v10, %v2832_v13 }
 0x2d7   : > { %v3052_v36 = vmul.f32 %v8974_v51, %v8974_v51  ;;  %v3003_v62 = vsel %vm258_vm0, %v8974_v51, 0.0 }
 0x2d8   : > { %v3001_v20 = vsel %vm258_vm0, %v8969_v41, 0.0  ;;  %v3051_v59 = vmul.f32 %v8969_v41, %v8969_v41 }
 0x2d9   : > { %v3002_v23 = vadd.f32 %v3001_v20, %v3000_v22  ;;  %v3104_v58 = vsel %vm258_vm0, %v3052_v36, 0.0 }
 0x2da   : > { %v3102_v29 = vsel %vm258_vm0, %v3051_v59, 0.0 }
 0x2db   : > { %v3103_v5 = vadd.f32 %v3102_v29, %v3101_v52  ;;  %v3004_v55 = vadd.f32 %v3003_v62, %v3002_v23 }
 0x2dc   : > { %v6858_v17 = vpop.f32.mrb[22].mxu0 }
 0x2dd   : > { %v8985_v7 = vadd.f32 %v6858_v17, %v8809_v10  ;;  %v2842_v14 = vpop.f32.mrb[23].mxu0  ;;  %v3105_v61 = vadd.f32 %v3104_v58, %v3103_v5 }
 0x2de   : > { %v8990_v15 = vadd.f32 %v8809_v10, %v2842_v14 }
 0x2df   : > { %v3054_v16 = vmul.f32 %v8985_v7, %v8985_v7  ;;  %v3007_v60 = vsel %vm258_vm0, %v8985_v7, 0.0 }
 0x2e0   : > { %v3005_v49 = vsel %vm258_vm0, %v8990_v15, 0.0  ;;  %v3053_v28 = vmul.f32 %v8990_v15, %v8990_v15 }
 0x2e1   : > { %v3006_v40 = vadd.f32 %v3005_v49, %v3004_v55  ;;  %v3108_v47 = vsel %vm258_vm0, %v3054_v16, 0.0 }
 0x2e2   : > { %v3106_v18 = vsel %vm258_vm0, %v3053_v28, 0.0 }
 0x2e3   : > { %v3107_v12 = vadd.f32 %v3106_v18, %v3105_v61  ;;  %v3008_v53 = vadd.f32 %v3007_v60, %v3006_v40 }
 0x2e4   : > { %v6861_v26 = vpop.f32.mrb[24].mxu0 }
 0x2e5   : > { %v9004_v9 = vadd.f32 %v6861_v26, %v8809_v10  ;;  %v2852_v31 = vpop.f32.mrb[25].mxu0  ;;  %v3109_v63 = vadd.f32 %v3108_v47, %v3107_v12 }
 0x2e6   : > { %v9007_v45 = vadd.f32 %v8809_v10, %v2852_v31 }
 0x2e7   : > { %v3056_v30 = vmul.f32 %v9004_v9, %v9004_v9  ;;  %v3011_v50 = vsel %vm258_vm0, %v9004_v9, 0.0 }
 0x2e8   : > { %v3009_v19 = vsel %vm258_vm0, %v9007_v45, 0.0  ;;  %v3055_v27 = vmul.f32 %v9007_v45, %v9007_v45 }
 0x2e9   : > { %v3010_v32 = vadd.f32 %v3009_v19, %v3008_v53  ;;  %v3112_v3 = vsel %vm258_vm0, %v3056_v30, 0.0 }
 0x2ea   : > { %v3110_v13 = vsel %vm258_vm0, %v3055_v27, 0.0 }
 0x2eb   : > { %v3111_v42 = vadd.f32 %v3110_v13, %v3109_v63  ;;  %v3012_v54 = vadd.f32 %v3011_v50, %v3010_v32 }
 0x2ec   : > { %v6864_v20 = vpop.f32.mrb[26].mxu0 }
 0x2ed   : > { %v9020_v59 = vadd.f32 %v6864_v20, %v8809_v10  ;;  %v2862_v22 = vpop.f32.mrb[27].mxu0  ;;  %v3113_v35 = vadd.f32 %v3112_v3, %v3111_v42 }
 0x2ee   : > { %v9023_v29 = vadd.f32 %v8809_v10, %v2862_v22 }
 0x2ef   : > { %v3058_v23 = vmul.f32 %v9020_v59, %v9020_v59  ;;  %v3015_v5 = vsel %vm258_vm0, %v9020_v59, 0.0 }
 0x2f0   : > { %v3013_v52 = vsel %vm258_vm0, %v9023_v29, 0.0  ;;  %v3057_v36 = vmul.f32 %v9023_v29, %v9023_v29 }
 0x2f1   : > { %v3014_v17 = vadd.f32 %v3013_v52, %v3012_v54  ;;  %v3116_v58 = vsel %vm258_vm0, %v3058_v23, 0.0 }
 0x2f2   : > { %v3114_v14 = vsel %vm258_vm0, %v3057_v36, 0.0 }
 0x2f3   : > { %v3115_v62 = vadd.f32 %v3114_v14, %v3113_v35  ;;  %v3016_v55 = vadd.f32 %v3015_v5, %v3014_v17 }
 0x2f4   : > { %v6867_v16 = vpop.f32.mrb[28].mxu0 }
 0x2f5   : > { %v9036_v49 = vadd.f32 %v6867_v16, %v8809_v10  ;;  %v2872_v28 = vpop.f32.mrb[29].mxu0  ;;  %v3117_v40 = vadd.f32 %v3116_v58, %v3115_v62 }
 0x2f6   : > { %v9039_v61 = vadd.f32 %v8809_v10, %v2872_v28 }
 0x2f7   : > { %v3060_v60 = vmul.f32 %v9036_v49, %v9036_v49  ;;  %v3019_v47 = vsel %vm258_vm0, %v9036_v49, 0.0 }
 0x2f8   : > { %v3017_v18 = vsel %vm258_vm0, %v9039_v61, 0.0  ;;  %v3059_v12 = vmul.f32 %v9039_v61, %v9039_v61 }
 0x2f9   : > { %v3018_v53 = vadd.f32 %v3017_v18, %v3016_v55  ;;  %v3120_v30 = vsel %vm258_vm0, %v3060_v60, 0.0 }
 0x2fa   : > { %v3118_v26 = vsel %vm258_vm0, %v3059_v12, 0.0 }
 0x2fb   : > { %v3119_v31 = vadd.f32 %v3118_v26, %v3117_v40  ;;  %v3020_v63 = vadd.f32 %v3019_v47, %v3018_v53 }
 0x2fc   : > { %v6870_v19 = vpop.f32.mrb[30].mxu0 }
 0x2fd   : > { %v9052_v27 = vadd.f32 %v6870_v19, %v8809_v10  ;;  %v2882_v32 = vpop.f32.mrb[31].mxu0  ;;  %v3121_v50 = vadd.f32 %v3120_v30, %v3119_v31 }
 0x2fe   : > { %v9055_v13 = vadd.f32 %v8809_v10, %v2882_v32 }
 0x2ff   : > { %v3062_v42 = vmul.f32 %v9052_v27, %v9052_v27  ;;  %v3023_v22 = vsel %vm258_vm0, %v9052_v27, 0.0 }
 0x300   : > { %v3021_v54 = vsel %vm258_vm0, %v9055_v13, 0.0  ;;  %v3061_v3 = vmul.f32 %v9055_v13, %v9055_v13 }
 0x301   : > { %v3022_v20 = vadd.f32 %v3021_v54, %v3020_v63  ;;  %v3124_v10 = vsel %vm258_vm0, %v3062_v42, 0.0 }
 0x302   : > { %v3122_v35 = vsel %vm258_vm0, %v3061_v3, 0.0 }
 0x303   : > { %v3024_v23 = vadd.f32 %v3023_v22, %v3022_v20  ;;  %v3123_v52 = vadd.f32 %v3122_v35, %v3121_v50 }
 0x305   : > { %v3025_v36 = vrot.slane %v3024_v23, 4  ;;  %v3125_v17 = vadd.f32 %v3124_v10, %v3123_v52 }
 0x307   : > { %v3026_v5 = vadd.f32 %v3025_v36, %v3024_v23  ;;  %v3126_v14 = vrot.slane %v3125_v17, 4 }
 0x309   : > { %v3027_v62 = vrot.slane %v3026_v5, 2  ;;  %v3127_v55 = vadd.f32 %v3126_v14, %v3125_v17 }
 0x30b   : > { %v3028_v58 = vadd.f32 %v3027_v62, %v3026_v5  ;;  %v3128_v16 = vrot.slane %v3127_v55, 2 }
 0x30d   : > { %v3029_v28 = vrot.slane %v3028_v58, 1  ;;  %v3129_v40 = vadd.f32 %v3128_v16, %v3127_v55 }
 0x30f   : > { %v3030_v60 = vadd.f32 %v3029_v28, %v3028_v58  ;;  %v3130_v18 = vrot.slane %v3129_v40, 1 }
 0x311   : > { %v3131_v12 = vadd.f32 %v3130_v18, %v3129_v40  ;;  %v9067_v53 = vmul.f32 0.00390625, %v3030_v60 }
 0x313   : > { %v3133_v47 = vmul.f32 0.00390625, %v3131_v12  ;;  %v3134_v26 = vmul.f32 %v9067_v53, %v9067_v53  ;;  %v3167_v31 = vsub.f32 %v9055_v13, %v9067_v53  ;;  %v3159_v32 = vsub.f32 %v8990_v15, %v9067_v53 }
 0x314   : > { %v3160_v50 = vsub.f32 %v8985_v7, %v9067_v53  ;;  %v3161_v42 = vsub.f32 %v9007_v45, %v9067_v53  ;;  %v3162_v54 = vsub.f32 %v9004_v9, %v9067_v53  ;;  %v3163_v3 = vsub.f32 %v9023_v29, %v9067_v53 }
 0x315   : > { %v3135_v63 = vsub.f32 %v3133_v47, %v3134_v26  ;;  %v3164_v13 = vsub.f32 %v9020_v59, %v9067_v53  ;;  %v3165_v20 = vsub.f32 %v9039_v61, %v9067_v53  ;;  %v3166_v15 = vsub.f32 %v9036_v49, %v9067_v53 }
 0x316   : > { %v3168_v7 = vsub.f32 %v9052_v27, %v9067_v53  ;;  %v3137_v45 = vsub.f32 %v8815_v4, %v9067_v53  ;;  %v3138_v9 = vsub.f32 %v8812_v24, %v9067_v53  ;;  %v3139_v29 = vsub.f32 %v8818_v34, %v9067_v53 }
 0x317   : > { %v3136_v30 = vmax.f32 %v3135_v63, 0.0  ;;  %v3140_v59 = vsub.f32 %v8833_v6, %v9067_v53  ;;  %v3141_v61 = vsub.f32 %v8838_v21, %v9067_v53  ;;  %v3142_v49 = vsub.f32 %v8848_v8, %v9067_v53 }
 0x318   : > { %v3143_v27 = vsub.f32 %v8853_v2, %v9067_v53  ;;  %v3144_v4 = vsub.f32 %v8864_v1, %v9067_v53  ;;  %v3145_v24 = vsub.f32 %v8869_v43, %v9067_v53  ;;  %v3146_v34 = vsub.f32 %v8880_v33, %v9067_v53 }
 0x319   : > { %v3169_v19 = vadd.f32 1e-05, %v3136_v30  ;;  %v3147_v6 = vsub.f32 %v8885_v57, %v9067_v53  ;;  %v3148_v21 = vsub.f32 %v8896_v37, %v9067_v53  ;;  %v3149_v8 = vsub.f32 %v8901_v56, %v9067_v53 }
 0x31a   : > { %v3150_v2 = vsub.f32 %v8912_v39, %v9067_v53  ;;  %v3151_v1 = vsub.f32 %v8917_v44, %v9067_v53  ;;  %v3152_v43 = vsub.f32 %v8928_v11, %v9067_v53  ;;  %v3153_v33 = vsub.f32 %v8933_v0, %v9067_v53 }
 0x31b   : > { %7202 = vrsqrt.f32 %v3169_v19  ;;  %v3154_v57 = vsub.f32 %v8944_v25, %v9067_v53  ;;  %v3155_v37 = vsub.f32 %v8951_v38, %v9067_v53  ;;  %v3156_v56 = vsub.f32 %v8960_v46, %v9067_v53 }
 0x31c   : > { %v3157_v39 = vsub.f32 %v8969_v41, %v9067_v53  ;;  %v3158_v44 = vsub.f32 %v8974_v51, %v9067_v53 }
 0x325   : > { %v7203_v22 = vpop.eup %7202 }
 0x326   : > { %v3201_v11 = vmul.f32 %v7203_v22, %v3167_v31  ;;  %v3171_v35 = vmul.f32 %v7203_v22, %v3137_v45  ;;  %v3172_v23 = vmul.f32 %v7203_v22, %v3138_v9  ;;  %v3173_v0 = vmul.f32 %v7203_v22, %v3139_v29 }
 0x327   : > { %v3174_v52 = vmul.f32 %v7203_v22, %v3140_v59  ;;  %v3175_v10 = vmul.f32 %v7203_v22, %v3141_v61  ;;  %v3176_v25 = vmul.f32 %v7203_v22, %v3142_v49  ;;  %v3177_v36 = vmul.f32 %v7203_v22, %v3143_v27 }
 0x328   : > { %v3233_v17 = vmax.f32 %v3201_v11, 0.0  ;;  %v3203_v5 = vmax.f32 %v3171_v35, 0.0  ;;  %v3204_v38 = vmax.f32 %v3172_v23, 0.0  ;;  %v3178_v14 = vmul.f32 %v7203_v22, %v3144_v4 }
 0x329   : > { %v3179_v62 = vmul.f32 %v7203_v22, %v3145_v24  ;;  %v3180_v46 = vmul.f32 %v7203_v22, %v3146_v34  ;;  %v3181_v55 = vmul.f32 %v7203_v22, %v3147_v6  ;;  %v3182_v58 = vmul.f32 %v7203_v22, %v3148_v21  ;;  %v6403_v6 = vld [vmem:[%s10965_s3 + $0x10] sm:$0xff] }
 0x32a   : > { %3265 = vst.msk [vmem:[#allocation2 + $0x181] sm:$0xff] %vm258_vm0, %v3233_v17  ;;  %3235 = vst.msk [vmem:[#allocation2 + $0x19] sm:$0xff] %vm258_vm0, %v3203_v5  ;;  %v3183_v41 = vmul.f32 %v7203_v22, %v3149_v8  ;;  %v3184_v51 = vmul.f32 %v7203_v22, %v3150_v2  ;;  %v3185_v16 = vmul.f32 %v7203_v22, %v3151_v1  ;;  %v3205_v61 = vmax.f32 %v3173_v0, 0.0 }
 0x32b   : > { %3236 = vst.msk [vmem:[#allocation2 + $0x21] sm:$0xff] %vm258_vm0, %v3204_v38  ;;  %v9138_v28 = vmul.f32 %v7203_v22, %v3152_v43  ;;  %v9140_v40 = vmul.f32 %v7203_v22, %v3153_v33  ;;  %v9142_v60 = vmul.f32 %v7203_v22, %v3154_v57  ;;  %v9144_v18 = vmul.f32 %v7203_v22, %v3155_v37  ;;  %v6404_v43 = vld [vmem:[%s10965_s3 + $0x18] sm:$0xf] }
 0x32c   : > { %v9146_v12 = vmul.f32 %v7203_v22, %v3156_v56  ;;  %v9148_v53 = vmul.f32 %v7203_v22, %v3157_v39  ;;  %v9150_v47 = vmul.f32 %v7203_v22, %v3158_v44  ;;  %v9152_v26 = vmul.f32 %v7203_v22, %v3159_v32  ;;  %3237 = vst.msk [vmem:[#allocation2 + $0x31] sm:$0xff] %vm258_vm0, %v3205_v61 }
 0x32d   : > { %v9154_v31 = vmul.f32 %v7203_v22, %v3160_v50  ;;  %v9156_v63 = vmul.f32 %v7203_v22, %v3161_v42  ;;  %v9158_v30 = vmul.f32 %v7203_v22, %v3162_v54  ;;  %v9160_v19 = vmul.f32 %v7203_v22, %v3163_v3  ;;  %3267 = vst.msk [vmem:[#allocation2 + $0x1] sm:$0xff] %vm258_vm0, %v3205_v61 }
 0x32e   : > { %v9162_v45 = vmul.f32 %v7203_v22, %v3164_v13  ;;  %v9164_v9 = vmul.f32 %v7203_v22, %v3165_v20  ;;  %v9166_v29 = vmul.f32 %v7203_v22, %v3166_v15  ;;  %v9168_v59 = vmul.f32 %v7203_v22, %v3168_v7 }
 0x32f   : > { %v3206_v49 = vmax.f32 %v3174_v52, 0.0  ;;  %v3207_v32 = vmax.f32 %v3175_v10, 0.0  ;;  %v3208_v27 = vmax.f32 %v3176_v25, 0.0  ;;  %v3209_v50 = vmax.f32 %v3177_v36, 0.0 }
 0x330   : > { %v3210_v4 = vmax.f32 %v3178_v14, 0.0  ;;  %v3211_v42 = vmax.f32 %v3179_v62, 0.0  ;;  %v3212_v24 = vmax.f32 %v3180_v46, 0.0  ;;  %v3213_v54 = vmax.f32 %v3181_v55, 0.0 }
 0x331   : > { %v3272_v13 = vld [vmem:[#allocation2 + $0x1a] sm:$0x1]  ;;  %v3214_v20 = vmax.f32 %v3182_v58, 0.0  ;;  %3238 = vst.msk [vmem:[#allocation2 + $0x39] sm:$0xff] %vm258_vm0, %v3206_v49  ;;  %3239 = vst.msk [vmem:[#allocation2 + $0x49] sm:$0xff] %vm258_vm0, %v3207_v32  ;;  %v3215_v15 = vmax.f32 %v3183_v41, 0.0  ;;  %v7045_v17 = vpack.c.bf16 %v6404_v43, %v6403_v6 }
 0x332   : > { %v3308_v3 = vld [vmem:[#allocation2 + $0x27] sm:$0x1]  ;;  %3240 = vst.msk [vmem:[#allocation2 + $0x51] sm:$0xff] %vm258_vm0, %v3208_v27  ;;  %3241 = vst.msk [vmem:[#allocation2 + $0x61] sm:$0xff] %vm258_vm0, %v3209_v50  ;;  %v3216_v7 = vmax.f32 %v3184_v51, 0.0  ;;  %v3217_v34 = vmax.f32 %v3185_v16, 0.0 }
 0x333   : > { %3268 = vst.msk [vmem:[#allocation2 + $0x9] sm:$0xff] %vm258_vm0, %v3206_v49  ;;  %3242 = vst.msk [vmem:[#allocation2 + $0x69] sm:$0xff] %vm258_vm0, %v3210_v4  ;;  %v3218_v21 = vmax.f32 %v9138_v28, 0.0  ;;  %v3219_v8 = vmax.f32 %v9140_v40, 0.0  ;;  %v3220_v2 = vmax.f32 %v9142_v60, 0.0  ;;  %v3221_v1 = vmax.f32 %v9144_v18, 0.0  ;;  %7047 = vmatprep.subr.msk.bf16.mxu1 %vm7649_vm6, %v7045_v17 }
 0x334   : > { %3326 = vst.msk [vmem:[#allocation2 + $0x29] sm:$0x1] %vm314_vm1, %v3308_v3  ;;  %3290 = vst.msk [vmem:[#allocation2 + $0x18] sm:$0x1] %vm314_vm1, %v3272_v13  ;;  %v3222_v33 = vmax.f32 %v9146_v12, 0.0  ;;  %v3223_v57 = vmax.f32 %v9148_v53, 0.0  ;;  %7050 = vmatpush3.bf16.msk.msra.mxu1 %vm7649_vm6, %v7045_v17 }
 0x335   : > { %3243 = vst.msk [vmem:[#allocation2 + $0x79] sm:$0xff] %vm258_vm0, %v3211_v42  ;;  %3244 = vst.msk [vmem:[#allocation2 + $0x81] sm:$0xff] %vm258_vm0, %v3212_v24  ;;  %v3224_v22 = vmax.f32 %v9150_v47, 0.0  ;;  %v3225_v37 = vmax.f32 %v9152_v26, 0.0  ;;  %v3287_v56 = vld [vmem:[#allocation2 + $0x182] sm:$0x1] }
 0x336   : > { %3245 = vst.msk [vmem:[#allocation2 + $0x91] sm:$0xff] %vm258_vm0, %v3213_v54  ;;  %3246 = vst.msk [vmem:[#allocation2 + $0x99] sm:$0xff] %vm258_vm0, %v3214_v20  ;;  %v3226_v39 = vmax.f32 %v9154_v31, 0.0  ;;  %v3227_v44 = vmax.f32 %v9156_v63, 0.0  ;;  %v3228_v11 = vmax.f32 %v9158_v30, 0.0  ;;  %v3229_v35 = vmax.f32 %v9160_v19, 0.0 }
 0x337   : > { %3247 = vst.msk [vmem:[#allocation2 + $0xa9] sm:$0xff] %vm258_vm0, %v3215_v15  ;;  %3248 = vst.msk [vmem:[#allocation2 + $0xb1] sm:$0xff] %vm258_vm0, %v3216_v7  ;;  %v3230_v23 = vmax.f32 %v9162_v45, 0.0  ;;  %v3231_v0 = vmax.f32 %v9164_v9, 0.0  ;;  %v3232_v52 = vmax.f32 %v9166_v29, 0.0  ;;  %v3234_v10 = vmax.f32 %v9168_v59, 0.0 }
 0x338   : > { %3249 = vst.msk [vmem:[#allocation2 + $0xc1] sm:$0xff] %vm258_vm0, %v3217_v34  ;;  %3250 = vst.msk [vmem:[#allocation2 + $0xc9] sm:$0xff] %vm258_vm0, %v3218_v21  ;;  %v9218_v25 = vld [vmem:[#allocation2 + $0x20] sm:$0xff]  ;;  %v3273_v36 = vld [vmem:[#allocation2 + $0x32] sm:$0x1] }
 0x339   : > { %3251 = vst.msk [vmem:[#allocation2 + $0xd9] sm:$0xff] %vm258_vm0, %v3219_v8  ;;  %3252 = vst.msk [vmem:[#allocation2 + $0xe1] sm:$0xff] %vm258_vm0, %v3220_v2  ;;  %v3271_v5 = vld [vmem:[#allocation2 + $0x2] sm:$0x1]  ;;  %v3309_v38 = vld [vmem:[#allocation2 + $0x3f] sm:$0x1] }
 0x33a   : > { %3253 = vst.msk [vmem:[#allocation2 + $0xf1] sm:$0xff] %vm258_vm0, %v3221_v1  ;;  %3254 = vst.msk [vmem:[#allocation2 + $0xf9] sm:$0xff] %vm258_vm0, %v3222_v33  ;;  %v3310_v14 = vld [vmem:[#allocation2 + $0x57] sm:$0x1]  ;;  %v9239_v55 = vrot.slane %v9218_v25, 1  ;;  %v9260_v31 = vrot.slane %v9218_v25, 2 }
 0x33b   : > { %3305 = vst.msk [vmem:[#allocation2 + $0x180] sm:$0x1] %vm314_vm1, %v3287_v56  ;;  %3291 = vst.msk [vmem:[#allocation2 + $0x30] sm:$0x1] %vm314_vm1, %v3273_v36  ;;  %v3859_v62 = vld [vmem:[#allocation2 + $0x28] sm:$0x3] }
 0x33c   : > { %3255 = vst.msk [vmem:[#allocation2 + $0x109] sm:$0xff] %vm258_vm0, %v3223_v57  ;;  %3256 = vst.msk [vmem:[#allocation2 + $0x111] sm:$0xff] %vm258_vm0, %v3224_v22  ;;  %v9232_v46 = vld [vmem:[#allocation2 + $0x18] sm:$0xff]  ;;  %v3956_v58 = vrot.slane %v3859_v62, 1  ;;  %v3274_v51 = vld [vmem:[#allocation2 + $0x4a] sm:$0x1] }
 0x33d   : > { %3257 = vst.msk [vmem:[#allocation2 + $0x121] sm:$0xff] %vm258_vm0, %v3225_v37  ;;  %3258 = vst.msk [vmem:[#allocation2 + $0x129] sm:$0xff] %vm258_vm0, %v3226_v39  ;;  %v3953_v41 = vrot.slane %v9232_v46, 1  ;;  %v4132_v16 = vrot.slane %v3859_v62, 2  ;;  %v4129_v28 = vrot.slane %v9232_v46, 2  ;;  %v9263_v19 = vld [vmem:[#allocation2 + $0x38] sm:$0xff] }
 0x33e   : > { %3259 = vst.msk [vmem:[#allocation2 + $0x139] sm:$0xff] %vm258_vm0, %v3227_v44  ;;  %3260 = vst.msk [vmem:[#allocation2 + $0x141] sm:$0xff] %vm258_vm0, %v3228_v11  ;;  %v3311_v40 = vld [vmem:[#allocation2 + $0x6f] sm:$0x1]  ;;  %v3957_v60 = vsel %vm465_vm3, %v9239_v55, %v3956_v58  ;;  %v3275_v12 = vld [vmem:[#allocation2 + $0x62] sm:$0x1] }
 0x33f   : > { %3261 = vst.msk [vmem:[#allocation2 + $0x151] sm:$0xff] %vm258_vm0, %v3229_v35  ;;  %3262 = vst.msk [vmem:[#allocation2 + $0x159] sm:$0xff] %vm258_vm0, %v3230_v23  ;;  %v9250_v18 = vsel %vm465_vm3, %v3953_v41, %v9239_v55  ;;  %v3312_v53 = vld [vmem:[#allocation2 + $0x87] sm:$0x1]  ;;  %v3276_v47 = vld [vmem:[#allocation2 + $0x7a] sm:$0x1]  ;;  %4035 = vrot.lane.b32.xlu1 %v3957_v60, %s7275_s25  ;;  %v4133_v29 = vsel %vm642_vm2, %v9260_v31, %v4132_v16  ;;  %v9273_v59 = vsel %vm642_vm2, %v4129_v28, %v9260_v31 }
 0x340   : > { %3263 = vst.msk [vmem:[#allocation2 + $0x169] sm:$0xff] %vm258_vm0, %v3231_v0  ;;  %3264 = vst.msk [vmem:[#allocation2 + $0x171] sm:$0xff] %vm258_vm0, %v3232_v52  ;;  %4033 = vrot.lane.b32.xlu0 %v9250_v18, %s7275_s25  ;;  %v3313_v26 = vld [vmem:[#allocation2 + $0x9f] sm:$0x1]  ;;  %v3277_v63 = vld [vmem:[#allocation2 + $0x92] sm:$0x1] }
 0x341   : > { %3266 = vst.msk [vmem:[#allocation2 + $0x189] sm:$0xff] %vm258_vm0, %v3234_v10  ;;  %3269 = vst.msk [vmem:[#allocation2 + $0x199] sm:$0xff] %vm258_vm0, %v3231_v0  ;;  %v3314_v30 = vld [vmem:[#allocation2 + $0xb7] sm:$0x1]  ;;  %v3278_v9 = vld [vmem:[#allocation2 + $0xaa] sm:$0x1] }
 0x342   : > { %3270 = vst.msk [vmem:[#allocation2 + $0x1a1] sm:$0xff] %vm258_vm0, %v3232_v52  ;;  %v9265_v45 = vld [vmem:[#allocation2 + $0x30] sm:$0xff]  ;;  %v3315_v27 = vld [vmem:[#allocation2 + $0xcf] sm:$0x1]  ;;  %v9281_v50 = vrot.slane %v9263_v19, 1  ;;  %v9299_v7 = vrot.slane %v9263_v19, 2 }
 0x343   : > { %3289 = vst.msk [vmem:[#allocation2] sm:$0x1] %vm314_vm1, %v3271_v5  ;;  %3327 = vst.msk [vmem:[#allocation2 + $0x41] sm:$0x1] %vm314_vm1, %v3309_v38  ;;  %v3958_v49 = vrot.slane %v9265_v45, 1  ;;  %4211 = vrot.lane.b32.xlu1 %v4133_v29, %s7274_s24  ;;  %v4134_v13 = vrot.slane %v9265_v45, 2 }
 0x344   : > { %3328 = vst.msk [vmem:[#allocation2 + $0x59] sm:$0x1] %vm314_vm1, %v3310_v14  ;;  %3292 = vst.msk [vmem:[#allocation2 + $0x48] sm:$0x1] %vm314_vm1, %v3274_v51  ;;  %4209 = vrot.lane.b32.xlu0 %v9273_v59, %s7274_s24  ;;  %v3279_v4 = vld [vmem:[#allocation2 + $0xc2] sm:$0x1] }
 0x345   : > { %3329 = vst.msk [vmem:[#allocation2 + $0x71] sm:$0x1] %vm314_vm1, %v3311_v40  ;;  %3293 = vst.msk [vmem:[#allocation2 + $0x60] sm:$0x1] %vm314_vm1, %v3275_v12  ;;  %v3316_v42 = vld [vmem:[#allocation2 + $0xe7] sm:$0x1]  ;;  %v9289_v54 = vsel %vm465_vm3, %v3958_v49, %v9281_v50  ;;  %v9308_v2 = vsel %vm642_vm2, %v4134_v13, %v9299_v7 }
 0x346   : > { %3330 = vst.msk [vmem:[#allocation2 + $0x89] sm:$0x1] %vm314_vm1, %v3312_v53  ;;  %3294 = vst.msk [vmem:[#allocation2 + $0x78] sm:$0x1] %vm314_vm1, %v3276_v47  ;;  %v3280_v34 = vld [vmem:[#allocation2 + $0xda] sm:$0x1] }
 0x347   : > { %3331 = vst.msk [vmem:[#allocation2 + $0xa1] sm:$0x1] %vm314_vm1, %v3313_v26  ;;  %3295 = vst.msk [vmem:[#allocation2 + $0x90] sm:$0x1] %vm314_vm1, %v3277_v63  ;;  %v9301_v6 = vld [vmem:[#allocation2 + $0x50] sm:$0xff]  ;;  %v9339_v5 = vld [vmem:[#allocation2 + $0x68] sm:$0xff] }
 0x348   : > { %3332 = vst.msk [vmem:[#allocation2 + $0xb9] sm:$0x1] %vm314_vm1, %v3314_v30  ;;  %3296 = vst.msk [vmem:[#allocation2 + $0xa8] sm:$0x1] %vm314_vm1, %v3278_v9  ;;  %4037 = vrot.lane.b32.xlu0 %v9289_v54, %s7275_s25  ;;  %v3317_v21 = vld [vmem:[#allocation2 + $0xff] sm:$0x1] }
 0x349   : > { %3333 = vst.msk [vmem:[#allocation2 + $0xd1] sm:$0x1] %vm314_vm1, %v3315_v27  ;;  %3297 = vst.msk [vmem:[#allocation2 + $0xc0] sm:$0x1] %vm314_vm1, %v3279_v4  ;;  %v3281_v33 = vld [vmem:[#allocation2 + $0xf2] sm:$0x1] }
 0x34a   : > { %v3862_v61 = vld [vmem:[#allocation2 + $0x40] sm:$0x3]  ;;  %3334 = vst.msk [vmem:[#allocation2 + $0xe9] sm:$0x1] %vm314_vm1, %v3316_v42  ;;  %3298 = vst.msk [vmem:[#allocation2 + $0xd8] sm:$0x1] %vm314_vm1, %v3280_v34 }
 0x34b   : > { %v3961_v32 = vrot.slane %v3862_v61, 1  ;;  %v4137_v3 = vrot.slane %v3862_v61, 2  ;;  %v3865_v20 = vld [vmem:[#allocation2 + $0x58] sm:$0x3]  ;;  %v9296_v15 = vld [vmem:[#allocation2 + $0x48] sm:$0xff]  ;;  %v9317_v57 = vrot.slane %v9301_v6, 1 }
 0x34c   : > { %v3966_v1 = vrot.slane %v3865_v20, 1  ;;  %v3963_v43 = vrot.slane %v9296_v15, 1  ;;  %3335 = vst.msk [vmem:[#allocation2 + $0x101] sm:$0x1] %vm314_vm1, %v3317_v21  ;;  %4213 = vrot.lane.b32.xlu0 %v9308_v2, %s7274_s24  ;;  %3299 = vst.msk [vmem:[#allocation2 + $0xf0] sm:$0x1] %vm314_vm1, %v3281_v33 }
 0x34d   : > { %v3962_v24 = vsel %vm465_vm3, %v9281_v50, %v3961_v32  ;;  %v4138_v8 = vsel %vm642_vm2, %v9299_v7, %v4137_v3  ;;  %v3318_v22 = vld [vmem:[#allocation2 + $0x117] sm:$0x1]  ;;  %v3282_v37 = vld [vmem:[#allocation2 + $0x10a] sm:$0x1]  ;;  %v3319_v56 = vld [vmem:[#allocation2 + $0x12f] sm:$0x1] }
 0x34e   : > { %4039 = vrot.lane.b32.xlu1 %v3962_v24, %s7275_s25  ;;  %3336 = vst.msk [vmem:[#allocation2 + $0x119] sm:$0x1] %vm314_vm1, %v3318_v22  ;;  %3300 = vst.msk [vmem:[#allocation2 + $0x108] sm:$0x1] %vm314_vm1, %v3282_v37  ;;  %v3967_v39 = vsel %vm465_vm3, %v9317_v57, %v3966_v1  ;;  %v9325_v44 = vsel %vm465_vm3, %v3963_v43, %v9317_v57  ;;  %v4142_v11 = vrot.slane %v3865_v20, 2  ;;  %v4139_v35 = vrot.slane %v9296_v15, 2 }
 0x34f   : > { %3337 = vst.msk [vmem:[#allocation2 + $0x131] sm:$0x1] %vm314_vm1, %v3319_v56  ;;  %v3283_v23 = vld [vmem:[#allocation2 + $0x122] sm:$0x1]  ;;  %v3868_v0 = vld [vmem:[#allocation2 + $0x70] sm:$0x3] }
 0x350   : > { %4041 = vrot.lane.b32.xlu0 %v9325_v44, %s7275_s25  ;;  %v9332_v52 = vld [vmem:[#allocation2 + $0x60] sm:$0xff]  ;;  %3301 = vst.msk [vmem:[#allocation2 + $0x120] sm:$0x1] %vm314_vm1, %v3283_v23  ;;  %v9336_v36 = vrot.slane %v9301_v6, 2  ;;  %v3284_v17 = vld [vmem:[#allocation2 + $0x13a] sm:$0x1] }
 0x351   : > { %v3320_v10 = vld [vmem:[#allocation2 + $0x147] sm:$0x1]  ;;  %3302 = vst.msk [vmem:[#allocation2 + $0x138] sm:$0x1] %vm314_vm1, %v3284_v17  ;;  %v3321_v38 = vld [vmem:[#allocation2 + $0x15f] sm:$0x1] }
 0x352   : > { %4215 = vrot.lane.b32.xlu1 %v4138_v8, %s7274_s24  ;;  %3338 = vst.msk [vmem:[#allocation2 + $0x149] sm:$0x1] %vm314_vm1, %v3320_v10  ;;  %v4143_v14 = vsel %vm642_vm2, %v9336_v36, %v4142_v11  ;;  %v9346_v62 = vsel %vm642_vm2, %v4139_v35, %v9336_v36  ;;  %v3971_v58 = vrot.slane %v3868_v0, 1  ;;  %v3968_v41 = vrot.slane %v9332_v52, 1  ;;  %3339 = vst.msk [vmem:[#allocation2 + $0x161] sm:$0x1] %vm314_vm1, %v3321_v38 }
 0x353   : > { %v3285_v51 = vld [vmem:[#allocation2 + $0x152] sm:$0x1]  ;;  %v3322_v16 = vld [vmem:[#allocation2 + $0x177] sm:$0x1]  ;;  %v3286_v28 = vld [vmem:[#allocation2 + $0x16a] sm:$0x1] }
 0x354   : > { %4217 = vrot.lane.b32.xlu0 %v9346_v62, %s7274_s24  ;;  %3303 = vst.msk [vmem:[#allocation2 + $0x150] sm:$0x1] %vm314_vm1, %v3285_v51  ;;  %v9355_v40 = vrot.slane %v9339_v5, 1  ;;  %3340 = vst.msk [vmem:[#allocation2 + $0x179] sm:$0x1] %vm314_vm1, %v3322_v16  ;;  %v4147_v53 = vrot.slane %v3868_v0, 2 }
 0x355   : > { %3304 = vst.msk [vmem:[#allocation2 + $0x168] sm:$0x1] %vm314_vm1, %v3286_v28  ;;  %v4144_v47 = vrot.slane %v9332_v52, 2  ;;  %v3323_v26 = vld [vmem:[#allocation2 + $0x18f] sm:$0x1]  ;;  %v9369_v30 = vld [vmem:[#allocation2 + $0x78] sm:$0xff] }
 0x356   : > { %4043 = vrot.lane.b32.xlu1 %v3967_v39, %s7275_s25  ;;  %v3972_v60 = vsel %vm465_vm3, %v9355_v40, %v3971_v58  ;;  %v9363_v12 = vsel %vm465_vm3, %v3968_v41, %v9355_v40  ;;  %v3871_v63 = vld [vmem:[#allocation2 + $0x88] sm:$0x3]  ;;  %3341 = vst.msk [vmem:[#allocation2 + $0x191] sm:$0x1] %vm314_vm1, %v3323_v26  ;;  %v3307_v9 = vld [vmem:[#allocation2 + $0xf] sm:$0x1] }
 0x357   : > { %v9373_v29 = vrot.slane %v9339_v5, 2  ;;  %3325 = vst.msk [vmem:[#allocation2 + $0x11] sm:$0x1] %vm314_vm1, %v3307_v9  ;;  %v9376_v61 = vld [vmem:[#allocation2 + $0x80] sm:$0xff]  ;;  %v3976_v27 = vrot.slane %v3871_v63, 1  ;;  %v3973_v4 = vrot.slane %v9369_v30, 1 }
 0x358   : > { %4045 = vrot.lane.b32.xlu0 %v9363_v12, %s7275_s25  ;;  %v9389_v42 = vrot.slane %v9376_v61, 1  ;;  %v4152_v13 = vrot.slane %v3871_v63, 2  ;;  %v4149_v20 = vrot.slane %v9369_v30, 2  ;;  %v3874_v34 = vld [vmem:[#allocation2 + $0xa0] sm:$0x3]  ;;  %v9401_v21 = vld [vmem:[#allocation2 + $0x90] sm:$0xff] }
 0x359   : > { %v4148_v49 = vsel %vm642_vm2, %v9373_v29, %v4147_v53  ;;  %v9382_v32 = vsel %vm642_vm2, %v4144_v47, %v9373_v29  ;;  %v9404_v8 = vrot.slane %v9376_v61, 2  ;;  %v9406_v1 = vld [vmem:[#allocation2 + $0x98] sm:$0xff]  ;;  %v3981_v22 = vrot.slane %v3874_v34, 1  ;;  %v9431_v10 = vld [vmem:[#allocation2 + $0xa8] sm:$0xff]  ;;  %v9436_v38 = vld [vmem:[#allocation2 + $0xb0] sm:$0xff] }
 0x35a   : > { %4219 = vrot.lane.b32.xlu1 %v4143_v14, %s7274_s24  ;;  %v3977_v24 = vsel %vm465_vm3, %v9389_v42, %v3976_v27  ;;  %v9395_v3 = vsel %vm465_vm3, %v3973_v4, %v9389_v42  ;;  %v3978_v37 = vrot.slane %v9401_v21, 1  ;;  %v9419_v56 = vrot.slane %v9406_v1, 1  ;;  %v3877_v0 = vld [vmem:[#allocation2 + $0xb8] sm:$0x3]  ;;  %v3880_v26 = vld [vmem:[#allocation2 + $0xd0] sm:$0x3] }
 0x35b   : > { %v4153_v43 = vsel %vm642_vm2, %v9404_v8, %v4152_v13  ;;  %v9412_v33 = vsel %vm642_vm2, %v4149_v20, %v9404_v8  ;;  %v4157_v35 = vrot.slane %v3874_v34, 2  ;;  %v4154_v23 = vrot.slane %v9401_v21, 2  ;;  %v9461_v63 = vld [vmem:[#allocation2 + $0xc0] sm:$0xff]  ;;  %v7237_v48 = vld [vmem:[#allocation2 + $0x18] sm:$0xff] }
 0x35c   : > { %4221 = vrot.lane.b32.xlu0 %v9382_v32, %s7274_s24  ;;  %v3982_v39 = vsel %vm465_vm3, %v9419_v56, %v3981_v22  ;;  %v9425_v11 = vsel %vm465_vm3, %v3978_v37, %v9419_v56  ;;  %v9434_v17 = vrot.slane %v9406_v1, 2  ;;  %v3986_v41 = vrot.slane %v3877_v0, 1  ;;  %v3324_v20 = vld [vmem:[#allocation2 + $0x1a7] sm:$0x1] }
 0x35d   : > { %v3983_v51 = vrot.slane %v9431_v10, 1  ;;  %v9449_v16 = vrot.slane %v9436_v38, 1  ;;  %v4162_v53 = vrot.slane %v3877_v0, 2  ;;  %v4159_v47 = vrot.slane %v9431_v10, 2  ;;  %3342 = vst.msk [vmem:[#allocation2 + $0x1a9] sm:$0x1] %vm314_vm1, %v3324_v20 }
 0x35e   : > { %4047 = vrot.lane.b32.xlu1 %v3972_v60, %s7275_s25  ;;  %v4158_v14 = vsel %vm642_vm2, %v9434_v17, %v4157_v35  ;;  %v9442_v58 = vsel %vm642_vm2, %v4154_v23, %v9434_v17  ;;  %v9464_v9 = vrot.slane %v9436_v38, 2  ;;  %v3988_v13 = vrot.slane %v9461_v63, 1  ;;  %v3883_v23 = vld [vmem:[#allocation2 + $0xe8] sm:$0x3]  ;;  %v9493_v0 = vld [vmem:[#allocation2 + $0xd8] sm:$0xff] }
 0x35f   : > { %v3987_v28 = vsel %vm465_vm3, %v9449_v16, %v3986_v41  ;;  %v9455_v60 = vsel %vm465_vm3, %v3983_v51, %v9449_v16  ;;  %v4164_v35 = vrot.slane %v9461_v63, 2  ;;  %v9498_v41 = vld [vmem:[#allocation2 + $0xe0] sm:$0xff]  ;;  %v4169_v20 = vrot.slane %v9493_v0, 2 }
 0x360   : > { %4049 = vrot.lane.b32.xlu0 %v9395_v3, %s7275_s25  ;;  %11225 = vst [vmem:[#allocation41_spill] sm:$0xff] %v9455_v60  ;;  %11226 = vst [vmem:[#allocation36_spill] sm:$0xff] %v9464_v9  ;;  %v4163_v27 = vsel %vm642_vm2, %v9464_v9, %v4162_v53  ;;  %v9472_v4 = vsel %vm642_vm2, %v4159_v47, %v9464_v9  ;;  %v3996_v53 = vrot.slane %v3883_v23, 1  ;;  %v3993_v47 = vrot.slane %v9493_v0, 1 }
 0x361   : > { %11227 = vst [vmem:[#allocation35_spill] sm:$0xff] %v9472_v4 }
 0x362   : > { %4223 = vrot.lane.b32.xlu1 %v4148_v49, %s7274_s24  ;;  %v9466_v49 = vld [vmem:[#allocation2 + $0xc8] sm:$0xff] }
 0x363   : > { %v9479_v34 = vrot.slane %v9466_v49, 1 }
 0x364   : > { %4225 = vrot.lane.b32.xlu0 %v9412_v33, %s7274_s24 }
 0x365   : > { %11228 = vst [vmem:[#allocation38_spill] sm:$0xff] %v9479_v34  ;;  %v9487_v37 = vsel %vm465_vm3, %v3988_v13, %v9479_v34  ;;  %v4172_v13 = vrot.slane %v3883_v23, 2 }
 0x366   : > { %4051 = vrot.lane.b32.xlu1 %v3977_v24, %s7275_s25  ;;  %v3991_v24 = vrot.slane %v3880_v26, 1  ;;  %11229 = vst [vmem:[#allocation37_spill] sm:$0xff] %v9487_v37 }
 0x368   : > { %4053 = vrot.lane.b32.xlu0 %v9425_v11, %s7275_s25  ;;  %v3992_v22 = vsel %vm465_vm3, %v9479_v34, %v3991_v24 }
 0x36a   : > { %4227 = vrot.lane.b32.xlu1 %v4153_v43, %s7274_s24  ;;  %v3288_v43 = vld [vmem:[#allocation2 + $0x19a] sm:$0x1] }
 0x36b   : > { %3306 = vst.msk [vmem:[#allocation2 + $0x198] sm:$0x1] %vm314_vm1, %v3288_v43  ;;  %v3886_v43 = vld [vmem:[#allocation2 + $0x100] sm:$0x3] }
 0x36c   : > { %4229 = vrot.lane.b32.xlu0 %v9442_v58, %s7274_s24 }
 0x36e   : > { %4055 = vrot.lane.b32.xlu1 %v3982_v39, %s7275_s25  ;;  %v4167_v39 = vrot.slane %v3880_v26, 2  ;;  %v9511_v26 = vrot.slane %v9498_v41, 1 }
 0x370   : > { %4057 = vrot.lane.b32.xlu0 %v9455_v60, %s7275_s25  ;;  %11232 = vst [vmem:[#allocation39_spill] sm:$0xff] %v9511_v26  ;;  %v9517_v24 = vsel %vm465_vm3, %v3993_v47, %v9511_v26 }
 0x371   : > { %11233 = vst [vmem:[#allocation40_spill] sm:$0xff] %v9517_v24 }
 0x372   : > { %4231 = vrot.lane.b32.xlu1 %v4158_v14, %s7274_s24  ;;  %v9496_v14 = vrot.slane %v9466_v49, 2 }
 0x374   : > { %4233 = vrot.lane.b32.xlu0 %v9472_v4, %s7274_s24  ;;  %11230 = vst [vmem:[#allocation46_spill] sm:$0xff] %v9496_v14  ;;  %v4168_v51 = vsel %vm642_vm2, %v9496_v14, %v4167_v39  ;;  %v9526_v39 = vrot.slane %v9498_v41, 2 }
 0x376   : > { %4059 = vrot.lane.b32.xlu1 %v3987_v28, %s7275_s25  ;;  %v9504_v28 = vsel %vm642_vm2, %v4164_v35, %v9496_v14  ;;  %11235 = vst [vmem:[#allocation42_spill] sm:$0xff] %v9526_v39  ;;  %v9528_v35 = vld [vmem:[#allocation2 + $0xf8] sm:$0xff]  ;;  %v9534_v23 = vsel %vm642_vm2, %v4169_v20, %v9526_v39  ;;  %v4177_v20 = vrot.slane %v3886_v43, 2 }
 0x377   : > { %11231 = vst [vmem:[#allocation47_spill] sm:$0xff] %v9504_v28  ;;  %11236 = vst [vmem:[#allocation52_spill] sm:$0xff] %v9528_v35 }
 0x378   : > { %4061 = vrot.lane.b32.xlu0 %v9487_v37, %s7275_s25  ;;  %11237 = vst [vmem:[#allocation53_spill] sm:$0xff] %v9534_v23  ;;  %v9588_v37 = vld [vmem:[#allocation2 + $0x128] sm:$0xff] }
 0x379   : > { %11248 = vst [vmem:[#allocation64_spill] sm:$0xff] %v9588_v37 }
 0x37a   : > { %4235 = vrot.lane.b32.xlu1 %v4163_v27, %s7274_s24  ;;  %v3997_v27 = vsel %vm465_vm3, %v9511_v26, %v3996_v53  ;;  %v4001_v53 = vrot.slane %v3886_v43, 1  ;;  %v9556_v26 = vrot.slane %v9528_v35, 2 }
 0x37c   : > { %4237 = vrot.lane.b32.xlu0 %v9504_v28, %s7274_s24  ;;  %11241 = vst [vmem:[#allocation49_spill] sm:$0xff] %v9556_v26  ;;  %v9558_v28 = vld [vmem:[#allocation2 + $0x110] sm:$0xff] }
 0x37d   : > { %11242 = vst [vmem:[#allocation58_spill] sm:$0xff] %v9558_v28  ;;  %v9586_v14 = vrot.slane %v9558_v28, 2 }
 0x37e   : > { %4063 = vrot.lane.b32.xlu1 %v3992_v22, %s7275_s25  ;;  %v9523_v22 = vld [vmem:[#allocation2 + $0xf0] sm:$0xff] }
 0x37f   : > { %11234 = vst [vmem:[#allocation43_spill] sm:$0xff] %v9523_v22  ;;  %v3998_v47 = vrot.slane %v9523_v22, 1  ;;  %11247 = vst [vmem:[#allocation54_spill] sm:$0xff] %v9586_v14 }
 0x380   : > { %4065 = vrot.lane.b32.xlu0 %v9517_v24, %s7275_s25 }
 0x382   : > { %4239 = vrot.lane.b32.xlu1 %v4168_v51, %s7274_s24  ;;  %v4173_v51 = vsel %vm642_vm2, %v9526_v39, %v4172_v13  ;;  %v4174_v39 = vrot.slane %v9523_v22, 2 }
 0x384   : > { %4241 = vrot.lane.b32.xlu0 %v9534_v23, %s7274_s24  ;;  %v9553_v23 = vld [vmem:[#allocation2 + $0x108] sm:$0xff]  ;;  %v9564_v43 = vsel %vm642_vm2, %v4174_v39, %v9556_v26 }
 0x385   : > { %11240 = vst [vmem:[#allocation48_spill] sm:$0xff] %v9553_v23  ;;  %11243 = vst [vmem:[#allocation59_spill] sm:$0xff] %v9564_v43 }
 0x386   : > { %4067 = vrot.lane.b32.xlu1 %v3997_v27, %s7275_s25  ;;  %v9541_v27 = vrot.slane %v9528_v35, 1 }
 0x388   : > { %11238 = vst [vmem:[#allocation45_spill] sm:$0xff] %v9541_v27  ;;  %v4002_v24 = vsel %vm465_vm3, %v9541_v27, %v4001_v53  ;;  %v9547_v13 = vsel %vm465_vm3, %v3998_v47, %v9541_v27  ;;  %v4178_v53 = vsel %vm642_vm2, %v9556_v26, %v4177_v20  ;;  %v4179_v26 = vrot.slane %v9553_v23, 2 }
 0x389   : > { %11239 = vst [vmem:[#allocation44_spill] sm:$0xff] %v9547_v13  ;;  %4069 = vrot.lane.b32.xlu0 %v9547_v13, %s7275_s25  ;;  %v9571_v13 = vrot.slane %v9558_v28, 1  ;;  %v9618_v28 = vld [vmem:[#allocation2 + $0x140] sm:$0xff] }
 0x38a   : > { %4243 = vrot.lane.b32.xlu1 %v4173_v51, %s7274_s24  ;;  %v3889_v51 = vld [vmem:[#allocation2 + $0x118] sm:$0x3]  ;;  %11254 = vst [vmem:[#allocation70_spill] sm:$0xff] %v9618_v28 }
 0x38b   : > { %v4006_v47 = vrot.slane %v3889_v51, 1  ;;  %11244 = vst [vmem:[#allocation51_spill] sm:$0xff] %v9571_v13  ;;  %v4182_v39 = vrot.slane %v3889_v51, 2  ;;  %v9594_v51 = vsel %vm642_vm2, %v4179_v26, %v9586_v14 }
 0x38c   : > { %11249 = vst [vmem:[#allocation65_spill] sm:$0xff] %v9594_v51 }
 0x38d   : > { %4245 = vrot.lane.b32.xlu0 %v9564_v43, %s7274_s24  ;;  %v4007_v27 = vsel %vm465_vm3, %v9571_v13, %v4006_v47  ;;  %v9583_v43 = vld [vmem:[#allocation2 + $0x120] sm:$0xff]  ;;  %v4183_v47 = vsel %vm642_vm2, %v9586_v14, %v4182_v39 }
 0x38e   : > { %4071 = vrot.lane.b32.xlu1 %v4002_v24, %s7275_s25  ;;  %v4003_v24 = vrot.slane %v9553_v23, 1  ;;  %11246 = vst [vmem:[#allocation55_spill] sm:$0xff] %v9583_v43  ;;  %v4184_v14 = vrot.slane %v9583_v43, 2  ;;  %v9616_v23 = vrot.slane %v9588_v37, 2 }
 0x390   : > { %v9577_v20 = vsel %vm465_vm3, %v4003_v24, %v9571_v13  ;;  %11253 = vst [vmem:[#allocation60_spill] sm:$0xff] %v9616_v23 }
 0x391   : > { %11245 = vst [vmem:[#allocation50_spill] sm:$0xff] %v9577_v20  ;;  %4073 = vrot.lane.b32.xlu0 %v9577_v20, %s7275_s25  ;;  %v9601_v20 = vrot.slane %v9588_v37, 1  ;;  %v9648_v37 = vld [vmem:[#allocation2 + $0x158] sm:$0xff] }
 0x392   : > { %4247 = vrot.lane.b32.xlu1 %v4178_v53, %s7274_s24  ;;  %v3892_v53 = vld [vmem:[#allocation2 + $0x130] sm:$0x3]  ;;  %11260 = vst [vmem:[#allocation76_spill] sm:$0xff] %v9648_v37 }
 0x393   : > { %v4011_v24 = vrot.slane %v3892_v53, 1  ;;  %11250 = vst [vmem:[#allocation57_spill] sm:$0xff] %v9601_v20  ;;  %v4187_v26 = vrot.slane %v3892_v53, 2  ;;  %v9624_v53 = vsel %vm642_vm2, %v4184_v14, %v9616_v23 }
 0x394   : > { %11255 = vst [vmem:[#allocation71_spill] sm:$0xff] %v9624_v53 }
 0x395   : > { %4249 = vrot.lane.b32.xlu0 %v9594_v51, %s7274_s24  ;;  %v4012_v13 = vsel %vm465_vm3, %v9601_v20, %v4011_v24  ;;  %v9613_v51 = vld [vmem:[#allocation2 + $0x138] sm:$0xff]  ;;  %v4188_v24 = vsel %vm642_vm2, %v9616_v23, %v4187_v26 }
 0x396   : > { %4075 = vrot.lane.b32.xlu1 %v4007_v27, %s7275_s25  ;;  %v4008_v27 = vrot.slane %v9583_v43, 1  ;;  %11252 = vst [vmem:[#allocation61_spill] sm:$0xff] %v9613_v51  ;;  %v4189_v23 = vrot.slane %v9613_v51, 2  ;;  %v9646_v43 = vrot.slane %v9618_v28, 2 }
 0x398   : > { %v9607_v39 = vsel %vm465_vm3, %v4008_v27, %v9601_v20  ;;  %11259 = vst [vmem:[#allocation66_spill] sm:$0xff] %v9646_v43 }
 0x399   : > { %11251 = vst [vmem:[#allocation56_spill] sm:$0xff] %v9607_v39  ;;  %4077 = vrot.lane.b32.xlu0 %v9607_v39, %s7275_s25  ;;  %v9631_v39 = vrot.slane %v9618_v28, 1  ;;  %v9678_v28 = vld [vmem:[#allocation2 + $0x170] sm:$0xff] }
 0x39a   : > { %4251 = vrot.lane.b32.xlu1 %v4183_v47, %s7274_s24  ;;  %v3895_v47 = vld [vmem:[#allocation2 + $0x148] sm:$0x3]  ;;  %11266 = vst [vmem:[#allocation75_spill] sm:$0xff] %v9678_v28 }
 0x39b   : > { %v4016_v27 = vrot.slane %v3895_v47, 1  ;;  %11256 = vst [vmem:[#allocation63_spill] sm:$0xff] %v9631_v39  ;;  %v4192_v14 = vrot.slane %v3895_v47, 2  ;;  %v9654_v47 = vsel %vm642_vm2, %v4189_v23, %v9646_v43 }
 0x39c   : > { %11261 = vst [vmem:[#allocation77_spill] sm:$0xff] %v9654_v47 }
 0x39d   : > { %4253 = vrot.lane.b32.xlu0 %v9624_v53, %s7274_s24  ;;  %v4017_v20 = vsel %vm465_vm3, %v9631_v39, %v4016_v27  ;;  %v9643_v53 = vld [vmem:[#allocation2 + $0x150] sm:$0xff]  ;;  %v4193_v27 = vsel %vm642_vm2, %v9646_v43, %v4192_v14 }
 0x39e   : > { %4079 = vrot.lane.b32.xlu1 %v4012_v13, %s7275_s25  ;;  %v4013_v13 = vrot.slane %v9613_v51, 1  ;;  %11258 = vst [vmem:[#allocation67_spill] sm:$0xff] %v9643_v53  ;;  %v4194_v43 = vrot.slane %v9643_v53, 2  ;;  %v9676_v51 = vrot.slane %v9648_v37, 2 }
 0x3a0   : > { %v9637_v26 = vsel %vm465_vm3, %v4013_v13, %v9631_v39  ;;  %11265 = vst [vmem:[#allocation72_spill] sm:$0xff] %v9676_v51 }
 0x3a1   : > { %11257 = vst [vmem:[#allocation62_spill] sm:$0xff] %v9637_v26  ;;  %4081 = vrot.lane.b32.xlu0 %v9637_v26, %s7275_s25  ;;  %v9661_v26 = vrot.slane %v9648_v37, 1  ;;  %v9708_v37 = vrot.slane %v9678_v28, 2 }
 0x3a2   : > { %4255 = vrot.lane.b32.xlu1 %v4188_v24, %s7274_s24  ;;  %v3898_v24 = vld [vmem:[#allocation2 + $0x160] sm:$0x3] }
 0x3a3   : > { %v4021_v13 = vrot.slane %v3898_v24, 1  ;;  %11262 = vst [vmem:[#allocation69_spill] sm:$0xff] %v9661_v26  ;;  %v4197_v23 = vrot.slane %v3898_v24, 2  ;;  %v9684_v24 = vsel %vm642_vm2, %v4194_v43, %v9676_v51  ;;  %11270 = vst [vmem:[#allocation81_spill] sm:$0xff] %v9708_v37 }
 0x3a4   : > { %11267 = vst [vmem:[#allocation74_spill] sm:$0xff] %v9684_v24 }
 0x3a5   : > { %4257 = vrot.lane.b32.xlu0 %v9654_v47, %s7274_s24  ;;  %v4022_v39 = vsel %vm465_vm3, %v9661_v26, %v4021_v13  ;;  %v9673_v47 = vld [vmem:[#allocation2 + $0x168] sm:$0xff]  ;;  %v4198_v13 = vsel %vm642_vm2, %v9676_v51, %v4197_v23 }
 0x3a6   : > { %4083 = vrot.lane.b32.xlu1 %v4017_v20, %s7275_s25  ;;  %v4018_v20 = vrot.slane %v9643_v53, 1  ;;  %11264 = vst [vmem:[#allocation73_spill] sm:$0xff] %v9673_v47  ;;  %v4199_v51 = vrot.slane %v9673_v47, 2 }
 0x3a8   : > { %v9667_v14 = vsel %vm465_vm3, %v4018_v20, %v9661_v26  ;;  %v3904_v26 = vld [vmem:[#allocation2 + $0x190] sm:$0x3] }
 0x3a9   : > { %11263 = vst [vmem:[#allocation68_spill] sm:$0xff] %v9667_v14  ;;  %4085 = vrot.lane.b32.xlu0 %v9667_v14, %s7275_s25  ;;  %v9691_v14 = vrot.slane %v9678_v28, 1  ;;  %v4207_v35 = vrot.slane %v3904_v26, 2 }
 0x3aa   : > { %4259 = vrot.lane.b32.xlu1 %v4193_v27, %s7274_s24  ;;  %v3901_v27 = vld [vmem:[#allocation2 + $0x178] sm:$0x3] }
 0x3ab   : > { %v4026_v20 = vrot.slane %v3901_v27, 1  ;;  %11268 = vst [vmem:[#allocation79_spill] sm:$0xff] %v9691_v14  ;;  %v4202_v43 = vrot.slane %v3901_v27, 2 }
 0x3ad   : > { %4261 = vrot.lane.b32.xlu0 %v9684_v24, %s7274_s24  ;;  %v4027_v53 = vsel %vm465_vm3, %v9691_v14, %v4026_v20  ;;  %v9705_v24 = vld [vmem:[#allocation2 + $0x180] sm:$0xff]  ;;  %v4031_v20 = vrot.slane %v3904_v26, 1  ;;  %v4203_v27 = vsel %vm642_vm2, %v9708_v37, %v4202_v43 }
 0x3ae   : > { %4087 = vrot.lane.b32.xlu1 %v4022_v39, %s7275_s25  ;;  %v4023_v39 = vrot.slane %v9673_v47, 1  ;;  %v3855_v47 = vld [vmem:[%s10965_s3] sm:$0xff]  ;;  %v4204_v60 = vrot.slane %v9705_v24, 2 }
 0x3b0   : > { %v9697_v23 = vsel %vm465_vm3, %v4023_v39, %v9691_v14  ;;  %v9714_v39 = vsel %vm642_vm2, %v4199_v51, %v9708_v37  ;;  %v3856_v51 = vld [vmem:[%s10965_s3 + $0x8] sm:$0xf] }
 0x3b1   : > { %11269 = vst [vmem:[#allocation78_spill] sm:$0xff] %v9697_v23  ;;  %4089 = vrot.lane.b32.xlu0 %v9697_v23, %s7275_s25  ;;  %v4036_v34 = vpop.permute.xlu1 %4035  ;;  %11271 = vst [vmem:[#allocation80_spill] sm:$0xff] %v9714_v39  ;;  %v4028_v23 = vrot.slane %v9705_v24, 1 }
 0x3b2   : > { %4263 = vrot.lane.b32.xlu1 %v4198_v13, %s7274_s24  ;;  %v9703_v13 = vld [vmem:[#allocation2 + $0x188] sm:$0xff]  ;;  %v4034_v22 = vpop.permute.xlu0 %4033  ;;  %v4306_v43 = vsel %vm258_vm0, %v9218_v25, %v4036_v34  ;;  %v3345_v25 = vld [vmem:[#allocation2 + $0x10] sm:$0x3]  ;;  %v9738_v34 = vld [vmem:[#allocation2] sm:$0xff] }
 0x3b3   : > { %v4305_v37 = vsel %vm258_vm0, %v9232_v46, %v4034_v22  ;;  %v4205_v46 = vrot.slane %v9703_v13, 2 }
 0x3b5   : > { %4265 = vrot.lane.b32.xlu0 %v9714_v39, %s7274_s24  ;;  %v7051_v39 = vpack.c.bf16 %v3856_v51, %v3855_v47  ;;  %v4208_v26 = vsel %vm642_vm2, %v4205_v46, %v4207_v35  ;;  %v3442_v47 = vrot.slane %v3345_v25, 1  ;;  %v3618_v51 = vrot.slane %v3345_v25, 2 }
 0x3b6   : > { %4091 = vrot.lane.b32.xlu1 %v4027_v53, %s7275_s25  ;;  %v4029_v53 = vrot.slane %v9703_v13, 1  ;;  %v4210_v28 = vpop.permute.xlu0 %4209 }
 0x3b7   : > { %v4337_v9 = vsel %vm851_vm7, %v4305_v37, %v4210_v28  ;;  %7053 = vmatprep.subr.msk.bf16.mxu1 %vm7649_vm6, %v7051_v39  ;;  %v9745_v28 = vld [vmem:[#allocation2 + $0x8] sm:$0xff] }
 0x3b8   : > { %v4032_v14 = vsel %vm465_vm3, %v4029_v53, %v4031_v20  ;;  %v4030_v4 = vsel %vm465_vm3, %v4028_v23, %v4029_v53  ;;  %6875 = vmatprep.mubr.msk.f32.mxu1 %vm1401_vm8, %v4337_v9  ;;  %v3440_v9 = vrot.slane %v9745_v28, 1 }
 0x3b9   : > { %4093 = vrot.lane.b32.xlu0 %v4030_v4, %s7275_s25  ;;  %v4206_v4 = vsel %vm642_vm2, %v4204_v60, %v4205_v46 }
 0x3ba   : > { %4267 = vrot.lane.b32.xlu1 %v4203_v27, %s7274_s24  ;;  %v4212_v27 = vpop.permute.xlu1 %4211  ;;  %v4038_v37 = vpop.permute.xlu0 %4037 }
 0x3bb   : > { %v4338_v20 = vsel %vm851_vm7, %v4306_v43, %v4212_v27  ;;  %v4307_v35 = vsel %vm258_vm0, %v9265_v45, %v4038_v37  ;;  %v3615_v43 = vrot.slane %v9738_v34, 2  ;;  %v3616_v45 = vrot.slane %v9745_v28, 2 }
 0x3bc   : > { %6876 = vmatmul.mubr.msk.f32.vlgmr.msra.gmra.mrb[0].mxu1 %vm1401_vm8, %v4338_v20  ;;  %v3443_v20 = vsel %vm465_vm3, %v3440_v9, %v3442_v47 }
 0x3bd   : > { %7056 = vmatpush3.bf16.msk.msra.mxu1 %vm7649_vm6, %v7051_v39  ;;  %4269 = vrot.lane.b32.xlu0 %v4206_v4, %s7274_s24  ;;  %v3619_v37 = vsel %vm642_vm2, %v3616_v45, %v3618_v51 }
 0x3be   : > { %4095 = vrot.lane.b32.xlu1 %v4032_v14, %s7275_s25  ;;  %v3439_v14 = vrot.slane %v9738_v34, 1  ;;  %v4214_v60 = vpop.permute.xlu0 %4213 }
 0x3bf   : > { %v4339_v39 = vsel %vm851_vm7, %v4307_v35, %v4214_v60 }
 0x3c0   : > { %v4040_v22 = vpop.permute.xlu1 %4039  ;;  %v3441_v46 = vsel %vm465_vm3, %v3439_v14, %v3440_v9  ;;  %6878 = vmatprep.mubr.msk.f32.mxu1 %vm1401_vm8, %v4339_v39 }
 0x3c1   : > { %v4308_v23 = vsel %vm258_vm0, %v9263_v19, %v4040_v22  ;;  %3519 = vrot.lane.b32.xlu0 %v3441_v46, %s7275_s25  ;;  %v3348_v19 = vld [vmem:[#allocation2 + $0x28] sm:$0x3] }
 0x3c2   : > { %4271 = vrot.lane.b32.xlu1 %v4208_v26, %s7274_s24  ;;  %v4042_v22 = vpop.permute.xlu0 %4041  ;;  %v3617_v26 = vsel %vm642_vm2, %v3615_v43, %v3616_v45  ;;  %v3447_v4 = vrot.slane %v3348_v19, 1  ;;  %v3623_v51 = vrot.slane %v3348_v19, 2  ;;  %v3351_v43 = vld [vmem:[#allocation2 + $0x40] sm:$0x3] }
 0x3c3   : > { %v4309_v14 = vsel %vm258_vm0, %v9296_v15, %v4042_v22  ;;  %v3452_v39 = vrot.slane %v3351_v43, 1 }
 0x3c4   : > { %v4216_v53 = vpop.permute.xlu1 %4215  ;;  %v3448_v60 = vsel %vm465_vm3, %v9239_v55, %v3447_v4 }
 0x3c5   : > { %v4340_v27 = vsel %vm851_vm7, %v4308_v23, %v4216_v53  ;;  %3695 = vrot.lane.b32.xlu0 %v3617_v26, %s7274_s24 }
 0x3c6   : > { %3521 = vrot.lane.b32.xlu1 %v3443_v20, %s7275_s25  ;;  %6879 = vmatmul.mubr.msk.f32.gmra.mrb[2].mxu1 %vm1401_vm8, %v4340_v27  ;;  %v4218_v23 = vpop.permute.xlu0 %4217  ;;  %v3624_v27 = vsel %vm642_vm2, %v9260_v31, %v3623_v51  ;;  %v3453_v31 = vsel %vm465_vm3, %v9281_v50, %v3452_v39 }
 0x3c7   : > { %v4341_v53 = vsel %vm851_vm7, %v4309_v14, %v4218_v23 }
 0x3c8   : > { %v4044_v25 = vpop.permute.xlu1 %4043  ;;  %6881 = vmatprep.mubr.msk.f32.mxu1 %vm1401_vm8, %v4341_v53 }
 0x3c9   : > { %v4310_v47 = vsel %vm258_vm0, %v9301_v6, %v4044_v25  ;;  %3523 = vrot.lane.b32.xlu0 %v9250_v18, %s7275_s25  ;;  %v3628_v25 = vrot.slane %v3351_v43, 2 }
 0x3ca   : > { %3697 = vrot.lane.b32.xlu1 %v3619_v37, %s7274_s24  ;;  %v4046_v6 = vpop.permute.xlu0 %4045 }
 0x3cb   : > { %v4311_v20 = vsel %vm258_vm0, %v9332_v52, %v4046_v6  ;;  %v3629_v22 = vsel %vm642_vm2, %v9299_v7, %v3628_v25 }
 0x3cc   : > { %v4220_v9 = vpop.permute.xlu1 %4219 }
 0x3cd   : > { %v4342_v35 = vsel %vm851_vm7, %v4310_v47, %v4220_v9  ;;  %3699 = vrot.lane.b32.xlu0 %v9273_v59, %s7274_s24  ;;  %v3354_v59 = vld [vmem:[#allocation2 + $0x58] sm:$0x3] }
 0x3ce   : > { %3525 = vrot.lane.b32.xlu1 %v3448_v60, %s7275_s25  ;;  %6882 = vmatmul.mubr.msk.f32.gmra.mrb[4].mxu1 %vm1401_vm8, %v4342_v35  ;;  %v4222_v46 = vpop.permute.xlu0 %4221  ;;  %v3457_v37 = vrot.slane %v3354_v59, 1  ;;  %v3633_v9 = vrot.slane %v3354_v59, 2 }
 0x3cf   : > { %v4343_v45 = vsel %vm851_vm7, %v4311_v20, %v4222_v46 }
 0x3d0   : > { %v4048_v15 = vpop.permute.xlu1 %4047  ;;  %6884 = vmatprep.mubr.msk.f32.mxu1 %vm1401_vm8, %v4343_v45  ;;  %v3458_v7 = vsel %vm465_vm3, %v9317_v57, %v3457_v37  ;;  %v3634_v23 = vsel %vm642_vm2, %v9336_v36, %v3633_v9 }
 0x3d1   : > { %v4312_v55 = vsel %vm258_vm0, %v9339_v5, %v4048_v15  ;;  %3527 = vrot.lane.b32.xlu0 %v9289_v54, %s7275_s25 }
 0x3d2   : > { %3701 = vrot.lane.b32.xlu1 %v3624_v27, %s7274_s24  ;;  %v4050_v5 = vpop.permute.xlu0 %4049 }
 0x3d3   : > { %v4313_v26 = vsel %vm258_vm0, %v9369_v30, %v4050_v5 }
 0x3d4   : > { %v4224_v18 = vpop.permute.xlu1 %4223 }
 0x3d5   : > { %v4344_v19 = vsel %vm851_vm7, %v4312_v55, %v4224_v18  ;;  %3703 = vrot.lane.b32.xlu0 %v9308_v2, %s7274_s24  ;;  %v3357_v2 = vld [vmem:[#allocation2 + $0x70] sm:$0x3] }
 0x3d6   : > { %3529 = vrot.lane.b32.xlu1 %v3453_v31, %s7275_s25  ;;  %6885 = vmatmul.mubr.msk.f32.gmra.mrb[6].mxu1 %vm1401_vm8, %v4344_v19  ;;  %v4226_v4 = vpop.permute.xlu0 %4225  ;;  %v3462_v35 = vrot.slane %v3357_v2, 1  ;;  %v3638_v15 = vrot.slane %v3357_v2, 2 }
 0x3d7   : > { %v4345_v14 = vsel %vm851_vm7, %v4313_v26, %v4226_v4 }
 0x3d8   : > { %v4052_v52 = vpop.permute.xlu1 %4051  ;;  %6887 = vmatprep.mubr.msk.f32.mxu1 %vm1401_vm8, %v4345_v14  ;;  %v3463_v36 = vsel %vm465_vm3, %v9355_v40, %v3462_v35  ;;  %v3639_v6 = vsel %vm642_vm2, %v9373_v29, %v3638_v15  ;;  %v3372_v15 = vld [vmem:[#allocation2 + $0xe8] sm:$0x3] }
 0x3d9   : > { %v4314_v50 = vsel %vm258_vm0, %v9376_v61, %v4052_v52  ;;  %3531 = vrot.lane.b32.xlu0 %v9325_v44, %s7275_s25 }
 0x3da   : > { %3705 = vrot.lane.b32.xlu1 %v3629_v22, %s7274_s24  ;;  %v4054_v61 = vpop.permute.xlu0 %4053 }
 0x3db   : > { %v4315_v53 = vsel %vm258_vm0, %v9401_v21, %v4054_v61 }
 0x3dc   : > { %v4228_v54 = vpop.permute.xlu1 %4227 }
 0x3dd   : > { %v4346_v47 = vsel %vm851_vm7, %v4314_v50, %v4228_v54  ;;  %3707 = vrot.lane.b32.xlu0 %v9346_v62, %s7274_s24  ;;  %v3360_v62 = vld [vmem:[#allocation2 + $0x88] sm:$0x3] }
 0x3de   : > { %3533 = vrot.lane.b32.xlu1 %v3458_v7, %s7275_s25  ;;  %6888 = vmatmul.mubr.msk.f32.gmra.mrb[8].mxu1 %vm1401_vm8, %v4346_v47  ;;  %v4230_v60 = vpop.permute.xlu0 %4229  ;;  %v3467_v27 = vrot.slane %v3360_v62, 1  ;;  %v3643_v46 = vrot.slane %v3360_v62, 2  ;;  %v11273_v7 = vld [vmem:[#allocation36_spill] sm:$0xff]  ;;  %v11278_v62 = vld [vmem:[#allocation37_spill] sm:$0xff] }
 0x3df   : > { %v4347_v43 = vsel %vm851_vm7, %v4315_v53, %v4230_v60 }
 0x3e0   : > { %v4056_v30 = vpop.permute.xlu1 %4055  ;;  %6890 = vmatprep.mubr.msk.f32.mxu1 %vm1401_vm8, %v4347_v43  ;;  %v3468_v29 = vsel %vm465_vm3, %v9389_v42, %v3467_v27  ;;  %v3644_v19 = vsel %vm642_vm2, %v9404_v8, %v3643_v46 }
 0x3e1   : > { %v4316_v57 = vsel %vm258_vm0, %v9406_v1, %v4056_v30  ;;  %3535 = vrot.lane.b32.xlu0 %v9363_v12, %s7275_s25  ;;  %v11275_v30 = vld [vmem:[#allocation52_spill] sm:$0xff] }
 0x3e2   : > { %3709 = vrot.lane.b32.xlu1 %v3634_v23, %s7274_s24  ;;  %v4058_v1 = vpop.permute.xlu0 %4057  ;;  %v11276_v23 = vld [vmem:[#allocation43_spill] sm:$0xff] }
 0x3e3   : > { %v4317_v39 = vsel %vm258_vm0, %v9431_v10, %v4058_v1 }
 0x3e4   : > { %v4232_v44 = vpop.permute.xlu1 %4231 }
 0x3e5   : > { %v4348_v51 = vsel %vm851_vm7, %v4316_v57, %v4232_v44  ;;  %3711 = vrot.lane.b32.xlu0 %v9382_v32, %s7274_s24  ;;  %v3363_v32 = vld [vmem:[#allocation2 + $0xa0] sm:$0x3] }
 0x3e6   : > { %3537 = vrot.lane.b32.xlu1 %v3463_v36, %s7275_s25  ;;  %6891 = vmatmul.mubr.msk.f32.gmra.mrb[10].mxu1 %vm1401_vm8, %v4348_v51  ;;  %v4234_v55 = vpop.permute.xlu0 %4233  ;;  %v3472_v45 = vrot.slane %v3363_v32, 1  ;;  %v3648_v5 = vrot.slane %v3363_v32, 2  ;;  %v11277_v51 = vld [vmem:[#allocation38_spill] sm:$0xff] }
 0x3e7   : > { %v4349_v18 = vsel %vm851_vm7, %v4317_v39, %v4234_v55  ;;  %v11280_v39 = vld [vmem:[#allocation47_spill] sm:$0xff] }
 0x3e8   : > { %v4060_v21 = vpop.permute.xlu1 %4059  ;;  %6893 = vmatprep.mubr.msk.f32.mxu1 %vm1401_vm8, %v4349_v18  ;;  %v3473_v8 = vsel %vm465_vm3, %v9419_v56, %v3472_v45  ;;  %v3649_v22 = vsel %vm642_vm2, %v9434_v17, %v3648_v5  ;;  %v3663_v45 = vrot.slane %v3372_v15, 2  ;;  %v11286_v5 = vld [vmem:[#allocation53_spill] sm:$0xff] }
 0x3e9   : > { %v4318_v40 = vsel %vm258_vm0, %v9436_v38, %v4060_v21  ;;  %3539 = vrot.lane.b32.xlu0 %v9395_v3, %s7275_s25 }
 0x3ea   : > { %3713 = vrot.lane.b32.xlu1 %v3639_v6, %s7274_s24  ;;  %v4062_v38 = vpop.permute.xlu0 %4061  ;;  %v11279_v6 = vld [vmem:[#allocation46_spill] sm:$0xff] }
 0x3eb   : > { %v4319_v31 = vsel %vm258_vm0, %v9461_v63, %v4062_v38  ;;  %v11283_v38 = vld [vmem:[#allocation39_spill] sm:$0xff] }
 0x3ec   : > { %v4236_v12 = vpop.permute.xlu1 %4235 }
 0x3ed   : > { %v4350_v20 = vsel %vm851_vm7, %v4318_v40, %v4236_v12  ;;  %3715 = vrot.lane.b32.xlu0 %v9412_v33, %s7274_s24  ;;  %v3366_v33 = vld [vmem:[#allocation2 + $0xb8] sm:$0x3]  ;;  %v3487_v40 = vrot.slane %v3372_v15, 1  ;;  %v11281_v12 = vld [vmem:[#allocation58_spill] sm:$0xff] }
 0x3ee   : > { %3541 = vrot.lane.b32.xlu1 %v3468_v29, %s7275_s25  ;;  %6894 = vmatmul.mubr.msk.f32.gmra.mrb[12].mxu1 %vm1401_vm8, %v4350_v20  ;;  %v4238_v25 = vpop.permute.xlu0 %4237  ;;  %v3477_v37 = vrot.slane %v3366_v33, 1  ;;  %v3653_v47 = vrot.slane %v3366_v33, 2  ;;  %v11282_v20 = vld [vmem:[#allocation48_spill] sm:$0xff] }
 0x3ef   : > { %v4351_v52 = vsel %vm851_vm7, %v4319_v31, %v4238_v25  ;;  %v11284_v31 = vld [vmem:[#allocation40_spill] sm:$0xff] }
 0x3f0   : > { %v4064_v10 = vpop.permute.xlu1 %4063  ;;  %6896 = vmatprep.mubr.msk.f32.mxu1 %vm1401_vm8, %v4351_v52  ;;  %v3478_v17 = vsel %vm465_vm3, %v9449_v16, %v3477_v37  ;;  %v3654_v9 = vsel %vm642_vm2, %v11273_v7, %v3653_v47  ;;  %v11274_v16 = vld [vmem:[#allocation35_spill] sm:$0xff]  ;;  %v11287_v33 = vld [vmem:[#allocation64_spill] sm:$0xff] }
 0x3f1   : > { %v4320_v42 = vsel %vm258_vm0, %v9466_v49, %v4064_v10  ;;  %3543 = vrot.lane.b32.xlu0 %v9425_v11, %s7275_s25  ;;  %v11290_v47 = vld [vmem:[#allocation44_spill] sm:$0xff] }
 0x3f2   : > { %3717 = vrot.lane.b32.xlu1 %v3644_v19, %s7274_s24  ;;  %v4066_v49 = vpop.permute.xlu0 %4065  ;;  %v3488_v19 = vsel %vm465_vm3, %v11283_v38, %v3487_v40  ;;  %v11299_v40 = vld [vmem:[#allocation76_spill] sm:$0xff] }
 0x3f3   : > { %v4321_v50 = vsel %vm258_vm0, %v9493_v0, %v4066_v49  ;;  %v11288_v49 = vld [vmem:[#allocation55_spill] sm:$0xff] }
 0x3f4   : > { %v4240_v3 = vpop.permute.xlu1 %4239 }
 0x3f5   : > { %v4352_v59 = vsel %vm851_vm7, %v4320_v42, %v4240_v3  ;;  %3719 = vrot.lane.b32.xlu0 %v9442_v58, %s7274_s24  ;;  %v3369_v58 = vld [vmem:[#allocation2 + $0xd0] sm:$0x3]  ;;  %v3375_v42 = vld [vmem:[#allocation2 + $0x100] sm:$0x3] }
 0x3f6   : > { %3545 = vrot.lane.b32.xlu1 %v3473_v8, %s7275_s25  ;;  %6897 = vmatmul.mubr.msk.f32.gmra.mrb[14].mxu1 %vm1401_vm8, %v4352_v59  ;;  %v4242_v26 = vpop.permute.xlu0 %4241  ;;  %v3482_v2 = vrot.slane %v3369_v58, 1  ;;  %v3658_v36 = vrot.slane %v3369_v58, 2  ;;  %v11285_v59 = vld [vmem:[#allocation42_spill] sm:$0xff]  ;;  %v3492_v8 = vrot.slane %v3375_v42, 1 }
 0x3f7   : > { %v4353_v4 = vsel %vm851_vm7, %v4321_v50, %v4242_v26  ;;  %v3664_v52 = vsel %vm642_vm2, %v11285_v59, %v3663_v45  ;;  %v11289_v26 = vld [vmem:[#allocation45_spill] sm:$0xff]  ;;  %v11302_v45 = vld [vmem:[#allocation56_spill] sm:$0xff] }
 0x3f8   : > { %v4068_v63 = vpop.permute.xlu1 %4067  ;;  %6899 = vmatprep.mubr.msk.f32.mxu1 %vm1401_vm8, %v4353_v4  ;;  %v3483_v43 = vsel %vm465_vm3, %v11277_v51, %v3482_v2  ;;  %v3659_v27 = vsel %vm642_vm2, %v11279_v6, %v3658_v36  ;;  %v3668_v4 = vrot.slane %v3375_v42, 2  ;;  %v11293_v2 = vld [vmem:[#allocation70_spill] sm:$0xff] }
 0x3f9   : > { %v4322_v56 = vsel %vm258_vm0, %v9498_v41, %v4068_v63  ;;  %v11272_v41 = vld [vmem:[#allocation41_spill] sm:$0xff]  ;;  %v11296_v36 = vld [vmem:[#allocation50_spill] sm:$0xff] }
 0x3fa   : > { %3721 = vrot.lane.b32.xlu1 %v3649_v22, %s7274_s24  ;;  %3547 = vrot.lane.b32.xlu0 %v11272_v41, %s7275_s25 }
 0x3fb   : > { %v4070_v14 = vpop.permute.xlu0 %4069 }
 0x3fc   : > { %v4244_v11 = vpop.permute.xlu1 %4243  ;;  %v4323_v35 = vsel %vm258_vm0, %v11276_v23, %v4070_v14 }
 0x3fd   : > { %v4354_v54 = vsel %vm851_vm7, %v4322_v56, %v4244_v11 }
 0x3fe   : > { %3549 = vrot.lane.b32.xlu1 %v3478_v17, %s7275_s25  ;;  %6900 = vmatmul.mubr.msk.f32.gmra.mrb[16].mxu1 %vm1401_vm8, %v4354_v54  ;;  %v3493_v54 = vsel %vm465_vm3, %v11289_v26, %v3492_v8  ;;  %v3378_v17 = vld [vmem:[#allocation2 + $0x118] sm:$0x3]  ;;  %v11305_v8 = vld [vmem:[#allocation75_spill] sm:$0xff] }
 0x3ff   : > { %3723 = vrot.lane.b32.xlu0 %v11274_v16, %s7274_s24  ;;  %v4246_v53 = vpop.permute.xlu0 %4245  ;;  %v3497_v7 = vrot.slane %v3378_v17, 1  ;;  %v3673_v51 = vrot.slane %v3378_v17, 2 }
 0x400   : > { %v4072_v0 = vpop.permute.xlu1 %4071  ;;  %v4355_v60 = vsel %vm851_vm7, %v4323_v35, %v4246_v53 }
 0x401   : > { %v4324_v61 = vsel %vm258_vm0, %v11275_v30, %v4072_v0  ;;  %6902 = vmatprep.mubr.msk.f32.mxu1 %vm1401_vm8, %v4355_v60  ;;  %v11291_v0 = vld [vmem:[#allocation49_spill] sm:$0xff] }
 0x402   : > { %3725 = vrot.lane.b32.xlu1 %v3654_v9, %s7274_s24  ;;  %v3669_v14 = vsel %vm642_vm2, %v11291_v0, %v3668_v4  ;;  %v11292_v9 = vld [vmem:[#allocation59_spill] sm:$0xff]  ;;  %v11294_v30 = vld [vmem:[#allocation61_spill] sm:$0xff]  ;;  %v11308_v4 = vld [vmem:[#allocation62_spill] sm:$0xff] }
 0x403   : > { %3551 = vrot.lane.b32.xlu0 %v11278_v62, %s7275_s25  ;;  %v4074_v1 = vpop.permute.xlu0 %4073 }
 0x404   : > { %v4248_v57 = vpop.permute.xlu1 %4247  ;;  %v4325_v18 = vsel %vm258_vm0, %v11282_v20, %v4074_v1 }
 0x405   : > { %v4356_v44 = vsel %vm851_vm7, %v4324_v61, %v4248_v57 }
 0x406   : > { %3553 = vrot.lane.b32.xlu1 %v3483_v43, %s7275_s25  ;;  %6903 = vmatmul.mubr.msk.f32.gmra.mrb[18].mxu1 %vm1401_vm8, %v4356_v44  ;;  %v11295_v44 = vld [vmem:[#allocation51_spill] sm:$0xff] }
 0x407   : > { %3727 = vrot.lane.b32.xlu0 %v11280_v39, %s7274_s24  ;;  %v4250_v46 = vpop.permute.xlu0 %4249  ;;  %v3498_v60 = vsel %vm465_vm3, %v11295_v44, %v3497_v7  ;;  %v3381_v43 = vld [vmem:[#allocation2 + $0x130] sm:$0x3] }
 0x408   : > { %v4076_v21 = vpop.permute.xlu1 %4075  ;;  %v4357_v10 = vsel %vm851_vm7, %v4325_v18, %v4250_v46  ;;  %v3502_v6 = vrot.slane %v3381_v43, 1  ;;  %v3678_v38 = vrot.slane %v3381_v43, 2 }
 0x409   : > { %v4326_v55 = vsel %vm258_vm0, %v11281_v12, %v4076_v21  ;;  %6905 = vmatprep.mubr.msk.f32.mxu1 %vm1401_vm8, %v4357_v10  ;;  %v11297_v21 = vld [vmem:[#allocation54_spill] sm:$0xff]  ;;  %v11300_v12 = vld [vmem:[#allocation67_spill] sm:$0xff] }
 0x40a   : > { %3729 = vrot.lane.b32.xlu1 %v3659_v27, %s7274_s24  ;;  %v3674_v1 = vsel %vm642_vm2, %v11297_v21, %v3673_v51  ;;  %v11298_v27 = vld [vmem:[#allocation65_spill] sm:$0xff] }
 0x40b   : > { %3555 = vrot.lane.b32.xlu0 %v11284_v31, %s7275_s25  ;;  %v4078_v25 = vpop.permute.xlu0 %4077 }
 0x40c   : > { %v4252_v29 = vpop.permute.xlu1 %4251  ;;  %v4327_v22 = vsel %vm258_vm0, %v11288_v49, %v4078_v25 }
 0x40d   : > { %v4358_v32 = vsel %vm851_vm7, %v4326_v55, %v4252_v29 }
 0x40e   : > { %3557 = vrot.lane.b32.xlu1 %v3488_v19, %s7275_s25  ;;  %6906 = vmatmul.mubr.msk.f32.gmra.mrb[20].mxu1 %vm1401_vm8, %v4358_v32  ;;  %v11301_v32 = vld [vmem:[#allocation57_spill] sm:$0xff]  ;;  %v3384_v19 = vld [vmem:[#allocation2 + $0x148] sm:$0x3] }
 0x40f   : > { %3731 = vrot.lane.b32.xlu0 %v11286_v5, %s7274_s24  ;;  %v4254_v56 = vpop.permute.xlu0 %4253  ;;  %v3503_v10 = vsel %vm465_vm3, %v11301_v32, %v3502_v6  ;;  %v3507_v59 = vrot.slane %v3384_v19, 1  ;;  %v3683_v26 = vrot.slane %v3384_v19, 2  ;;  %v10048_v32 = vld [vmem:[#allocation2 + $0x38] sm:$0xff] }
 0x410   : > { %v4080_v3 = vpop.permute.xlu1 %4079  ;;  %v4359_v11 = vsel %vm851_vm7, %v4327_v22, %v4254_v56 }
 0x411   : > { %v4328_v63 = vsel %vm258_vm0, %v11287_v33, %v4080_v3  ;;  %6908 = vmatprep.mubr.msk.f32.mxu1 %vm1401_vm8, %v4359_v11  ;;  %v11303_v3 = vld [vmem:[#allocation60_spill] sm:$0xff]  ;;  %v11306_v33 = vld [vmem:[#allocation73_spill] sm:$0xff] }
 0x412   : > { %3733 = vrot.lane.b32.xlu1 %v3664_v52, %s7274_s24  ;;  %v3679_v25 = vsel %vm642_vm2, %v11303_v3, %v3678_v38  ;;  %v11304_v52 = vld [vmem:[#allocation71_spill] sm:$0xff]  ;;  %v11317_v38 = vld [vmem:[#allocation81_spill] sm:$0xff]  ;;  %v5117_v3 = vrot.slane %v10048_v32, 1 }
 0x413   : > { %3559 = vrot.lane.b32.xlu0 %v11290_v47, %s7275_s25  ;;  %v4082_v41 = vpop.permute.xlu0 %4081 }
 0x414   : > { %v4256_v37 = vpop.permute.xlu1 %4255  ;;  %v4329_v61 = vsel %vm258_vm0, %v11294_v30, %v4082_v41 }
 0x415   : > { %v4360_v50 = vsel %vm851_vm7, %v4328_v63, %v4256_v37 }
 0x416   : > { %3561 = vrot.lane.b32.xlu1 %v3493_v54, %s7275_s25  ;;  %6909 = vmatmul.mubr.msk.f32.gmra.mrb[22].mxu1 %vm1401_vm8, %v4360_v50  ;;  %v11307_v50 = vld [vmem:[#allocation63_spill] sm:$0xff]  ;;  %v3387_v54 = vld [vmem:[#allocation2 + $0x160] sm:$0x3] }
 0x417   : > { %3735 = vrot.lane.b32.xlu0 %v11292_v9, %s7274_s24  ;;  %v4258_v35 = vpop.permute.xlu0 %4257  ;;  %v3508_v11 = vsel %vm465_vm3, %v11307_v50, %v3507_v59  ;;  %v3512_v0 = vrot.slane %v3387_v54, 1  ;;  %v5025_v50 = vld [vmem:[#allocation2 + $0x58] sm:$0x3] }
 0x418   : > { %v4084_v58 = vpop.permute.xlu1 %4083  ;;  %v4361_v53 = vsel %vm851_vm7, %v4329_v61, %v4258_v35 }
 0x419   : > { %v4330_v16 = vsel %vm258_vm0, %v11293_v2, %v4084_v58  ;;  %6911 = vmatprep.mubr.msk.f32.mxu1 %vm1401_vm8, %v4361_v53  ;;  %v11309_v58 = vld [vmem:[#allocation66_spill] sm:$0xff]  ;;  %v3390_v53 = vld [vmem:[#allocation2 + $0x178] sm:$0x3] }
 0x41a   : > { %3737 = vrot.lane.b32.xlu1 %v3669_v14, %s7274_s24  ;;  %v3684_v41 = vsel %vm642_vm2, %v11309_v58, %v3683_v26  ;;  %v11310_v14 = vld [vmem:[#allocation77_spill] sm:$0xff]  ;;  %v3517_v43 = vrot.slane %v3390_v53, 1  ;;  %v10070_v26 = vld [vmem:[#allocation2 + $0x48] sm:$0xff]  ;;  %v5124_v58 = vrot.slane %v5025_v50, 1 }
 0x41b   : > { %3563 = vrot.lane.b32.xlu0 %v11296_v36, %s7275_s25  ;;  %v4086_v62 = vpop.permute.xlu0 %4085  ;;  %v6471_v36 = vld [vmem:[%s10965_s3 + $0x20] sm:$0xff] }
 0x41c   : > { %v4260_v23 = vpop.permute.xlu1 %4259  ;;  %v4331_v55 = vsel %vm258_vm0, %v11300_v12, %v4086_v62  ;;  %v11314_v62 = vld [vmem:[#allocation74_spill] sm:$0xff] }
 0x41d   : > { %v4362_v57 = vsel %vm851_vm7, %v4330_v16, %v4260_v23  ;;  %v11311_v23 = vld [vmem:[#allocation69_spill] sm:$0xff] }
 0x41e   : > { %3565 = vrot.lane.b32.xlu1 %v3498_v60, %s7275_s25  ;;  %6912 = vmatmul.mubr.msk.f32.gmra.mrb[24].mxu1 %vm1401_vm8, %v4362_v57  ;;  %v3513_v35 = vsel %vm465_vm3, %v11311_v23, %v3512_v0  ;;  %v3688_v57 = vrot.slane %v3387_v54, 2  ;;  %v11313_v60 = vld [vmem:[#allocation72_spill] sm:$0xff]  ;;  %v5121_v0 = vrot.slane %v10070_v26, 1 }
 0x41f   : > { %3739 = vrot.lane.b32.xlu0 %v11298_v27, %s7274_s24  ;;  %v4262_v18 = vpop.permute.xlu0 %4261 }
 0x420   : > { %v4088_v15 = vpop.permute.xlu1 %4087  ;;  %v4363_v46 = vsel %vm851_vm7, %v4331_v55, %v4262_v18  ;;  %v3689_v51 = vsel %vm642_vm2, %v11313_v60, %v3688_v57  ;;  %v11315_v55 = vld [vmem:[#allocation79_spill] sm:$0xff]  ;;  %v3693_v18 = vrot.slane %v3390_v53, 2  ;;  %v5300_v57 = vrot.slane %v5025_v50, 2 }
 0x421   : > { %v4332_v39 = vsel %vm258_vm0, %v11299_v40, %v4088_v15  ;;  %6914 = vmatprep.mubr.msk.f32.mxu1 %vm1401_vm8, %v4363_v46  ;;  %v6472_v15 = vld [vmem:[%s10965_s3 + $0x28] sm:$0xf] }
 0x422   : > { %3741 = vrot.lane.b32.xlu1 %v3674_v1, %s7274_s24  ;;  %v7057_v21 = vpack.c.bf16 %v6472_v15, %v6471_v36  ;;  %v3694_v19 = vsel %vm642_vm2, %v11317_v38, %v3693_v18  ;;  %v10095_v36 = vld [vmem:[#allocation2 + $0x68] sm:$0xff] }
 0x423   : > { %3567 = vrot.lane.b32.xlu0 %v11302_v45, %s7275_s25  ;;  %v4090_v31 = vpop.permute.xlu0 %4089 }
 0x424   : > { %v4264_v20 = vpop.permute.xlu1 %4263  ;;  %v4333_v63 = vsel %vm258_vm0, %v11306_v33, %v4090_v31  ;;  %7059 = vmatprep.subr.msk.bf16.mxu1 %vm7649_vm6, %v7057_v21  ;;  %v11318_v31 = vld [vmem:[#allocation80_spill] sm:$0xff] }
 0x425   : > { %v4364_v29 = vsel %vm851_vm7, %v4332_v39, %v4264_v20  ;;  %v3518_v20 = vsel %vm465_vm3, %v11315_v55, %v3517_v43  ;;  %v7241_v55 = vld [vmem:[#allocation2 + $0x48] sm:$0xff] }
 0x426   : > { %3569 = vrot.lane.b32.xlu1 %v3503_v10, %s7275_s25  ;;  %6915 = vmatmul.mubr.msk.f32.gmra.mrb[26].mxu1 %vm1401_vm8, %v4364_v29  ;;  %v10046_v29 = vld [vmem:[#allocation2 + $0x30] sm:$0xff] }
 0x427   : > { %3743 = vrot.lane.b32.xlu0 %v11304_v52, %s7274_s24  ;;  %v4266_v22 = vpop.permute.xlu0 %4265 }
 0x428   : > { %v4092_v42 = vpop.permute.xlu1 %4091  ;;  %v4365_v56 = vsel %vm851_vm7, %v4333_v63, %v4266_v22 }
 0x429   : > { %v4334_v5 = vsel %vm258_vm0, %v11305_v8, %v4092_v42  ;;  %6917 = vmatprep.mubr.msk.f32.mxu1 %vm1401_vm8, %v4365_v56  ;;  %v5116_v42 = vrot.slane %v10046_v29, 1  ;;  %v5292_v56 = vrot.slane %v10046_v29, 2 }
 0x42a   : > { %3745 = vrot.lane.b32.xlu1 %v3679_v25, %s7274_s24  ;;  %v7236_v25 = vld [vmem:[#allocation2 + $0x20] sm:$0xff] }
 0x42b   : > { %3571 = vrot.lane.b32.xlu0 %v11308_v4, %s7275_s25  ;;  %v4094_v47 = vpop.permute.xlu0 %4093  ;;  %v10073_v4 = vld [vmem:[#allocation2 + $0x50] sm:$0xff] }
 0x42c   : > { %v4268_v49 = vpop.permute.xlu1 %4267  ;;  %v4335_v9 = vsel %vm258_vm0, %v9705_v24, %v4094_v47  ;;  %v5298_v60 = vrot.slane %v10073_v4, 2 }
 0x42d   : > { %v4366_v37 = vsel %vm851_vm7, %v4334_v5, %v4268_v49 }
 0x42e   : > { %3573 = vrot.lane.b32.xlu1 %v3508_v11, %s7275_s25  ;;  %6918 = vmatmul.mubr.msk.f32.gmra.mrb[28].mxu1 %vm1401_vm8, %v4366_v37  ;;  %v5118_v37 = vsel %vm465_vm3, %v5116_v42, %v5117_v3  ;;  %v5293_v11 = vrot.slane %v10048_v32, 2  ;;  %v5303_v42 = vrot.slane %v10095_v36, 2 }
 0x42f   : > { %3747 = vrot.lane.b32.xlu0 %v11310_v14, %s7274_s24  ;;  %v4270_v16 = vpop.permute.xlu0 %4269  ;;  %v5122_v14 = vrot.slane %v10073_v4, 1 }
 0x430   : > { %v4096_v17 = vpop.permute.xlu1 %4095  ;;  %v4367_v61 = vsel %vm851_vm7, %v4335_v9, %v4270_v16  ;;  %v7239_v16 = vld [vmem:[#allocation2 + $0x30] sm:$0xff] }
 0x431   : > { %v4336_v7 = vsel %vm258_vm0, %v9703_v13, %v4096_v17  ;;  %6920 = vmatprep.mubr.msk.f32.mxu1 %vm1401_vm8, %v4367_v61  ;;  %v11312_v13 = vld [vmem:[#allocation68_spill] sm:$0xff] }
 0x432   : > { %3749 = vrot.lane.b32.xlu1 %v3684_v41, %s7274_s24  ;;  %v5294_v41 = vsel %vm642_vm2, %v5292_v56, %v5293_v11 }
 0x433   : > { %3575 = vrot.lane.b32.xlu0 %v11312_v13, %s7275_s25  ;;  %v3520_v44 = vpop.permute.xlu0 %3519  ;;  %v5123_v13 = vsel %vm465_vm3, %v5121_v0, %v5122_v14  ;;  %v5034_v0 = vld [vmem:[#allocation2 + $0xa0] sm:$0x3] }
 0x434   : > { %v4272_v2 = vpop.permute.xlu1 %4271  ;;  %v3791_v6 = vsel %vm258_vm0, %v9738_v34, %v3520_v44  ;;  %v11316_v34 = vld [vmem:[#allocation78_spill] sm:$0xff]  ;;  %v5028_v44 = vld [vmem:[#allocation2 + $0x70] sm:$0x3] }
 0x435   : > { %v4368_v30 = vsel %vm851_vm7, %v4336_v7, %v4272_v2  ;;  %v7238_v7 = vld [vmem:[#allocation2 + $0x38] sm:$0xff] }
 0x436   : > { %3577 = vrot.lane.b32.xlu1 %v3513_v35, %s7275_s25  ;;  %6921 = vmatmul.mubr.msk.f32.gmra.mrb[30].mxu1 %vm1401_vm8, %v4368_v30  ;;  %v5125_v35 = vsel %vm465_vm3, %v5122_v14, %v5124_v58 }
 0x437   : > { %3751 = vrot.lane.b32.xlu0 %v11314_v62, %s7274_s24  ;;  %v3696_v40 = vpop.permute.xlu0 %3695  ;;  %v5301_v62 = vsel %vm642_vm2, %v5298_v60, %v5300_v57 }
 0x438   : > { %v3522_v24 = vpop.permute.xlu1 %3521  ;;  %v3823_v12 = vsel %vm851_vm7, %v3791_v6, %v3696_v40  ;;  %v7240_v40 = vld [vmem:[#allocation2 + $0x50] sm:$0xff] }
 0x439   : > { %v3792_v1 = vsel %vm258_vm0, %v9745_v28, %v3522_v24  ;;  %6927 = vmatprep.mubr.msk.f32.mxu1 %vm1401_vm8, %v3823_v12  ;;  %v5022_v28 = vld [vmem:[#allocation2 + $0x40] sm:$0x3]  ;;  %v5297_v24 = vrot.slane %v10070_v26, 2 }
 0x43a   : > { %3753 = vrot.lane.b32.xlu1 %v3689_v51, %s7274_s24  ;;  %v5119_v45 = vrot.slane %v5022_v28, 1  ;;  %v5295_v49 = vrot.slane %v5022_v28, 2  ;;  %v10092_v51 = vld [vmem:[#allocation2 + $0x60] sm:$0xff] }
 0x43b   : > { %3579 = vrot.lane.b32.xlu0 %v11316_v34, %s7275_s25  ;;  %v3524_v10 = vpop.permute.xlu0 %3523  ;;  %v5126_v6 = vrot.slane %v10092_v51, 1 }
 0x43c   : > { %v3698_v27 = vpop.permute.xlu1 %3697  ;;  %v3793_v8 = vsel %vm258_vm0, %v7237_v48, %v3524_v10  ;;  %v5120_v63 = vsel %vm465_vm3, %v5117_v3, %v5119_v45  ;;  %v5296_v47 = vsel %vm642_vm2, %v5293_v11, %v5295_v49  ;;  %v5031_v45 = vld [vmem:[#allocation2 + $0x88] sm:$0x3] }
 0x43d   : > { %v3824_v39 = vsel %vm851_vm7, %v3792_v1, %v3698_v27  ;;  %v5299_v1 = vsel %vm642_vm2, %v5297_v24, %v5298_v60  ;;  %v5127_v27 = vrot.slane %v10095_v36, 1  ;;  %v5134_v48 = vrot.slane %v5031_v45, 1 }
 0x43e   : > { %3581 = vrot.lane.b32.xlu1 %v3518_v20, %s7275_s25  ;;  %6928 = vmatmul.mubr.msk.f32.vlgmr.msra.gmra.mrb[0].mxu1 %vm1401_vm8, %v3824_v39 }
 0x43f   : > { %7062 = vmatpush3.bf16.msk.msra.mxu1 %vm7649_vm6, %v7057_v21  ;;  %3755 = vrot.lane.b32.xlu0 %v11318_v31, %s7274_s24  ;;  %v3700_v33 = vpop.permute.xlu0 %3699  ;;  %v5129_v21 = vrot.slane %v5028_v44, 1  ;;  %v5128_v38 = vsel %vm465_vm3, %v5126_v6, %v5127_v27  ;;  %v10114_v31 = vld [vmem:[#allocation2 + $0x78] sm:$0xff] }
 0x440   : > { %v3526_v46 = vpop.permute.xlu1 %3525  ;;  %v3825_v22 = vsel %vm851_vm7, %v3793_v8, %v3700_v33 }
 0x441   : > { %v3794_v59 = vsel %vm258_vm0, %v7236_v25, %v3526_v46  ;;  %6930 = vmatprep.mubr.msk.f32.mxu1 %vm1401_vm8, %v3825_v22  ;;  %v5130_v34 = vsel %vm465_vm3, %v5127_v27, %v5129_v21  ;;  %v5305_v46 = vrot.slane %v5028_v44, 2  ;;  %v10117_v25 = vld [vmem:[#allocation2 + $0x80] sm:$0xff]  ;;  %v7245_v44 = vld [vmem:[#allocation2 + $0x78] sm:$0xff]  ;;  %v5315_v21 = vrot.slane %v5034_v0, 2 }
 0x442   : > { %3757 = vrot.lane.b32.xlu1 %v3694_v19, %s7274_s24  ;;  %v5302_v19 = vrot.slane %v10092_v51, 2  ;;  %v5132_v33 = vrot.slane %v10117_v25, 1  ;;  %v5308_v14 = vrot.slane %v10117_v25, 2 }
 0x443   : > { %5196 = vrot.lane.b32.xlu0 %v5118_v37, %s7275_s25  ;;  %v3528_v17 = vpop.permute.xlu0 %3527  ;;  %v7243_v37 = vld [vmem:[#allocation2 + $0x60] sm:$0xff] }
 0x444   : > { %v3702_v52 = vpop.permute.xlu1 %3701  ;;  %v3795_v30 = vsel %vm258_vm0, %v7239_v16, %v3528_v17  ;;  %v5304_v8 = vsel %vm642_vm2, %v5302_v19, %v5303_v42  ;;  %v5310_v17 = vrot.slane %v5031_v45, 2  ;;  %v7246_v19 = vld [vmem:[#allocation2 + $0x98] sm:$0xff] }
 0x445   : > { %v3826_v5 = vsel %vm851_vm7, %v3794_v59, %v3702_v52  ;;  %v5306_v52 = vsel %vm642_vm2, %v5303_v42, %v5305_v46 }
 0x446   : > { %5198 = vrot.lane.b32.xlu1 %v5120_v63, %s7275_s25  ;;  %6931 = vmatmul.mubr.msk.f32.gmra.mrb[2].mxu1 %vm1401_vm8, %v3826_v5  ;;  %v5131_v5 = vrot.slane %v10114_v31, 1  ;;  %v7242_v63 = vld [vmem:[#allocation2 + $0x68] sm:$0xff] }
 0x447   : > { %5372 = vrot.lane.b32.xlu0 %v5294_v41, %s7274_s24  ;;  %v3704_v23 = vpop.permute.xlu0 %3703  ;;  %v5307_v41 = vrot.slane %v10114_v31, 2 }
 0x448   : > { %v3530_v54 = vpop.permute.xlu1 %3529  ;;  %v3827_v53 = vsel %vm851_vm7, %v3795_v30, %v3704_v23  ;;  %v5133_v58 = vsel %vm465_vm3, %v5131_v5, %v5132_v33  ;;  %v5311_v30 = vsel %vm642_vm2, %v5308_v14, %v5310_v17 }
 0x449   : > { %v3796_v9 = vsel %vm258_vm0, %v7238_v7, %v3530_v54  ;;  %6933 = vmatprep.mubr.msk.f32.mxu1 %vm1401_vm8, %v3827_v53  ;;  %v5135_v54 = vsel %vm465_vm3, %v5132_v33, %v5134_v48  ;;  %v10136_v7 = vld [vmem:[#allocation2 + $0x90] sm:$0xff]  ;;  %v5309_v23 = vsel %vm642_vm2, %v5307_v41, %v5308_v14  ;;  %v7244_v53 = vld [vmem:[#allocation2 + $0x80] sm:$0xff] }
 0x44a   : > { %5374 = vrot.lane.b32.xlu1 %v5296_v47, %s7274_s24  ;;  %v5312_v27 = vrot.slane %v10136_v7, 2  ;;  %v7248_v14 = vld [vmem:[#allocation2 + $0xb0] sm:$0xff] }
 0x44b   : > { %5200 = vrot.lane.b32.xlu0 %v5123_v13, %s7275_s25  ;;  %v3532_v15 = vpop.permute.xlu0 %3531 }
 0x44c   : > { %v3706_v2 = vpop.permute.xlu1 %3705  ;;  %v3797_v20 = vsel %vm258_vm0, %v7241_v55, %v3532_v15 }
 0x44d   : > { %v3828_v61 = vsel %vm851_vm7, %v3796_v9, %v3706_v2  ;;  %v10139_v2 = vld [vmem:[#allocation2 + $0x98] sm:$0xff] }
 0x44e   : > { %5202 = vrot.lane.b32.xlu1 %v5125_v35, %s7275_s25  ;;  %6934 = vmatmul.mubr.msk.f32.gmra.mrb[4].mxu1 %vm1401_vm8, %v3828_v61  ;;  %v5139_v61 = vrot.slane %v5034_v0, 1  ;;  %v5136_v35 = vrot.slane %v10136_v7, 1  ;;  %v5137_v57 = vrot.slane %v10139_v2, 1 }
 0x44f   : > { %5376 = vrot.lane.b32.xlu0 %v5299_v1, %s7274_s24  ;;  %v3708_v28 = vpop.permute.xlu0 %3707 }
 0x450   : > { %v3534_v43 = vpop.permute.xlu1 %3533  ;;  %v3829_v10 = vsel %vm851_vm7, %v3797_v20, %v3708_v28  ;;  %v5138_v6 = vsel %vm465_vm3, %v5136_v35, %v5137_v57  ;;  %v10161_v20 = vld [vmem:[#allocation2 + $0xb0] sm:$0xff] }
 0x451   : > { %v3798_v39 = vsel %vm258_vm0, %v7240_v40, %v3534_v43  ;;  %6936 = vmatprep.mubr.msk.f32.mxu1 %vm1401_vm8, %v3829_v10  ;;  %v5037_v40 = vld [vmem:[#allocation2 + $0xb8] sm:$0x3] }
 0x452   : > { %5378 = vrot.lane.b32.xlu1 %v5301_v62, %s7274_s24  ;;  %v5140_v62 = vsel %vm465_vm3, %v5137_v57, %v5139_v61  ;;  %v5320_v5 = vrot.slane %v5037_v40, 2 }
 0x453   : > { %5204 = vrot.lane.b32.xlu0 %v5128_v38, %s7275_s25  ;;  %v3536_v59 = vpop.permute.xlu0 %3535  ;;  %v5142_v38 = vrot.slane %v10161_v20, 1 }
 0x454   : > { %v3710_v12 = vpop.permute.xlu1 %3709  ;;  %v3799_v56 = vsel %vm258_vm0, %v7243_v37, %v3536_v59  ;;  %v5318_v37 = vrot.slane %v10161_v20, 2 }
 0x455   : > { %v3830_v18 = vsel %vm851_vm7, %v3798_v39, %v3710_v12  ;;  %v5313_v39 = vrot.slane %v10139_v2, 2  ;;  %v10158_v12 = vld [vmem:[#allocation2 + $0xa8] sm:$0xff] }
 0x456   : > { %5206 = vrot.lane.b32.xlu1 %v5130_v34, %s7275_s25  ;;  %6937 = vmatmul.mubr.msk.f32.gmra.mrb[6].mxu1 %vm1401_vm8, %v3830_v18  ;;  %v5144_v34 = vrot.slane %v5037_v40, 1  ;;  %v5141_v10 = vrot.slane %v10158_v12, 1  ;;  %v5321_v17 = vsel %vm642_vm2, %v5318_v37, %v5320_v5  ;;  %v10224_v5 = vld [vmem:[#allocation2 + $0xf0] sm:$0xff] }
 0x457   : > { %5380 = vrot.lane.b32.xlu0 %v5304_v8, %s7274_s24  ;;  %v3712_v11 = vpop.permute.xlu0 %3711  ;;  %v5316_v28 = vsel %vm642_vm2, %v5313_v39, %v5315_v21  ;;  %v5314_v46 = vsel %vm642_vm2, %v5312_v27, %v5313_v39  ;;  %v10205_v21 = vld [vmem:[#allocation2 + $0xe0] sm:$0xff] }
 0x458   : > { %v3538_v3 = vpop.permute.xlu1 %3537  ;;  %v3831_v47 = vsel %vm851_vm7, %v3799_v56, %v3712_v11  ;;  %v5145_v8 = vsel %vm465_vm3, %v5142_v38, %v5144_v34  ;;  %v10180_v56 = vld [vmem:[#allocation2 + $0xc0] sm:$0xff]  ;;  %v10183_v11 = vld [vmem:[#allocation2 + $0xc8] sm:$0xff] }
 0x459   : > { %v3800_v49 = vsel %vm258_vm0, %v7242_v63, %v3538_v3  ;;  %6939 = vmatprep.mubr.msk.f32.mxu1 %vm1401_vm8, %v3831_v47  ;;  %v7247_v3 = vld [vmem:[#allocation2 + $0x90] sm:$0xff]  ;;  %v5143_v63 = vsel %vm465_vm3, %v5141_v10, %v5142_v38  ;;  %v5146_v41 = vrot.slane %v10180_v56, 1  ;;  %v5147_v0 = vrot.slane %v10183_v11, 1 }
 0x45a   : > { %5382 = vrot.lane.b32.xlu1 %v5306_v52, %s7274_s24 }
 0x45b   : > { %5208 = vrot.lane.b32.xlu0 %v5133_v58, %s7275_s25  ;;  %v3540_v16 = vpop.permute.xlu0 %3539 }
 0x45c   : > { %v3714_v22 = vpop.permute.xlu1 %3713  ;;  %v3801_v60 = vsel %vm258_vm0, %v7245_v44, %v3540_v16  ;;  %v5322_v44 = vrot.slane %v10180_v56, 2 }
 0x45d   : > { %v3832_v50 = vsel %vm851_vm7, %v3800_v49, %v3714_v22  ;;  %v5317_v49 = vrot.slane %v10158_v12, 2  ;;  %v5040_v22 = vld [vmem:[#allocation2 + $0xd0] sm:$0x3] }
 0x45e   : > { %5210 = vrot.lane.b32.xlu1 %v5135_v54, %s7275_s25  ;;  %6940 = vmatmul.mubr.msk.f32.gmra.mrb[8].mxu1 %vm1401_vm8, %v3832_v50  ;;  %v5149_v47 = vrot.slane %v5040_v22, 1 }
 0x45f   : > { %5384 = vrot.lane.b32.xlu0 %v5309_v23, %s7274_s24  ;;  %v3716_v15 = vpop.permute.xlu0 %3715  ;;  %v5319_v58 = vsel %vm642_vm2, %v5317_v49, %v5318_v37 }
 0x460   : > { %v3542_v9 = vpop.permute.xlu1 %3541  ;;  %v3833_v1 = vsel %vm851_vm7, %v3801_v60, %v3716_v15  ;;  %v5150_v57 = vsel %vm465_vm3, %v5147_v0, %v5149_v47  ;;  %v5043_v60 = vld [vmem:[#allocation2 + $0xe8] sm:$0x3]  ;;  %v10202_v15 = vld [vmem:[#allocation2 + $0xd8] sm:$0xff]  ;;  %v7252_v47 = vld [vmem:[#allocation2 + $0xe0] sm:$0xff] }
 0x461   : > { %v3802_v13 = vsel %vm258_vm0, %v7244_v53, %v3542_v9  ;;  %6942 = vmatprep.mubr.msk.f32.mxu1 %vm1401_vm8, %v3833_v1  ;;  %v5325_v53 = vrot.slane %v5040_v22, 2  ;;  %v5154_v27 = vrot.slane %v5043_v60, 1  ;;  %v5151_v39 = vrot.slane %v10202_v15, 1 }
 0x462   : > { %5386 = vrot.lane.b32.xlu1 %v5311_v30, %s7274_s24  ;;  %v7249_v30 = vld [vmem:[#allocation2 + $0xa8] sm:$0xff] }
 0x463   : > { %5212 = vrot.lane.b32.xlu0 %v5138_v6, %s7275_s25  ;;  %v3544_v18 = vpop.permute.xlu0 %3543 }
 0x464   : > { %v3718_v24 = vpop.permute.xlu1 %3717  ;;  %v3803_v59 = vsel %vm258_vm0, %v7247_v3, %v3544_v18  ;;  %v7250_v18 = vld [vmem:[#allocation2 + $0xc8] sm:$0xff] }
 0x465   : > { %v3834_v43 = vsel %vm851_vm7, %v3802_v13, %v3718_v24  ;;  %v5148_v24 = vsel %vm465_vm3, %v5146_v41, %v5147_v0  ;;  %v7253_v0 = vld [vmem:[#allocation2 + $0xd8] sm:$0xff] }
 0x466   : > { %5214 = vrot.lane.b32.xlu1 %v5140_v62, %s7275_s25  ;;  %6943 = vmatmul.mubr.msk.f32.gmra.mrb[10].mxu1 %vm1401_vm8, %v3834_v43  ;;  %v5323_v43 = vrot.slane %v10183_v11, 2 }
 0x467   : > { %5388 = vrot.lane.b32.xlu0 %v5314_v46, %s7274_s24  ;;  %v3720_v48 = vpop.permute.xlu0 %3719  ;;  %v7251_v46 = vld [vmem:[#allocation2 + $0xc0] sm:$0xff] }
 0x468   : > { %v3546_v55 = vpop.permute.xlu1 %3545  ;;  %v3835_v33 = vsel %vm851_vm7, %v3803_v59, %v3720_v48  ;;  %v5326_v6 = vsel %vm642_vm2, %v5323_v43, %v5325_v53  ;;  %v5324_v40 = vsel %vm642_vm2, %v5322_v44, %v5323_v43  ;;  %v5046_v48 = vld [vmem:[#allocation2 + $0x100] sm:$0x3]  ;;  %v5049_v53 = vld [vmem:[#allocation2 + $0x118] sm:$0x3] }
 0x469   : > { %v3804_v45 = vsel %vm258_vm0, %v7246_v19, %v3546_v55  ;;  %6945 = vmatprep.mubr.msk.f32.mxu1 %vm1401_vm8, %v3835_v33  ;;  %v5152_v55 = vrot.slane %v10205_v21, 1  ;;  %v5159_v37 = vrot.slane %v5046_v48, 1 }
 0x46a   : > { %5390 = vrot.lane.b32.xlu1 %v5316_v28, %s7274_s24 }
 0x46b   : > { %5216 = vrot.lane.b32.xlu0 %v5143_v63, %s7275_s25  ;;  %v5153_v59 = vsel %vm465_vm3, %v5151_v39, %v5152_v55  ;;  %v10227_v63 = vld [vmem:[#allocation2 + $0xf8] sm:$0xff] }
 0x46c   : > { %v3722_v42 = vpop.permute.xlu1 %3721  ;;  %v3548_v54 = vpop.permute.xlu0 %3547  ;;  %v7254_v39 = vld [vmem:[#allocation2 + $0xf8] sm:$0xff] }
 0x46d   : > { %v3836_v52 = vsel %vm851_vm7, %v3804_v45, %v3722_v42  ;;  %v3805_v61 = vsel %vm258_vm0, %v7249_v30, %v3548_v54  ;;  %v5155_v45 = vsel %vm465_vm3, %v5152_v55, %v5154_v27  ;;  %v5330_v42 = vrot.slane %v5043_v60, 2  ;;  %v10249_v60 = vld [vmem:[#allocation2 + $0x110] sm:$0xff] }
 0x46e   : > { %5218 = vrot.lane.b32.xlu1 %v5145_v8, %s7275_s25  ;;  %6946 = vmatmul.mubr.msk.f32.gmra.mrb[12].mxu1 %vm1401_vm8, %v3836_v52  ;;  %v5327_v52 = vrot.slane %v10202_v15, 2  ;;  %v5328_v8 = vrot.slane %v10205_v21, 2  ;;  %v5156_v54 = vrot.slane %v10224_v5, 1 }
 0x46f   : > { %5392 = vrot.lane.b32.xlu0 %v5319_v58, %s7274_s24 }
 0x470   : > { %v3550_v50 = vpop.permute.xlu1 %3549  ;;  %v5331_v22 = vsel %vm642_vm2, %v5328_v8, %v5330_v42 }
 0x471   : > { %v3806_v9 = vsel %vm258_vm0, %v7248_v14, %v3550_v50  ;;  %v3724_v35 = vpop.permute.xlu0 %3723  ;;  %v5329_v50 = vsel %vm642_vm2, %v5327_v52, %v5328_v8  ;;  %v5338_v52 = vrot.slane %v10249_v60, 2 }
 0x472   : > { %5394 = vrot.lane.b32.xlu1 %v5321_v17, %s7274_s24  ;;  %v3837_v13 = vsel %vm851_vm7, %v3805_v61, %v3724_v35  ;;  %v5157_v17 = vrot.slane %v10227_v63, 1  ;;  %v5335_v61 = vrot.slane %v5046_v48, 2  ;;  %v10268_v48 = vld [vmem:[#allocation2 + $0x120] sm:$0xff] }
 0x473   : > { %5220 = vrot.lane.b32.xlu0 %v5148_v24, %s7275_s25  ;;  %6948 = vmatprep.mubr.msk.f32.mxu1 %vm1401_vm8, %v3837_v13  ;;  %v5333_v13 = vrot.slane %v10227_v63, 2  ;;  %v10246_v24 = vld [vmem:[#allocation2 + $0x108] sm:$0xff] }
 0x474   : > { %v3726_v16 = vpop.permute.xlu1 %3725  ;;  %v5160_v30 = vsel %vm465_vm3, %v5157_v17, %v5159_v37  ;;  %v5158_v35 = vsel %vm465_vm3, %v5156_v54, %v5157_v17  ;;  %v5161_v27 = vrot.slane %v10246_v24, 1  ;;  %v5166_v54 = vrot.slane %v10268_v48, 1 }
 0x475   : > { %v3838_v23 = vsel %vm851_vm7, %v3806_v9, %v3726_v16  ;;  %v3552_v1 = vpop.permute.xlu0 %3551 }
 0x476   : > { %5222 = vrot.lane.b32.xlu1 %v5150_v57, %s7275_s25  ;;  %6949 = vmatmul.mubr.msk.f32.gmra.mrb[14].mxu1 %vm1401_vm8, %v3838_v23  ;;  %v3807_v10 = vsel %vm258_vm0, %v7251_v46, %v3552_v1  ;;  %v5332_v57 = vrot.slane %v10224_v5, 2  ;;  %v5164_v1 = vrot.slane %v5049_v53, 1 }
 0x477   : > { %5396 = vrot.lane.b32.xlu0 %v5324_v40, %s7274_s24  ;;  %v5162_v40 = vrot.slane %v10249_v60, 1 }
 0x478   : > { %v3554_v62 = vpop.permute.xlu1 %3553 }
 0x479   : > { %v3808_v28 = vsel %vm258_vm0, %v7250_v18, %v3554_v62  ;;  %v3728_v19 = vpop.permute.xlu0 %3727  ;;  %v5336_v62 = vsel %vm642_vm2, %v5333_v13, %v5335_v61  ;;  %v5163_v42 = vsel %vm465_vm3, %v5161_v27, %v5162_v40 }
 0x47a   : > { %5398 = vrot.lane.b32.xlu1 %v5326_v6, %s7274_s24  ;;  %v3839_v3 = vsel %vm851_vm7, %v3807_v10, %v3728_v19  ;;  %v5334_v6 = vsel %vm642_vm2, %v5332_v57, %v5333_v13  ;;  %v5340_v19 = vrot.slane %v5049_v53, 2  ;;  %v5342_v57 = vrot.slane %v10268_v48, 2  ;;  %v5055_v53 = vld [vmem:[#allocation2 + $0x148] sm:$0x3] }
 0x47b   : > { %5224 = vrot.lane.b32.xlu0 %v5153_v59, %s7275_s25  ;;  %6951 = vmatprep.mubr.msk.f32.mxu1 %vm1401_vm8, %v3839_v3  ;;  %v5337_v3 = vrot.slane %v10246_v24, 2  ;;  %v5052_v59 = vld [vmem:[#allocation2 + $0x130] sm:$0x3]  ;;  %v5174_v27 = vrot.slane %v5055_v53, 1 }
 0x47c   : > { %v3730_v34 = vpop.permute.xlu1 %3729  ;;  %v5169_v37 = vrot.slane %v5052_v59, 1  ;;  %v5345_v61 = vrot.slane %v5052_v59, 2 }
 0x47d   : > { %v3840_v38 = vsel %vm851_vm7, %v3808_v28, %v3730_v34  ;;  %v3556_v49 = vpop.permute.xlu0 %3555  ;;  %v7255_v28 = vld [vmem:[#allocation2 + $0xf0] sm:$0xff] }
 0x47e   : > { %5226 = vrot.lane.b32.xlu1 %v5155_v45, %s7275_s25  ;;  %6952 = vmatmul.mubr.msk.f32.gmra.mrb[16].mxu1 %vm1401_vm8, %v3840_v38  ;;  %v3809_v14 = vsel %vm258_vm0, %v7253_v0, %v3556_v49  ;;  %v5165_v38 = vsel %vm465_vm3, %v5162_v40, %v5164_v1  ;;  %v7257_v0 = vld [vmem:[#allocation2 + $0x108] sm:$0xff] }
 0x47f   : > { %5400 = vrot.lane.b32.xlu0 %v5329_v50, %s7274_s24  ;;  %v5339_v50 = vsel %vm642_vm2, %v5337_v3, %v5338_v52 }
 0x480   : > { %v3558_v33 = vpop.permute.xlu1 %3557 }
 0x481   : > { %v3810_v58 = vsel %vm258_vm0, %v7252_v47, %v3558_v33  ;;  %v3732_v16 = vpop.permute.xlu0 %3731  ;;  %v10271_v33 = vld [vmem:[#allocation2 + $0x128] sm:$0xff]  ;;  %v7256_v47 = vld [vmem:[#allocation2 + $0x110] sm:$0xff] }
 0x482   : > { %5402 = vrot.lane.b32.xlu1 %v5331_v22, %s7274_s24  ;;  %v3841_v23 = vsel %vm851_vm7, %v3809_v14, %v3732_v16  ;;  %v5341_v22 = vsel %vm642_vm2, %v5338_v52, %v5340_v19  ;;  %v5167_v17 = vrot.slane %v10271_v33, 1  ;;  %v5343_v13 = vrot.slane %v10271_v33, 2 }
 0x483   : > { %5228 = vrot.lane.b32.xlu0 %v5158_v35, %s7275_s25  ;;  %6954 = vmatprep.mubr.msk.f32.mxu1 %vm1401_vm8, %v3841_v23 }
 0x484   : > { %v3734_v41 = vpop.permute.xlu1 %3733  ;;  %v5168_v35 = vsel %vm465_vm3, %v5166_v54, %v5167_v17  ;;  %v5344_v40 = vsel %vm642_vm2, %v5342_v57, %v5343_v13 }
 0x485   : > { %v3842_v9 = vsel %vm851_vm7, %v3810_v58, %v3734_v41  ;;  %v3560_v43 = vpop.permute.xlu0 %3559 }
 0x486   : > { %5230 = vrot.lane.b32.xlu1 %v5160_v30, %s7275_s25  ;;  %6955 = vmatmul.mubr.msk.f32.gmra.mrb[18].mxu1 %vm1401_vm8, %v3842_v9  ;;  %v3811_v34 = vsel %vm258_vm0, %v7255_v28, %v3560_v43  ;;  %v5170_v30 = vsel %vm465_vm3, %v5167_v17, %v5169_v37 }
 0x487   : > { %5404 = vrot.lane.b32.xlu0 %v5334_v6, %s7274_s24  ;;  %v5346_v6 = vsel %vm642_vm2, %v5343_v13, %v5345_v61 }
 0x488   : > { %v3562_v44 = vpop.permute.xlu1 %3561 }
 0x489   : > { %v3812_v55 = vsel %vm258_vm0, %v7254_v39, %v3562_v44  ;;  %v3736_v10 = vpop.permute.xlu0 %3735  ;;  %v10290_v44 = vld [vmem:[#allocation2 + $0x138] sm:$0xff] }
 0x48a   : > { %5406 = vrot.lane.b32.xlu1 %v5336_v62, %s7274_s24  ;;  %v3843_v45 = vsel %vm851_vm7, %v3811_v34, %v3736_v10  ;;  %v10293_v62 = vld [vmem:[#allocation2 + $0x140] sm:$0xff]  ;;  %v5171_v39 = vrot.slane %v10290_v44, 1  ;;  %v5347_v52 = vrot.slane %v10290_v44, 2 }
 0x48b   : > { %5232 = vrot.lane.b32.xlu0 %v5163_v42, %s7275_s25  ;;  %6957 = vmatprep.mubr.msk.f32.mxu1 %vm1401_vm8, %v3843_v45  ;;  %v5350_v42 = vrot.slane %v5055_v53, 2 }
 0x48c   : > { %v3738_v18 = vpop.permute.xlu1 %3737 }
 0x48d   : > { %v3844_v46 = vsel %vm851_vm7, %v3812_v55, %v3738_v18  ;;  %v3564_v49 = vpop.permute.xlu0 %3563  ;;  %v5172_v55 = vrot.slane %v10293_v62, 1  ;;  %v7258_v18 = vld [vmem:[#allocation2 + $0x128] sm:$0xff] }
 0x48e   : > { %5234 = vrot.lane.b32.xlu1 %v5165_v38, %s7275_s25  ;;  %6958 = vmatmul.mubr.msk.f32.gmra.mrb[20].mxu1 %vm1401_vm8, %v3844_v46  ;;  %v3813_v14 = vsel %vm258_vm0, %v7257_v0, %v3564_v49  ;;  %v7259_v46 = vld [vmem:[#allocation2 + $0x120] sm:$0xff]  ;;  %v5348_v49 = vrot.slane %v10293_v62, 2 }
 0x48f   : > { %5408 = vrot.lane.b32.xlu0 %v5339_v50, %s7274_s24  ;;  %v5175_v45 = vsel %vm465_vm3, %v5172_v55, %v5174_v27  ;;  %v5173_v59 = vsel %vm465_vm3, %v5171_v39, %v5172_v55  ;;  %v10315_v50 = vld [vmem:[#allocation2 + $0x158] sm:$0xff]  ;;  %v10337_v55 = vld [vmem:[#allocation2 + $0x170] sm:$0xff] }
 0x490   : > { %v3566_v8 = vpop.permute.xlu1 %3565  ;;  %v5351_v17 = vsel %vm642_vm2, %v5348_v49, %v5350_v42  ;;  %v5177_v0 = vrot.slane %v10315_v50, 1  ;;  %v5353_v27 = vrot.slane %v10315_v50, 2 }
 0x491   : > { %v3814_v58 = vsel %vm258_vm0, %v7256_v47, %v3566_v8  ;;  %v3740_v16 = vpop.permute.xlu0 %3739  ;;  %v5058_v8 = vld [vmem:[#allocation2 + $0x160] sm:$0x3] }
 0x492   : > { %5410 = vrot.lane.b32.xlu1 %v5341_v22, %s7274_s24  ;;  %v3845_v23 = vsel %vm851_vm7, %v3813_v14, %v3740_v16  ;;  %v10312_v22 = vld [vmem:[#allocation2 + $0x150] sm:$0xff]  ;;  %v5179_v47 = vrot.slane %v5058_v8, 1  ;;  %v7260_v14 = vld [vmem:[#allocation2 + $0x140] sm:$0xff]  ;;  %v5355_v53 = vrot.slane %v5058_v8, 2 }
 0x493   : > { %5236 = vrot.lane.b32.xlu0 %v5168_v35, %s7275_s25  ;;  %6960 = vmatprep.mubr.msk.f32.mxu1 %vm1401_vm8, %v3845_v23 }
 0x494   : > { %v3742_v41 = vpop.permute.xlu1 %3741  ;;  %v5180_v57 = vsel %vm465_vm3, %v5177_v0, %v5179_v47 }
 0x495   : > { %v3846_v9 = vsel %vm851_vm7, %v3814_v58, %v3742_v41  ;;  %v3568_v1 = vpop.permute.xlu0 %3567  ;;  %v5349_v58 = vsel %vm642_vm2, %v5347_v52, %v5348_v49  ;;  %v5176_v41 = vrot.slane %v10312_v22, 1 }
 0x496   : > { %5238 = vrot.lane.b32.xlu1 %v5170_v30, %s7275_s25  ;;  %6961 = vmatmul.mubr.msk.f32.gmra.mrb[22].mxu1 %vm1401_vm8, %v3846_v9  ;;  %v3815_v10 = vsel %vm258_vm0, %v7259_v46, %v3568_v1  ;;  %v7261_v30 = vld [vmem:[#allocation2 + $0x138] sm:$0xff]  ;;  %v5352_v1 = vrot.slane %v10312_v22, 2 }
 0x497   : > { %5412 = vrot.lane.b32.xlu0 %v5344_v40, %s7274_s24  ;;  %v10334_v40 = vld [vmem:[#allocation2 + $0x168] sm:$0xff] }
 0x498   : > { %v3570_v43 = vpop.permute.xlu1 %3569  ;;  %v5354_v46 = vsel %vm642_vm2, %v5352_v1, %v5353_v27  ;;  %v5357_v47 = vrot.slane %v10334_v40, 2  ;;  %v7265_v1 = vld [vmem:[#allocation2 + $0x168] sm:$0xff] }
 0x499   : > { %v3816_v28 = vsel %vm258_vm0, %v7258_v18, %v3570_v43  ;;  %v3744_v19 = vpop.permute.xlu0 %3743  ;;  %v5178_v43 = vsel %vm465_vm3, %v5176_v41, %v5177_v0  ;;  %v5358_v41 = vrot.slane %v10337_v55, 2  ;;  %v10356_v0 = vld [vmem:[#allocation2 + $0x180] sm:$0xff] }
 0x49a   : > { %5414 = vrot.lane.b32.xlu1 %v5346_v6, %s7274_s24  ;;  %v3847_v3 = vsel %vm851_vm7, %v3815_v10, %v3744_v19  ;;  %v5061_v6 = vld [vmem:[#allocation2 + $0x178] sm:$0x3]  ;;  %v5181_v10 = vrot.slane %v10334_v40, 1 }
 0x49b   : > { %5240 = vrot.lane.b32.xlu0 %v5173_v59, %s7275_s25  ;;  %6963 = vmatprep.mubr.msk.f32.mxu1 %vm1401_vm8, %v3847_v3  ;;  %v7262_v19 = vld [vmem:[#allocation2 + $0x158] sm:$0xff]  ;;  %v7263_v3 = vld [vmem:[#allocation2 + $0x150] sm:$0xff] }
 0x49c   : > { %v3746_v34 = vpop.permute.xlu1 %3745 }
 0x49d   : > { %v3848_v38 = vsel %vm851_vm7, %v3816_v28, %v3746_v34  ;;  %v3572_v54 = vpop.permute.xlu0 %3571  ;;  %v5356_v28 = vsel %vm642_vm2, %v5353_v27, %v5355_v53  ;;  %v5184_v34 = vrot.slane %v5061_v6, 1  ;;  %v7264_v53 = vld [vmem:[#allocation2 + $0x170] sm:$0xff] }
 0x49e   : > { %5242 = vrot.lane.b32.xlu1 %v5175_v45, %s7275_s25  ;;  %6964 = vmatmul.mubr.msk.f32.gmra.mrb[24].mxu1 %vm1401_vm8, %v3848_v38  ;;  %v3817_v61 = vsel %vm258_vm0, %v7261_v30, %v3572_v54  ;;  %v5182_v38 = vrot.slane %v10337_v55, 1 }
 0x49f   : > { %5416 = vrot.lane.b32.xlu0 %v5349_v58, %s7274_s24  ;;  %v5064_v58 = vld [vmem:[#allocation2 + $0x190] sm:$0x3] }
 0x4a0   : > { %v3574_v37 = vpop.permute.xlu1 %3573  ;;  %v5185_v49 = vsel %vm465_vm3, %v5182_v38, %v5184_v34 }
 0x4a1   : > { %v3818_v9 = vsel %vm258_vm0, %v7260_v14, %v3574_v37  ;;  %v3748_v35 = vpop.permute.xlu0 %3747  ;;  %v5360_v37 = vrot.slane %v5061_v6, 2 }
 0x4a2   : > { %5418 = vrot.lane.b32.xlu1 %v5351_v17, %s7274_s24  ;;  %v3849_v13 = vsel %vm851_vm7, %v3817_v61, %v3748_v35  ;;  %v5183_v17 = vsel %vm465_vm3, %v5181_v10, %v5182_v38  ;;  %v5189_v61 = vrot.slane %v5064_v58, 1  ;;  %v5186_v35 = vrot.slane %v10356_v0, 1  ;;  %v5067_v38 = vld [vmem:[#allocation2 + $0x1a8] sm:$0x3] }
 0x4a3   : > { %5244 = vrot.lane.b32.xlu0 %v5178_v43, %s7275_s25  ;;  %6966 = vmatprep.mubr.msk.f32.mxu1 %vm1401_vm8, %v3849_v13  ;;  %v5361_v30 = vsel %vm642_vm2, %v5358_v41, %v5360_v37  ;;  %v5362_v10 = vrot.slane %v10356_v0, 2 }
 0x4a4   : > { %v3750_v16 = vpop.permute.xlu1 %3749 }
 0x4a5   : > { %v3850_v23 = vsel %vm851_vm7, %v3818_v9, %v3750_v16  ;;  %v3576_v18 = vpop.permute.xlu0 %3575  ;;  %v10359_v9 = vld [vmem:[#allocation2 + $0x188] sm:$0xff] }
 0x4a6   : > { %5246 = vrot.lane.b32.xlu1 %v5180_v57, %s7275_s25  ;;  %6967 = vmatmul.mubr.msk.f32.gmra.mrb[26].mxu1 %vm1401_vm8, %v3850_v23  ;;  %v3819_v59 = vsel %vm258_vm0, %v7263_v3, %v3576_v18  ;;  %v5359_v23 = vsel %vm642_vm2, %v5357_v47, %v5358_v41  ;;  %v5187_v57 = vrot.slane %v10359_v9, 1  ;;  %v10381_v3 = vld [vmem:[#allocation2 + $0x1a0] sm:$0xff] }
 0x4a7   : > { %5420 = vrot.lane.b32.xlu0 %v5354_v46, %s7274_s24 }
 0x4a8   : > { %v3578_v39 = vpop.permute.xlu1 %3577  ;;  %v5190_v18 = vsel %vm465_vm3, %v5187_v57, %v5189_v61  ;;  %v5188_v46 = vsel %vm465_vm3, %v5186_v35, %v5187_v57 }
 0x4a9   : > { %v3820_v45 = vsel %vm258_vm0, %v7262_v19, %v3578_v39  ;;  %v3752_v8 = vpop.permute.xlu0 %3751  ;;  %v5363_v19 = vrot.slane %v10359_v9, 2 }
 0x4aa   : > { %5422 = vrot.lane.b32.xlu1 %v5356_v28, %s7274_s24  ;;  %v3851_v54 = vsel %vm851_vm7, %v3819_v59, %v3752_v8  ;;  %v5365_v28 = vrot.slane %v5064_v58, 2  ;;  %v5194_v8 = vrot.slane %v5067_v38, 1 }
 0x4ab   : > { %5248 = vrot.lane.b32.xlu0 %v5183_v17, %s7275_s25  ;;  %6969 = vmatprep.mubr.msk.f32.mxu1 %vm1401_vm8, %v3851_v54  ;;  %v5192_v54 = vrot.slane %v10381_v3, 1 }
 0x4ac   : > { %v3754_v42 = vpop.permute.xlu1 %3753 }
 0x4ad   : > { %v3852_v52 = vsel %vm851_vm7, %v3820_v45, %v3754_v42  ;;  %v3580_v16 = vpop.permute.xlu0 %3579  ;;  %v10378_v45 = vld [vmem:[#allocation2 + $0x198] sm:$0xff] }
 0x4ae   : > { %5250 = vrot.lane.b32.xlu1 %v5185_v49, %s7275_s25  ;;  %6970 = vmatmul.mubr.msk.f32.gmra.mrb[28].mxu1 %vm1401_vm8, %v3852_v52  ;;  %v3821_v6 = vsel %vm258_vm0, %v7265_v1, %v3580_v16  ;;  %v5366_v52 = vsel %vm642_vm2, %v5363_v19, %v5365_v28  ;;  %v5364_v49 = vsel %vm642_vm2, %v5362_v10, %v5363_v19  ;;  %v5191_v37 = vrot.slane %v10378_v45, 1 }
 0x4af   : > { %5424 = vrot.lane.b32.xlu0 %v5359_v23, %s7274_s24  ;;  %v5195_v16 = vsel %vm465_vm3, %v5192_v54, %v5194_v8  ;;  %v5367_v35 = vrot.slane %v10378_v45, 2 }
 0x4b0   : > { %v3582_v14 = vpop.permute.xlu1 %3581  ;;  %v5193_v23 = vsel %vm465_vm3, %v5191_v37, %v5192_v54 }
 0x4b1   : > { %v3822_v13 = vsel %vm258_vm0, %v7264_v53, %v3582_v14  ;;  %v3756_v39 = vpop.permute.xlu0 %3755 }
 0x4b2   : > { %5426 = vrot.lane.b32.xlu1 %v5361_v30, %s7274_s24  ;;  %v3853_v34 = vsel %vm851_vm7, %v3821_v6, %v3756_v39  ;;  %v5370_v30 = vrot.slane %v5067_v38, 2 }
 0x4b3   : > { %5252 = vrot.lane.b32.xlu0 %v5188_v46, %s7275_s25  ;;  %6972 = vmatprep.mubr.msk.f32.mxu1 %vm1401_vm8, %v3853_v34 }
 0x4b4   : > { %v3758_v43 = vpop.permute.xlu1 %3757 }
 0x4b5   : > { %v3854_v27 = vsel %vm851_vm7, %v3822_v13, %v3758_v43  ;;  %v5197_v59 = vpop.permute.xlu0 %5196 }
 0x4b6   : > { %5254 = vrot.lane.b32.xlu1 %v5190_v18, %s7275_s25  ;;  %6973 = vmatmul.mubr.msk.f32.gmra.mrb[30].mxu1 %vm1401_vm8, %v3854_v27  ;;  %v5468_v58 = vsel %vm258_vm0, %v10046_v29, %v5197_v59  ;;  %v5368_v29 = vrot.slane %v10381_v3, 2 }
 0x4b7   : > { %5428 = vrot.lane.b32.xlu0 %v5364_v49, %s7274_s24 }
 0x4b8   : > { %v5199_v42 = vpop.permute.xlu1 %5198  ;;  %v5371_v53 = vsel %vm642_vm2, %v5368_v29, %v5370_v30  ;;  %v5369_v13 = vsel %vm642_vm2, %v5367_v35, %v5368_v29 }
 0x4b9   : > { %v5469_v17 = vsel %vm258_vm0, %v10048_v32, %v5199_v42  ;;  %v5373_v14 = vpop.permute.xlu0 %5372 }
 0x4ba   : > { %5430 = vrot.lane.b32.xlu1 %v5366_v52, %s7274_s24  ;;  %v5500_v61 = vsel %vm851_vm7, %v5468_v58, %v5373_v14 }
 0x4bb   : > { %5256 = vrot.lane.b32.xlu0 %v5193_v23, %s7275_s25  ;;  %6979 = vmatprep.mubr.msk.f32.mxu1 %vm1401_vm8, %v5500_v61 }
 0x4bc   : > { %v5375_v47 = vpop.permute.xlu1 %5374 }
 0x4bd   : > { %v5501_v41 = vsel %vm851_vm7, %v5469_v17, %v5375_v47  ;;  %v5201_v57 = vpop.permute.xlu0 %5200 }
 0x4be   : > { %5258 = vrot.lane.b32.xlu1 %v5195_v16, %s7275_s25  ;;  %6980 = vmatmul.mubr.msk.f32.vlgmr.msra.gmra.mrb[0].mxu1 %vm1401_vm8, %v5501_v41  ;;  %v5470_v6 = vsel %vm258_vm0, %v10070_v26, %v5201_v57 }
 0x4bf   : > { %5432 = vrot.lane.b32.xlu0 %v5369_v13, %s7274_s24 }
 0x4c0   : > { %v5203_v32 = vpop.permute.xlu1 %5202 }
 0x4c1   : > { %v5471_v43 = vsel %vm258_vm0, %v10073_v4, %v5203_v32  ;;  %v5377_v39 = vpop.permute.xlu0 %5376 }
 0x4c2   : > { %5434 = vrot.lane.b32.xlu1 %v5371_v53, %s7274_s24  ;;  %v5502_v18 = vsel %vm851_vm7, %v5470_v6, %v5377_v39 }
 0x4c3   : > { %6982 = vmatprep.mubr.msk.f32.mxu1 %vm1401_vm8, %v5502_v18 }
 0x4c4   : > { %v5379_v1 = vpop.permute.xlu1 %5378 }
 0x4c5   : > { %v5503_v27 = vsel %vm851_vm7, %v5471_v43, %v5379_v1  ;;  %v5205_v34 = vpop.permute.xlu0 %5204 }
 0x4c6   : > { %6983 = vmatmul.mubr.msk.f32.gmra.mrb[2].mxu1 %vm1401_vm8, %v5503_v27  ;;  %v5472_v4 = vsel %vm258_vm0, %v10092_v51, %v5205_v34 }
 0x4c8   : > { %v5207_v28 = vpop.permute.xlu1 %5206 }
 0x4c9   : > { %v5473_v46 = vsel %vm258_vm0, %v10095_v36, %v5207_v28  ;;  %v5381_v38 = vpop.permute.xlu0 %5380 }
 0x4ca   : > { %v5504_v19 = vsel %vm851_vm7, %v5472_v4, %v5381_v38 }
 0x4cb   : > { %6985 = vmatprep.mubr.msk.f32.mxu1 %vm1401_vm8, %v5504_v19 }
 0x4cc   : > { %v5383_v10 = vpop.permute.xlu1 %5382 }
 0x4cd   : > { %v5505_v26 = vsel %vm851_vm7, %v5473_v46, %v5383_v10  ;;  %v5209_v59 = vpop.permute.xlu0 %5208 }
 0x4ce   : > { %6986 = vmatmul.mubr.msk.f32.gmra.mrb[4].mxu1 %vm1401_vm8, %v5505_v26  ;;  %v5474_v36 = vsel %vm258_vm0, %v10114_v31, %v5209_v59 }
 0x4d0   : > { %v5211_v42 = vpop.permute.xlu1 %5210 }
 0x4d1   : > { %v5475_v52 = vsel %vm258_vm0, %v10117_v25, %v5211_v42  ;;  %v5385_v49 = vpop.permute.xlu0 %5384 }
 0x4d2   : > { %v5506_v37 = vsel %vm851_vm7, %v5474_v36, %v5385_v49 }
 0x4d3   : > { %6988 = vmatprep.mubr.msk.f32.mxu1 %vm1401_vm8, %v5506_v37 }
 0x4d4   : > { %v5387_v8 = vpop.permute.xlu1 %5386 }
 0x4d5   : > { %v5507_v51 = vsel %vm851_vm7, %v5475_v52, %v5387_v8  ;;  %v5213_v17 = vpop.permute.xlu0 %5212 }
 0x4d6   : > { %6989 = vmatmul.mubr.msk.f32.gmra.mrb[6].mxu1 %vm1401_vm8, %v5507_v51  ;;  %v5476_v25 = vsel %vm258_vm0, %v10136_v7, %v5213_v17 }
 0x4d8   : > { %v5215_v54 = vpop.permute.xlu1 %5214 }
 0x4d9   : > { %v5477_v47 = vsel %vm258_vm0, %v10139_v2, %v5215_v54  ;;  %v5389_v41 = vpop.permute.xlu0 %5388 }
 0x4da   : > { %v5508_v14 = vsel %vm851_vm7, %v5476_v25, %v5389_v41 }
 0x4db   : > { %6991 = vmatprep.mubr.msk.f32.mxu1 %vm1401_vm8, %v5508_v14 }
 0x4dc   : > { %v5391_v58 = vpop.permute.xlu1 %5390 }
 0x4dd   : > { %v5509_v31 = vsel %vm851_vm7, %v5477_v47, %v5391_v58  ;;  %v5217_v30 = vpop.permute.xlu0 %5216 }
 0x4de   : > { %6992 = vmatmul.mubr.msk.f32.gmra.mrb[8].mxu1 %vm1401_vm8, %v5509_v31  ;;  %v5478_v2 = vsel %vm258_vm0, %v10158_v12, %v5217_v30 }
 0x4e0   : > { %v5219_v16 = vpop.permute.xlu1 %5218 }
 0x4e1   : > { %v5479_v61 = vsel %vm258_vm0, %v10161_v20, %v5219_v16  ;;  %v5393_v35 = vpop.permute.xlu0 %5392 }
 0x4e2   : > { %v5510_v29 = vsel %vm851_vm7, %v5478_v2, %v5393_v35 }
 0x4e3   : > { %6994 = vmatprep.mubr.msk.f32.mxu1 %vm1401_vm8, %v5510_v29 }
 0x4e4   : > { %v5395_v23 = vpop.permute.xlu1 %5394 }
 0x4e5   : > { %v5511_v7 = vsel %vm851_vm7, %v5479_v61, %v5395_v23  ;;  %v5221_v57 = vpop.permute.xlu0 %5220 }
 0x4e6   : > { %6995 = vmatmul.mubr.msk.f32.gmra.mrb[10].mxu1 %vm1401_vm8, %v5511_v7  ;;  %v5480_v20 = vsel %vm258_vm0, %v10180_v56, %v5221_v57 }
 0x4e8   : > { %v5223_v32 = vpop.permute.xlu1 %5222 }
 0x4e9   : > { %v5481_v53 = vsel %vm258_vm0, %v10183_v11, %v5223_v32  ;;  %v5397_v43 = vpop.permute.xlu0 %5396 }
 0x4ea   : > { %v5512_v1 = vsel %vm851_vm7, %v5480_v20, %v5397_v43 }
 0x4eb   : > { %6997 = vmatprep.mubr.msk.f32.mxu1 %vm1401_vm8, %v5512_v1 }
 0x4ec   : > { %v5399_v13 = vpop.permute.xlu1 %5398 }
 0x4ed   : > { %v5513_v12 = vsel %vm851_vm7, %v5481_v53, %v5399_v13  ;;  %v5225_v27 = vpop.permute.xlu0 %5224 }
 0x4ee   : > { %6998 = vmatmul.mubr.msk.f32.gmra.mrb[12].mxu1 %vm1401_vm8, %v5513_v12  ;;  %v5482_v11 = vsel %vm258_vm0, %v10202_v15, %v5225_v27 }
 0x4f0   : > { %v5227_v6 = vpop.permute.xlu1 %5226 }
 0x4f1   : > { %v5483_v39 = vsel %vm258_vm0, %v10205_v21, %v5227_v6  ;;  %v5401_v28 = vpop.permute.xlu0 %5400 }
 0x4f2   : > { %v5514_v34 = vsel %vm851_vm7, %v5482_v11, %v5401_v28 }
 0x4f3   : > { %7000 = vmatprep.mubr.msk.f32.mxu1 %vm1401_vm8, %v5514_v34 }
 0x4f4   : > { %v5403_v18 = vpop.permute.xlu1 %5402 }
 0x4f5   : > { %v5515_v56 = vsel %vm851_vm7, %v5483_v39, %v5403_v18  ;;  %v5229_v10 = vpop.permute.xlu0 %5228 }
 0x4f6   : > { %7001 = vmatmul.mubr.msk.f32.gmra.mrb[14].mxu1 %vm1401_vm8, %v5515_v56  ;;  %v5484_v21 = vsel %vm258_vm0, %v10224_v5, %v5229_v10 }
 0x4f8   : > { %v5231_v46 = vpop.permute.xlu1 %5230 }
 0x4f9   : > { %v5485_v4 = vsel %vm258_vm0, %v10227_v63, %v5231_v46  ;;  %v5405_v38 = vpop.permute.xlu0 %5404 }
 0x4fa   : > { %v5516_v19 = vsel %vm851_vm7, %v5484_v21, %v5405_v38 }
 0x4fb   : > { %7003 = vmatprep.mubr.msk.f32.mxu1 %vm1401_vm8, %v5516_v19 }
 0x4fc   : > { %v5407_v26 = vpop.permute.xlu1 %5406 }
 0x4fd   : > { %v5517_v15 = vsel %vm851_vm7, %v5485_v4, %v5407_v26  ;;  %v5233_v59 = vpop.permute.xlu0 %5232 }
 0x4fe   : > { %7004 = vmatmul.mubr.msk.f32.gmra.mrb[16].mxu1 %vm1401_vm8, %v5517_v15  ;;  %v5486_v63 = vsel %vm258_vm0, %v10246_v24, %v5233_v59 }
 0x500   : > { %v5235_v42 = vpop.permute.xlu1 %5234 }
 0x501   : > { %v5487_v52 = vsel %vm258_vm0, %v10249_v60, %v5235_v42  ;;  %v5409_v36 = vpop.permute.xlu0 %5408 }
 0x502   : > { %v5518_v51 = vsel %vm851_vm7, %v5486_v63, %v5409_v36 }
 0x503   : > { %7006 = vmatprep.mubr.msk.f32.mxu1 %vm1401_vm8, %v5518_v51 }
 0x504   : > { %v5411_v8 = vpop.permute.xlu1 %5410 }
 0x505   : > { %v5519_v5 = vsel %vm851_vm7, %v5487_v52, %v5411_v8  ;;  %v5237_v37 = vpop.permute.xlu0 %5236 }
 0x506   : > { %7007 = vmatmul.mubr.msk.f32.gmra.mrb[18].mxu1 %vm1401_vm8, %v5519_v5  ;;  %v5488_v60 = vsel %vm258_vm0, %v10268_v48, %v5237_v37 }
 0x508   : > { %v5239_v49 = vpop.permute.xlu1 %5238 }
 0x509   : > { %v5489_v54 = vsel %vm258_vm0, %v10271_v33, %v5239_v49  ;;  %v5413_v47 = vpop.permute.xlu0 %5412 }
 0x50a   : > { %v5520_v58 = vsel %vm851_vm7, %v5488_v60, %v5413_v47 }
 0x50b   : > { %7009 = vmatprep.mubr.msk.f32.mxu1 %vm1401_vm8, %v5520_v58 }
 0x50c   : > { %v5415_v17 = vpop.permute.xlu1 %5414 }
 0x50d   : > { %v5521_v24 = vsel %vm851_vm7, %v5489_v54, %v5415_v17  ;;  %v5241_v31 = vpop.permute.xlu0 %5240 }
 0x50e   : > { %7010 = vmatmul.mubr.msk.f32.gmra.mrb[20].mxu1 %vm1401_vm8, %v5521_v24  ;;  %v5490_v33 = vsel %vm258_vm0, %v10290_v44, %v5241_v31 }
 0x510   : > { %v5243_v25 = vpop.permute.xlu1 %5242 }
 0x511   : > { %v5491_v41 = vsel %vm258_vm0, %v10293_v62, %v5243_v25  ;;  %v5417_v16 = vpop.permute.xlu0 %5416 }
 0x512   : > { %v5522_v30 = vsel %vm851_vm7, %v5490_v33, %v5417_v16 }
 0x513   : > { %7012 = vmatprep.mubr.msk.f32.mxu1 %vm1401_vm8, %v5522_v30 }
 0x514   : > { %v5419_v14 = vpop.permute.xlu1 %5418 }
 0x515   : > { %v5523_v48 = vsel %vm851_vm7, %v5491_v41, %v5419_v14  ;;  %v5245_v23 = vpop.permute.xlu0 %5244 }
 0x516   : > { %7013 = vmatmul.mubr.msk.f32.gmra.mrb[22].mxu1 %vm1401_vm8, %v5523_v48  ;;  %v5492_v62 = vsel %vm258_vm0, %v10312_v22, %v5245_v23 }
 0x518   : > { %v5247_v61 = vpop.permute.xlu1 %5246 }
 0x519   : > { %v5493_v2 = vsel %vm258_vm0, %v10315_v50, %v5247_v61  ;;  %v5421_v35 = vpop.permute.xlu0 %5420 }
 0x51a   : > { %v5524_v29 = vsel %vm851_vm7, %v5492_v62, %v5421_v35 }
 0x51b   : > { %7015 = vmatprep.mubr.msk.f32.mxu1 %vm1401_vm8, %v5524_v29 }
 0x51c   : > { %v5423_v7 = vpop.permute.xlu1 %5422 }
 0x51d   : > { %v5525_v44 = vsel %vm851_vm7, %v5493_v2, %v5423_v7  ;;  %v5249_v57 = vpop.permute.xlu0 %5248 }
 0x51e   : > { %7016 = vmatmul.mubr.msk.f32.gmra.mrb[24].mxu1 %vm1401_vm8, %v5525_v44  ;;  %v5494_v50 = vsel %vm258_vm0, %v10334_v40, %v5249_v57 }
 0x520   : > { %v5251_v32 = vpop.permute.xlu1 %5250 }
 0x521   : > { %v5495_v53 = vsel %vm258_vm0, %v10337_v55, %v5251_v32  ;;  %v5425_v20 = vpop.permute.xlu0 %5424 }
 0x522   : > { %v5526_v12 = vsel %vm851_vm7, %v5494_v50, %v5425_v20 }
 0x523   : > { %7018 = vmatprep.mubr.msk.f32.mxu1 %vm1401_vm8, %v5526_v12 }
 0x524   : > { %v5427_v13 = vpop.permute.xlu1 %5426 }
 0x525   : > { %v5527_v22 = vsel %vm851_vm7, %v5495_v53, %v5427_v13  ;;  %v5253_v1 = vpop.permute.xlu0 %5252 }
 0x526   : > { %7019 = vmatmul.mubr.msk.f32.gmra.mrb[26].mxu1 %vm1401_vm8, %v5527_v22  ;;  %v5496_v55 = vsel %vm258_vm0, %v10356_v0, %v5253_v1 }
 0x528   : > { %v5255_v43 = vpop.permute.xlu1 %5254 }
 0x529   : > { %v5497_v6 = vsel %vm258_vm0, %v10359_v9, %v5255_v43  ;;  %v5429_v39 = vpop.permute.xlu0 %5428 }
 0x52a   : > { %v5528_v18 = vsel %vm851_vm7, %v5496_v55, %v5429_v39 }
 0x52b   : > { %7021 = vmatprep.mubr.msk.f32.mxu1 %vm1401_vm8, %v5528_v18 }
 0x52c   : > { %v5431_v27 = vpop.permute.xlu1 %5430 }
 0x52d   : > { %v5529_v40 = vsel %vm851_vm7, %v5497_v6, %v5431_v27  ;;  %v5257_v56 = vpop.permute.xlu0 %5256 }
 0x52e   : > { %7022 = vmatmul.mubr.msk.f32.gmra.mrb[28].mxu1 %vm1401_vm8, %v5529_v40  ;;  %v5498_v9 = vsel %vm258_vm0, %v10378_v45, %v5257_v56 }
 0x530   : > { %v5259_v11 = vpop.permute.xlu1 %5258 }
 0x531   : > { %v5499_v28 = vsel %vm258_vm0, %v10381_v3, %v5259_v11  ;;  %v5433_v46 = vpop.permute.xlu0 %5432  ;;  %v10530_v3 = vld [vmem:[%s10966_s4] ss:$0 sm:$0xff] }
 0x532   : > { %v5530_v10 = vsel %vm851_vm7, %v5498_v9, %v5433_v46 }
 0x533   : > { %7024 = vmatprep.mubr.msk.f32.mxu1 %vm1401_vm8, %v5530_v10 }
 0x534   : > { %v5435_v34 = vpop.permute.xlu1 %5434 }
 0x535   : > { %v5531_v0 = vsel %vm851_vm7, %v5499_v28, %v5435_v34 }
 0x536   : > { %7025 = vmatmul.mubr.msk.f32.gmra.mrb[30].mxu1 %vm1401_vm8, %v5531_v0 }
 0x591   : > { %v6981_v4 = vpop.f32.mrb[0].mxu1 }
 0x592   : > { %v5700_v26 = vpop.f32.mrb[1].mxu1  ;;  %v10533_v45 = vadd.f32 %v6981_v4, %v10530_v3 }
 0x593   : > { %v10536_v42 = vadd.f32 %v10530_v3, %v5700_v26 }
 0x594   : > { %v6000_v52 = vmul.f32 %v10533_v45, %v10533_v45  ;;  %v5931_v63 = vsel %vm258_vm0, %v10533_v45, 0.0 }
 0x595   : > { %v5999_v8 = vmul.f32 %v10536_v42, %v10536_v42  ;;  %v5930_v5 = vsel %vm258_vm0, %v10536_v42, 0.0 }
 0x596   : > { %v6032_v49 = vsel %vm258_vm0, %v6000_v52, 0.0  ;;  %v5932_v47 = vadd.f32 %v5931_v63, %v5930_v5 }
 0x597   : > { %v6031_v54 = vsel %vm258_vm0, %v5999_v8, 0.0 }
 0x598   : > { %v6033_v25 = vadd.f32 %v6032_v49, %v6031_v54 }
 0x599   : > { %v6984_v21 = vpop.f32.mrb[2].mxu1 }
 0x59a   : > { %v5710_v15 = vpop.f32.mrb[3].mxu1  ;;  %v10554_v17 = vadd.f32 %v6984_v21, %v10530_v3 }
 0x59b   : > { %v10539_v59 = vadd.f32 %v10530_v3, %v5710_v15 }
 0x59c   : > { %v6002_v41 = vmul.f32 %v10554_v17, %v10554_v17  ;;  %v5935_v48 = vsel %vm258_vm0, %v10554_v17, 0.0 }
 0x59d   : > { %v6001_v36 = vmul.f32 %v10539_v59, %v10539_v59  ;;  %v5933_v60 = vsel %vm258_vm0, %v10539_v59, 0.0 }
 0x59e   : > { %v5934_v31 = vadd.f32 %v5933_v60, %v5932_v47  ;;  %v6036_v62 = vsel %vm258_vm0, %v6002_v41, 0.0 }
 0x59f   : > { %v6034_v58 = vsel %vm258_vm0, %v6001_v36, 0.0 }
 0x5a0   : > { %v6035_v33 = vadd.f32 %v6034_v58, %v6033_v25  ;;  %v5936_v2 = vadd.f32 %v5935_v48, %v5934_v31 }
 0x5a1   : > { %v6987_v38 = vpop.f32.mrb[4].mxu1 }
 0x5a2   : > { %v5720_v19 = vpop.f32.mrb[5].mxu1  ;;  %v10569_v16 = vadd.f32 %v6987_v38, %v10530_v3  ;;  %v6037_v29 = vadd.f32 %v6036_v62, %v6035_v33 }
 0x5a3   : > { %v10559_v24 = vadd.f32 %v10530_v3, %v5720_v19 }
 0x5a4   : > { %v6004_v32 = vmul.f32 %v10569_v16, %v10569_v16  ;;  %v5939_v13 = vsel %vm258_vm0, %v10569_v16, 0.0 }
 0x5a5   : > { %v6003_v14 = vmul.f32 %v10559_v24, %v10559_v24  ;;  %v5937_v30 = vsel %vm258_vm0, %v10559_v24, 0.0 }
 0x5a6   : > { %v5938_v35 = vadd.f32 %v5937_v30, %v5936_v2  ;;  %v6040_v43 = vsel %vm258_vm0, %v6004_v32, 0.0 }
 0x5a7   : > { %v6038_v44 = vsel %vm258_vm0, %v6003_v14, 0.0 }
 0x5a8   : > { %v6039_v53 = vadd.f32 %v6038_v44, %v6037_v29  ;;  %v5940_v12 = vadd.f32 %v5939_v13, %v5938_v35 }
 0x5a9   : > { %v6990_v51 = vpop.f32.mrb[6].mxu1 }
 0x5aa   : > { %v5730_v37 = vpop.f32.mrb[7].mxu1  ;;  %v10585_v50 = vadd.f32 %v6990_v51, %v10530_v3  ;;  %v6041_v55 = vadd.f32 %v6040_v43, %v6039_v53 }
 0x5ab   : > { %v10574_v61 = vadd.f32 %v10530_v3, %v5730_v37 }
 0x5ac   : > { %v6006_v39 = vmul.f32 %v10585_v50, %v10585_v50  ;;  %v5943_v56 = vsel %vm258_vm0, %v10585_v50, 0.0 }
 0x5ad   : > { %v6005_v57 = vmul.f32 %v10574_v61, %v10574_v61  ;;  %v5941_v22 = vsel %vm258_vm0, %v10574_v61, 0.0 }
 0x5ae   : > { %v5942_v27 = vadd.f32 %v5941_v22, %v5940_v12  ;;  %v6044_v46 = vsel %vm258_vm0, %v6006_v39, 0.0 }
 0x5af   : > { %v6042_v1 = vsel %vm258_vm0, %v6005_v57, 0.0 }
 0x5b0   : > { %v6043_v11 = vadd.f32 %v6042_v1, %v6041_v55  ;;  %v5944_v0 = vadd.f32 %v5943_v56, %v5942_v27 }
 0x5b1   : > { %v6993_v23 = vpop.f32.mrb[8].mxu1 }
 0x5b2   : > { %v5740_v7 = vpop.f32.mrb[9].mxu1  ;;  %v10601_v28 = vadd.f32 %v6993_v23, %v10530_v3  ;;  %v6045_v26 = vadd.f32 %v6044_v46, %v6043_v11 }
 0x5b3   : > { %v10590_v20 = vadd.f32 %v10530_v3, %v5740_v7 }
 0x5b4   : > { %v6008_v21 = vmul.f32 %v10601_v28, %v10601_v28  ;;  %v5947_v8 = vsel %vm258_vm0, %v10601_v28, 0.0 }
 0x5b5   : > { %v6007_v18 = vmul.f32 %v10590_v20, %v10590_v20  ;;  %v5945_v34 = vsel %vm258_vm0, %v10590_v20, 0.0 }
 0x5b6   : > { %v5946_v4 = vadd.f32 %v5945_v34, %v5944_v0  ;;  %v6048_v49 = vsel %vm258_vm0, %v6008_v21, 0.0 }
 0x5b7   : > { %v6046_v10 = vsel %vm258_vm0, %v6007_v18, 0.0 }
 0x5b8   : > { %v6047_v19 = vadd.f32 %v6046_v10, %v6045_v26  ;;  %v5948_v51 = vadd.f32 %v5947_v8, %v5946_v4 }
 0x5b9   : > { %v6996_v6 = vpop.f32.mrb[10].mxu1 }
 0x5ba   : > { %v5750_v40 = vpop.f32.mrb[11].mxu1  ;;  %v10617_v63 = vadd.f32 %v6996_v6, %v10530_v3  ;;  %v6049_v60 = vadd.f32 %v6048_v49, %v6047_v19 }
 0x5bb   : > { %v10606_v9 = vadd.f32 %v10530_v3, %v5750_v40 }
 0x5bc   : > { %v6010_v47 = vmul.f32 %v10617_v63, %v10617_v63  ;;  %v5951_v31 = vsel %vm258_vm0, %v10617_v63, 0.0 }
 0x5bd   : > { %v6009_v15 = vmul.f32 %v10606_v9, %v10606_v9  ;;  %v5949_v5 = vsel %vm258_vm0, %v10606_v9, 0.0 }
 0x5be   : > { %v5950_v54 = vadd.f32 %v5949_v5, %v5948_v51  ;;  %v6052_v23 = vsel %vm258_vm0, %v6010_v47, 0.0 }
 0x5bf   : > { %v6050_v37 = vsel %vm258_vm0, %v6009_v15, 0.0 }
 0x5c0   : > { %v6051_v25 = vadd.f32 %v6050_v37, %v6049_v60  ;;  %v5952_v48 = vadd.f32 %v5951_v31, %v5950_v54 }
 0x5c1   : > { %v6999_v38 = vpop.f32.mrb[12].mxu1 }
 0x5c2   : > { %v5760_v52 = vpop.f32.mrb[13].mxu1  ;;  %v10633_v41 = vadd.f32 %v6999_v38, %v10530_v3  ;;  %v6053_v44 = vadd.f32 %v6052_v23, %v6051_v25 }
 0x5c3   : > { %v10622_v36 = vadd.f32 %v10530_v3, %v5760_v52 }
 0x5c4   : > { %v6012_v35 = vmul.f32 %v10633_v41, %v10633_v41  ;;  %v5955_v57 = vsel %vm258_vm0, %v10633_v41, 0.0 }
 0x5c5   : > { %v6011_v58 = vmul.f32 %v10622_v36, %v10622_v36  ;;  %v5953_v14 = vsel %vm258_vm0, %v10622_v36, 0.0 }
 0x5c6   : > { %v5954_v62 = vadd.f32 %v5953_v14, %v5952_v48  ;;  %v6056_v12 = vsel %vm258_vm0, %v6012_v35, 0.0 }
 0x5c7   : > { %v6054_v2 = vsel %vm258_vm0, %v6011_v58, 0.0 }
 0x5c8   : > { %v6055_v32 = vadd.f32 %v6054_v2, %v6053_v44  ;;  %v5956_v22 = vadd.f32 %v5955_v57, %v5954_v62 }
 0x5c9   : > { %v7002_v33 = vpop.f32.mrb[14].mxu1 }
 0x5ca   : > { %v5770_v30 = vpop.f32.mrb[15].mxu1  ;;  %v10649_v53 = vadd.f32 %v7002_v33, %v10530_v3  ;;  %v6057_v27 = vadd.f32 %v6056_v12, %v6055_v32 }
 0x5cb   : > { %v10640_v7 = vadd.f32 %v10530_v3, %v5770_v30 }
 0x5cc   : > { %v6014_v40 = vmul.f32 %v10649_v53, %v10649_v53  ;;  %v5959_v11 = vsel %vm258_vm0, %v10649_v53, 0.0 }
 0x5cd   : > { %v6013_v29 = vmul.f32 %v10640_v7, %v10640_v7  ;;  %v5957_v13 = vsel %vm258_vm0, %v10640_v7, 0.0 }
 0x5ce   : > { %v5958_v6 = vadd.f32 %v5957_v13, %v5956_v22  ;;  %v6060_v10 = vsel %vm258_vm0, %v6014_v40, 0.0 }
 0x5cf   : > { %v6058_v43 = vsel %vm258_vm0, %v6013_v29, 0.0 }
 0x5d0   : > { %v6059_v18 = vadd.f32 %v6058_v43, %v6057_v27  ;;  %v5960_v46 = vadd.f32 %v5959_v11, %v5958_v6 }
 0x5d1   : > { %v7005_v1 = vpop.f32.mrb[16].mxu1 }
 0x5d2   : > { %v5780_v55 = vpop.f32.mrb[17].mxu1  ;;  %v10663_v56 = vadd.f32 %v7005_v1, %v10530_v3  ;;  %v6061_v21 = vadd.f32 %v6060_v10, %v6059_v18 }
 0x5d3   : > { %v10658_v39 = vadd.f32 %v10530_v3, %v5780_v55 }
 0x5d4   : > { %v6016_v15 = vmul.f32 %v10663_v56, %v10663_v56  ;;  %v5963_v5 = vsel %vm258_vm0, %v10663_v56, 0.0 }
 0x5d5   : > { %v5961_v34 = vsel %vm258_vm0, %v10658_v39, 0.0  ;;  %v6015_v0 = vmul.f32 %v10658_v39, %v10658_v39 }
 0x5d6   : > { %v5962_v26 = vadd.f32 %v5961_v34, %v5960_v46  ;;  %v6064_v37 = vsel %vm258_vm0, %v6016_v15, 0.0 }
 0x5d7   : > { %v6062_v4 = vsel %vm258_vm0, %v6015_v0, 0.0 }
 0x5d8   : > { %v6063_v19 = vadd.f32 %v6062_v4, %v6061_v21  ;;  %v5964_v49 = vadd.f32 %v5963_v5, %v5962_v26 }
 0x5d9   : > { %v7008_v38 = vpop.f32.mrb[18].mxu1 }
 0x5da   : > { %v10674_v52 = vadd.f32 %v7008_v38, %v10530_v3  ;;  %v5790_v8 = vpop.f32.mrb[19].mxu1  ;;  %v6065_v25 = vadd.f32 %v6064_v37, %v6063_v19 }
 0x5db   : > { %v10679_v51 = vadd.f32 %v10530_v3, %v5790_v8 }
 0x5dc   : > { %v6018_v54 = vmul.f32 %v10674_v52, %v10674_v52  ;;  %v5967_v31 = vsel %vm258_vm0, %v10674_v52, 0.0 }
 0x5dd   : > { %v5965_v60 = vsel %vm258_vm0, %v10679_v51, 0.0  ;;  %v6017_v47 = vmul.f32 %v10679_v51, %v10679_v51 }
 0x5de   : > { %v5966_v58 = vadd.f32 %v5965_v60, %v5964_v49  ;;  %v6068_v30 = vsel %vm258_vm0, %v6018_v54, 0.0 }
 0x5df   : > { %v6066_v14 = vsel %vm258_vm0, %v6017_v47, 0.0 }
 0x5e0   : > { %v6067_v33 = vadd.f32 %v6066_v14, %v6065_v25  ;;  %v5968_v48 = vadd.f32 %v5967_v31, %v5966_v58 }
 0x5e1   : > { %v7011_v23 = vpop.f32.mrb[20].mxu1 }
 0x5e2   : > { %v10693_v2 = vadd.f32 %v7011_v23, %v10530_v3  ;;  %v5800_v62 = vpop.f32.mrb[21].mxu1  ;;  %v6069_v44 = vadd.f32 %v6068_v30, %v6067_v33 }
 0x5e3   : > { %v10696_v35 = vadd.f32 %v10530_v3, %v5800_v62 }
 0x5e4   : > { %v6020_v29 = vmul.f32 %v10693_v2, %v10693_v2  ;;  %v5971_v22 = vsel %vm258_vm0, %v10693_v2, 0.0 }
 0x5e5   : > { %v5969_v32 = vsel %vm258_vm0, %v10696_v35, 0.0  ;;  %v6019_v57 = vmul.f32 %v10696_v35, %v10696_v35 }
 0x5e6   : > { %v5970_v13 = vadd.f32 %v5969_v32, %v5968_v48  ;;  %v6072_v6 = vsel %vm258_vm0, %v6020_v29, 0.0 }
 0x5e7   : > { %v6070_v12 = vsel %vm258_vm0, %v6019_v57, 0.0 }
 0x5e8   : > { %v6071_v43 = vadd.f32 %v6070_v12, %v6069_v44  ;;  %v5972_v1 = vadd.f32 %v5971_v22, %v5970_v13 }
 0x5e9   : > { %v7014_v27 = vpop.f32.mrb[22].mxu1 }
 0x5ea   : > { %v10709_v55 = vadd.f32 %v7014_v27, %v10530_v3  ;;  %v5810_v40 = vpop.f32.mrb[23].mxu1  ;;  %v6073_v18 = vadd.f32 %v6072_v6, %v6071_v43 }
 0x5eb   : > { %v10712_v11 = vadd.f32 %v10530_v3, %v5810_v40 }
 0x5ec   : > { %v6022_v34 = vmul.f32 %v10709_v55, %v10709_v55  ;;  %v5975_v4 = vsel %vm258_vm0, %v10709_v55, 0.0 }
 0x5ed   : > { %v5973_v0 = vsel %vm258_vm0, %v10712_v11, 0.0  ;;  %v6021_v46 = vmul.f32 %v10712_v11, %v10712_v11 }
 0x5ee   : > { %v5974_v10 = vadd.f32 %v5973_v0, %v5972_v1  ;;  %v6076_v38 = vsel %vm258_vm0, %v6022_v34, 0.0 }
 0x5ef   : > { %v6074_v26 = vsel %vm258_vm0, %v6021_v46, 0.0 }
 0x5f0   : > { %v6075_v21 = vadd.f32 %v6074_v26, %v6073_v18  ;;  %v5976_v15 = vadd.f32 %v5975_v4, %v5974_v10 }
 0x5f1   : > { %v7017_v19 = vpop.f32.mrb[24].mxu1 }
 0x5f2   : > { %v10725_v8 = vadd.f32 %v7017_v19, %v10530_v3  ;;  %v5820_v5 = vpop.f32.mrb[25].mxu1  ;;  %v6077_v49 = vadd.f32 %v6076_v38, %v6075_v21 }
 0x5f3   : > { %v10728_v37 = vadd.f32 %v10530_v3, %v5820_v5 }
 0x5f4   : > { %v6024_v54 = vmul.f32 %v10725_v8, %v10725_v8  ;;  %v5979_v25 = vsel %vm258_vm0, %v10725_v8, 0.0 }
 0x5f5   : > { %v5977_v60 = vsel %vm258_vm0, %v10728_v37, 0.0  ;;  %v6023_v47 = vmul.f32 %v10728_v37, %v10728_v37 }
 0x5f6   : > { %v5978_v58 = vadd.f32 %v5977_v60, %v5976_v15  ;;  %v6080_v48 = vsel %vm258_vm0, %v6024_v54, 0.0 }
 0x5f7   : > { %v6078_v31 = vsel %vm258_vm0, %v6023_v47, 0.0 }
 0x5f8   : > { %v6079_v14 = vadd.f32 %v6078_v31, %v6077_v49  ;;  %v5980_v33 = vadd.f32 %v5979_v25, %v5978_v58 }
 0x5f9   : > { %v7020_v30 = vpop.f32.mrb[26].mxu1 }
 0x5fa   : > { %v10741_v23 = vadd.f32 %v7020_v30, %v10530_v3  ;;  %v5830_v62 = vpop.f32.mrb[27].mxu1  ;;  %v6081_v44 = vadd.f32 %v6080_v48, %v6079_v14 }
 0x5fb   : > { %v10744_v29 = vadd.f32 %v10530_v3, %v5830_v62 }
 0x5fc   : > { %v6026_v32 = vmul.f32 %v10741_v23, %v10741_v23  ;;  %v5983_v12 = vsel %vm258_vm0, %v10741_v23, 0.0 }
 0x5fd   : > { %v5981_v57 = vsel %vm258_vm0, %v10744_v29, 0.0  ;;  %v6025_v13 = vmul.f32 %v10744_v29, %v10744_v29 }
 0x5fe   : > { %v5982_v22 = vadd.f32 %v5981_v57, %v5980_v33  ;;  %v6084_v27 = vsel %vm258_vm0, %v6026_v32, 0.0 }
 0x5ff   : > { %v6082_v43 = vsel %vm258_vm0, %v6025_v13, 0.0 }
 0x600   : > { %v6083_v1 = vadd.f32 %v6082_v43, %v6081_v44  ;;  %v5984_v6 = vadd.f32 %v5983_v12, %v5982_v22 }
 0x601   : > { %v7023_v40 = vpop.f32.mrb[28].mxu1 }
 0x602   : > { %v10757_v18 = vadd.f32 %v7023_v40, %v10530_v3  ;;  %v5840_v34 = vpop.f32.mrb[29].mxu1  ;;  %v6085_v0 = vadd.f32 %v6084_v27, %v6083_v1 }
 0x603   : > { %v10760_v46 = vadd.f32 %v10530_v3, %v5840_v34 }
 0x604   : > { %v6028_v10 = vmul.f32 %v10757_v18, %v10757_v18  ;;  %v5987_v15 = vsel %vm258_vm0, %v10757_v18, 0.0 }
 0x605   : > { %v5985_v4 = vsel %vm258_vm0, %v10760_v46, 0.0  ;;  %v6027_v26 = vmul.f32 %v10760_v46, %v10760_v46 }
 0x606   : > { %v5986_v21 = vadd.f32 %v5985_v4, %v5984_v6  ;;  %v6088_v49 = vsel %vm258_vm0, %v6028_v10, 0.0 }
 0x607   : > { %v6086_v38 = vsel %vm258_vm0, %v6027_v26, 0.0 }
 0x608   : > { %v6087_v19 = vadd.f32 %v6086_v38, %v6085_v0  ;;  %v5988_v5 = vadd.f32 %v5987_v15, %v5986_v21 }
 0x609   : > { %v7026_v54 = vpop.f32.mrb[30].mxu1 }
 0x60a   : > { %v10773_v60 = vadd.f32 %v7026_v54, %v10530_v3  ;;  %v5850_v47 = vpop.f32.mrb[31].mxu1  ;;  %v6089_v58 = vadd.f32 %v6088_v49, %v6087_v19 }
 0x60b   : > { %v10776_v25 = vadd.f32 %v10530_v3, %v5850_v47 }
 0x60c   : > { %v6030_v31 = vmul.f32 %v10773_v60, %v10773_v60  ;;  %v5991_v30 = vsel %vm258_vm0, %v10773_v60, 0.0 }
 0x60d   : > { %v5989_v14 = vsel %vm258_vm0, %v10776_v25, 0.0  ;;  %v6029_v33 = vmul.f32 %v10776_v25, %v10776_v25 }
 0x60e   : > { %v5990_v48 = vadd.f32 %v5989_v14, %v5988_v5  ;;  %v6092_v3 = vsel %vm258_vm0, %v6030_v31, 0.0 }
 0x60f   : > { %v6090_v62 = vsel %vm258_vm0, %v6029_v33, 0.0 }
 0x610   : > { %v5992_v44 = vadd.f32 %v5991_v30, %v5990_v48  ;;  %v6091_v32 = vadd.f32 %v6090_v62, %v6089_v58 }
 0x612   : > { %v5993_v57 = vrot.slane %v5992_v44, 4  ;;  %v6093_v13 = vadd.f32 %v6092_v3, %v6091_v32 }
 0x614   : > { %v5994_v22 = vadd.f32 %v5993_v57, %v5992_v44  ;;  %v6094_v12 = vrot.slane %v6093_v13, 4 }
 0x616   : > { %v5995_v43 = vrot.slane %v5994_v22, 2  ;;  %v6095_v1 = vadd.f32 %v6094_v12, %v6093_v13 }
 0x618   : > { %v5996_v6 = vadd.f32 %v5995_v43, %v5994_v22  ;;  %v6096_v27 = vrot.slane %v6095_v1, 2 }
 0x61a   : > { %v5997_v40 = vrot.slane %v5996_v6, 1  ;;  %v6097_v34 = vadd.f32 %v6096_v27, %v6095_v1 }
 0x61c   : > { %v5998_v0 = vadd.f32 %v5997_v40, %v5996_v6  ;;  %v6098_v10 = vrot.slane %v6097_v34, 1 }
 0x61e   : > { %v6099_v4 = vadd.f32 %v6098_v10, %v6097_v34  ;;  %v10788_v26 = vmul.f32 0.00390625, %v5998_v0 }
 0x620   : > { %v6101_v21 = vmul.f32 0.00390625, %v6099_v4  ;;  %v6102_v15 = vmul.f32 %v10788_v26, %v10788_v26  ;;  %v6123_v5 = vsub.f32 %v10679_v51, %v10788_v26  ;;  %v6124_v49 = vsub.f32 %v10674_v52, %v10788_v26 }
 0x621   : > { %v6125_v54 = vsub.f32 %v10696_v35, %v10788_v26  ;;  %v6126_v47 = vsub.f32 %v10693_v2, %v10788_v26  ;;  %v6127_v58 = vsub.f32 %v10712_v11, %v10788_v26  ;;  %v6128_v31 = vsub.f32 %v10709_v55, %v10788_v26 }
 0x622   : > { %v6103_v38 = vsub.f32 %v6101_v21, %v6102_v15  ;;  %v6129_v14 = vsub.f32 %v10728_v37, %v10788_v26  ;;  %v6130_v51 = vsub.f32 %v10725_v8, %v10788_v26  ;;  %v6131_v52 = vsub.f32 %v10744_v29, %v10788_v26 }
 0x623   : > { %v6132_v35 = vsub.f32 %v10741_v23, %v10788_v26  ;;  %v6133_v2 = vsub.f32 %v10760_v46, %v10788_v26  ;;  %v6134_v11 = vsub.f32 %v10757_v18, %v10788_v26  ;;  %v6135_v55 = vsub.f32 %v10776_v25, %v10788_v26 }
 0x624   : > { %v6104_v19 = vmax.f32 %v6103_v38, 0.0  ;;  %v6136_v37 = vsub.f32 %v10773_v60, %v10788_v26  ;;  %v6105_v8 = vsub.f32 %v10536_v42, %v10788_v26  ;;  %v6106_v23 = vsub.f32 %v10533_v45, %v10788_v26 }
 0x625   : > { %v6107_v29 = vsub.f32 %v10539_v59, %v10788_v26  ;;  %v6108_v18 = vsub.f32 %v10554_v17, %v10788_v26  ;;  %v6109_v46 = vsub.f32 %v10559_v24, %v10788_v26  ;;  %v6110_v60 = vsub.f32 %v10569_v16, %v10788_v26 }
 0x626   : > { %v6137_v33 = vadd.f32 1e-05, %v6104_v19  ;;  %v6111_v25 = vsub.f32 %v10574_v61, %v10788_v26  ;;  %v6112_v42 = vsub.f32 %v10585_v50, %v10788_v26  ;;  %v6113_v45 = vsub.f32 %v10590_v20, %v10788_v26 }
 0x627   : > { %v6114_v59 = vsub.f32 %v10601_v28, %v10788_v26  ;;  %v6115_v17 = vsub.f32 %v10606_v9, %v10788_v26  ;;  %v6116_v24 = vsub.f32 %v10617_v63, %v10788_v26  ;;  %v6117_v16 = vsub.f32 %v10622_v36, %v10788_v26 }
 0x628   : > { %7204 = vrsqrt.f32 %v6137_v33  ;;  %v6118_v61 = vsub.f32 %v10633_v41, %v10788_v26  ;;  %v6119_v50 = vsub.f32 %v10640_v7, %v10788_v26  ;;  %v6120_v20 = vsub.f32 %v10649_v53, %v10788_v26  ;;  %v11323_v33 = vld [vmem:[#allocation7_spill] sm:$0xff] }
 0x629   : > { %v6121_v28 = vsub.f32 %v10658_v39, %v10788_v26  ;;  %v6122_v9 = vsub.f32 %v10663_v56, %v10788_v26 }
 0x632   : > { %v7205_v48 = vpop.eup %7204 }
 0x633   : > { %v6139_v63 = vmul.f32 %v7205_v48, %v6105_v8  ;;  %v6140_v30 = vmul.f32 %v7205_v48, %v6106_v23  ;;  %v6141_v62 = vmul.f32 %v7205_v48, %v6107_v29  ;;  %v6142_v36 = vmul.f32 %v7205_v48, %v6108_v18  ;;  %v11324_v23 = vld [vmem:[#allocation8_spill] sm:$0xff]  ;;  %v11325_v29 = vld [vmem:[#allocation9_spill] sm:$0xff]  ;;  %v11327_v18 = vld [vmem:[#allocation11_spill] sm:$0xff] }
 0x634   : > { %v6143_v44 = vmul.f32 %v7205_v48, %v6109_v46  ;;  %v6144_v32 = vmul.f32 %v7205_v48, %v6110_v60  ;;  %v6145_v41 = vmul.f32 %v7205_v48, %v6111_v25  ;;  %v6146_v3 = vmul.f32 %v7205_v48, %v6112_v42  ;;  %v11328_v60 = vld [vmem:[#allocation12_spill] sm:$0xff]  ;;  %v11329_v42 = vld [vmem:[#allocation13_spill] sm:$0xff] }
 0x635   : > { %v6147_v57 = vmul.f32 %v7205_v48, %v6113_v45  ;;  %v6148_v13 = vmul.f32 %v7205_v48, %v6114_v59  ;;  %v6149_v7 = vmul.f32 %v7205_v48, %v6115_v17  ;;  %v6150_v22 = vmul.f32 %v7205_v48, %v6116_v24  ;;  %v11330_v59 = vld [vmem:[#allocation14_spill] sm:$0xff]  ;;  %v11331_v24 = vld [vmem:[#allocation15_spill] sm:$0xff] }
 0x636   : > { %v6151_v12 = vmul.f32 %v7205_v48, %v6117_v16  ;;  %v6152_v53 = vmul.f32 %v7205_v48, %v6118_v61  ;;  %v6153_v43 = vmul.f32 %v7205_v48, %v6119_v50  ;;  %v6154_v39 = vmul.f32 %v7205_v48, %v6120_v20  ;;  %v11332_v61 = vld [vmem:[#allocation16_spill] sm:$0xff]  ;;  %v11333_v50 = vld [vmem:[#allocation17_spill] sm:$0xff] }
 0x637   : > { %v6155_v1 = vmul.f32 %v7205_v48, %v6121_v28  ;;  %v6156_v6 = vmul.f32 %v7205_v48, %v6122_v9  ;;  %v6157_v56 = vmul.f32 %v7205_v48, %v6123_v5  ;;  %v6158_v27 = vmul.f32 %v7205_v48, %v6124_v49  ;;  %v11334_v28 = vld [vmem:[#allocation18_spill] sm:$0xff] }
 0x638   : > { %v6159_v40 = vmul.f32 %v7205_v48, %v6125_v54  ;;  %v6160_v34 = vmul.f32 %v7205_v48, %v6126_v47  ;;  %v6161_v0 = vmul.f32 %v7205_v48, %v6127_v58  ;;  %v6162_v10 = vmul.f32 %v7205_v48, %v6128_v31  ;;  %v11319_v54 = vld [vmem:[#allocation3_spill] sm:$0xff]  ;;  %v11320_v58 = vld [vmem:[#allocation4_spill] sm:$0xff] }
 0x639   : > { %v6163_v4 = vmul.f32 %v7205_v48, %v6129_v14  ;;  %v6164_v26 = vmul.f32 %v7205_v48, %v6130_v51  ;;  %v6165_v21 = vmul.f32 %v7205_v48, %v6131_v52  ;;  %v6166_v15 = vmul.f32 %v7205_v48, %v6132_v35  ;;  %v11321_v14 = vld [vmem:[#allocation5_spill] sm:$0xff]  ;;  %v11322_v52 = vld [vmem:[#allocation6_spill] sm:$0xff] }
 0x63a   : > { %v6167_v38 = vmul.f32 %v7205_v48, %v6133_v2  ;;  %v6168_v19 = vmul.f32 %v7205_v48, %v6134_v11  ;;  %v6169_v5 = vmul.f32 %v7205_v48, %v6135_v55  ;;  %v6170_v49 = vmul.f32 %v7205_v48, %v6136_v37  ;;  %v11326_v55 = vld [vmem:[#allocation10_spill] sm:$0xff] }
 0x63b   : > { %v6171_v47 = vadd.f32 %v6139_v63, %v11319_v54  ;;  %v6172_v31 = vadd.f32 %v6140_v30, %v11320_v58  ;;  %v6173_v51 = vadd.f32 %v6141_v62, %v11321_v14  ;;  %v6174_v35 = vadd.f32 %v6142_v36, %v11322_v52  ;;  %v11335_v63 = vld [vmem:[#allocation19_spill] sm:$0xff]  ;;  %v11336_v62 = vld [vmem:[#allocation20_spill] sm:$0xff] }
 0x63c   : > { %v6175_v8 = vadd.f32 %v6143_v44, %v11323_v33  ;;  %v6176_v2 = vadd.f32 %v6144_v32, %v11324_v23  ;;  %v6177_v11 = vadd.f32 %v6145_v41, %v11325_v29  ;;  %v6178_v37 = vadd.f32 %v6146_v3, %v11326_v55  ;;  %v11337_v44 = vld [vmem:[#allocation21_spill] sm:$0xff]  ;;  %v11338_v41 = vld [vmem:[#allocation22_spill] sm:$0xff]  ;;  %v11348_v54 = vld [vmem:[#allocation32_spill] sm:$0xff] }
 0x63d   : > { %v6179_v46 = vadd.f32 %v6147_v57, %v11327_v18  ;;  %v6180_v25 = vadd.f32 %v6148_v13, %v11328_v60  ;;  %v6181_v45 = vadd.f32 %v6149_v7, %v11329_v42  ;;  %v6182_v17 = vadd.f32 %v6150_v22, %v11330_v59  ;;  %6203 = vst.msk [vmem:[%s10861_s9] sm:$0xff] %vm258_vm0, %v6171_v47  ;;  %v11339_v57 = vld [vmem:[#allocation23_spill] sm:$0xff]  ;;  %v11340_v7 = vld [vmem:[#allocation24_spill] sm:$0xff]  ;;  %v11349_v47 = vld [vmem:[#allocation33_spill] sm:$0xff] }
 0x63e   : > { %6204 = vst.msk [vmem:[%s10861_s9 + $0x8] sm:$0xff] %vm258_vm0, %v6172_v31  ;;  %6205 = vst.msk [vmem:[%s10861_s9 + $0x10] sm:$0xff] %vm258_vm0, %v6173_v51  ;;  %v6183_v16 = vadd.f32 %v6151_v12, %v11331_v24  ;;  %v6184_v48 = vadd.f32 %v6152_v53, %v11332_v61  ;;  %v6185_v20 = vadd.f32 %v6153_v43, %v11333_v50  ;;  %v11341_v12 = vld [vmem:[#allocation25_spill] sm:$0xff]  ;;  %v11342_v43 = vld [vmem:[#allocation26_spill] sm:$0xff] }
 0x63f   : > { %6206 = vst.msk [vmem:[%s10861_s9 + $0x18] sm:$0xff] %vm258_vm0, %v6174_v35  ;;  %v6186_v9 = vadd.f32 %v6154_v39, %v11334_v28  ;;  %6207 = vst.msk [vmem:[%s10861_s9 + $0x20] sm:$0xff] %vm258_vm0, %v6175_v8  ;;  %v6187_v30 = vadd.f32 %v6155_v1, %v11335_v63  ;;  %v6188_v36 = vadd.f32 %v6156_v6, %v11336_v62  ;;  %v11343_v1 = vld [vmem:[#allocation27_spill] sm:$0xff] }
 0x640   : > { %6208 = vst.msk [vmem:[%s10861_s9 + $0x28] sm:$0xff] %vm258_vm0, %v6176_v2  ;;  %6209 = vst.msk [vmem:[%s10861_s9 + $0x30] sm:$0xff] %vm258_vm0, %v6177_v11  ;;  %v6189_v32 = vadd.f32 %v6157_v56, %v11337_v44  ;;  %v6190_v3 = vadd.f32 %v6158_v27, %v11338_v41  ;;  %v6191_v13 = vadd.f32 %v6159_v40, %v11339_v57  ;;  %v11344_v56 = vld [vmem:[#allocation28_spill] sm:$0xff]  ;;  %v11345_v40 = vld [vmem:[#allocation29_spill] sm:$0xff] }
 0x641   : > { %6210 = vst.msk [vmem:[%s10861_s9 + $0x38] sm:$0xff] %vm258_vm0, %v6178_v37  ;;  %6211 = vst.msk [vmem:[%s10861_s9 + $0x40] sm:$0xff] %vm258_vm0, %v6179_v46  ;;  %v6192_v22 = vadd.f32 %v6160_v34, %v11340_v7  ;;  %v6193_v53 = vadd.f32 %v6161_v0, %v11341_v12  ;;  %v6194_v39 = vadd.f32 %v6162_v10, %v11342_v43  ;;  %v11346_v0 = vld [vmem:[#allocation30_spill] sm:$0xff] }
 0x642   : > { %6212 = vst.msk [vmem:[%s10861_s9 + $0x48] sm:$0xff] %vm258_vm0, %v6180_v25  ;;  %6213 = vst.msk [vmem:[%s10861_s9 + $0x50] sm:$0xff] %vm258_vm0, %v6181_v45  ;;  %v6195_v6 = vadd.f32 %v6163_v4, %v11343_v1  ;;  %v6196_v27 = vadd.f32 %v6164_v26, %v11344_v56  ;;  %v6197_v34 = vadd.f32 %v6165_v21, %v11345_v40  ;;  %v11347_v4 = vld [vmem:[#allocation31_spill] sm:$0xff] }
 0x643   : > { %6214 = vst.msk [vmem:[%s10861_s9 + $0x58] sm:$0xff] %vm258_vm0, %v6182_v17  ;;  %6215 = vst.msk [vmem:[%s10861_s9 + $0x60] sm:$0xff] %vm258_vm0, %v6183_v16  ;;  %v6198_v10 = vadd.f32 %v6166_v15, %v11346_v0  ;;  %v6199_v26 = vadd.f32 %v6167_v38, %v11347_v4  ;;  %v6200_v21 = vadd.f32 %v6168_v19, %v11348_v54  ;;  %v11350_v15 = vld [vmem:[#allocation34_spill] sm:$0xff] }
 0x644   : > { %6216 = vst.msk [vmem:[%s10861_s9 + $0x68] sm:$0xff] %vm258_vm0, %v6184_v48  ;;  %6217 = vst.msk [vmem:[%s10861_s9 + $0x70] sm:$0xff] %vm258_vm0, %v6185_v20  ;;  %v6201_v58 = vadd.f32 %v6169_v5, %v11349_v47  ;;  %v6202_v31 = vadd.f32 %v6170_v49, %v11350_v15 }
 0x645   : > { %6218 = vst.msk [vmem:[%s10861_s9 + $0x78] sm:$0xff] %vm258_vm0, %v6186_v9  ;;  %6219 = vst.msk [vmem:[%s10861_s9 + $0x80] sm:$0xff] %vm258_vm0, %v6187_v30 }
 0x646   : > { %6220 = vst.msk [vmem:[%s10861_s9 + $0x88] sm:$0xff] %vm258_vm0, %v6188_v36  ;;  %6221 = vst.msk [vmem:[%s10861_s9 + $0x90] sm:$0xff] %vm258_vm0, %v6189_v32 }
 0x647   : > { %6222 = vst.msk [vmem:[%s10861_s9 + $0x98] sm:$0xff] %vm258_vm0, %v6190_v3  ;;  %6223 = vst.msk [vmem:[%s10861_s9 + $0xa0] sm:$0xff] %vm258_vm0, %v6191_v13 }
 0x648   : > { %6224 = vst.msk [vmem:[%s10861_s9 + $0xa8] sm:$0xff] %vm258_vm0, %v6192_v22  ;;  %6225 = vst.msk [vmem:[%s10861_s9 + $0xb0] sm:$0xff] %vm258_vm0, %v6193_v53 }
 0x649   : > { %6226 = vst.msk [vmem:[%s10861_s9 + $0xb8] sm:$0xff] %vm258_vm0, %v6194_v39  ;;  %6227 = vst.msk [vmem:[%s10861_s9 + $0xc0] sm:$0xff] %vm258_vm0, %v6195_v6 }
 0x64a   : > { %6228 = vst.msk [vmem:[%s10861_s9 + $0xc8] sm:$0xff] %vm258_vm0, %v6196_v27  ;;  %6229 = vst.msk [vmem:[%s10861_s9 + $0xd0] sm:$0xff] %vm258_vm0, %v6197_v34 }
 0x64b   : > { %6230 = vst.msk [vmem:[%s10861_s9 + $0xd8] sm:$0xff] %vm258_vm0, %v6198_v10  ;;  %6231 = vst.msk [vmem:[%s10861_s9 + $0xe0] sm:$0xff] %vm258_vm0, %v6199_v26 }
 0x64c   : > { %6232 = vst.msk [vmem:[%s10861_s9 + $0xe8] sm:$0xff] %vm258_vm0, %v6200_v21  ;;  %6233 = vst.msk [vmem:[%s10861_s9 + $0xf0] sm:$0xff] %vm258_vm0, %v6201_v58 }
 0x64d   : > { %6234 = vst.msk [vmem:[%s10861_s9 + $0xf8] sm:$0xff] %vm258_vm0, %v6202_v31 }
 0x64e PF: > { %s15_s18 = sadd.s32 1, %s7272_s18  }
 0x64f   : > { %p12_p4 = scmp.ge.s32.totalorder %s15_s18, 4  }
 0x651   :  { %14 = sbr.rel (!%p12_p4) target bundleno = 1 (0x1), region = 77 }

</bundles_post_ra>
